<compile_context>
chip_gen: v6e
topology: v6e:2x2x1
jax: 0.10.0
libtpu: 0.0.40
codegen_flags: <defaults>
</compile_context>

<pallas_src>
import jax
import jax.numpy as jnp
from jax.experimental import pallas as pl
from jax.experimental.pallas import tpu as pltpu

HIDDEN = 256        # fixed by the module (vfc -> 256, LSTM hidden 256, mfc1 512->256)
N_HEADS = 5         # cf1..cf5
OUT_PAD = 128       # lane-dense padded head width (>= N_HEADS, multiple of 128)


# Packed (256, *) weight-slab column offsets (all multiples of 128 -> free
# static lane slices inside the kernel).
_WHH_LO, _WHH_HI = 0, 4 * HIDDEN                       # (256, 1024) LSTM W_hh^T
_WMV_LO, _WMV_HI = 4 * HIDDEN, 5 * HIDDEN              # (256, 256)  mfc1 visual half
_WMH_LO, _WMH_HI = 5 * HIDDEN, 6 * HIDDEN              # (256, 256)  mfc1 hidden half
_WH_LO,  _WH_HI  = 6 * HIDDEN, 6 * HIDDEN + OUT_PAD    # (256, 128)  heads (padded)
SLAB_W = _WH_HI                                        # 1664

# Packed (1, *) bias-row offsets.
_BV_LO, _BV_HI = 0, HIDDEN                             # vfc bias
_BM_LO, _BM_HI = HIDDEN, 2 * HIDDEN                    # mfc1 bias
_BH_LO, _BH_HI = 2 * HIDDEN, 2 * HIDDEN + OUT_PAD      # head biases (padded)
BIAS_W = _BH_HI                                        # 640


def _sigmoid(x):
    # sigmoid(x) == 0.5 * (tanh(x/2) + 1): one EUP tanh + VALU scale/add,
    # no exp + divide on the serialized chain.
    return 0.5 * (jnp.tanh(0.5 * x) + 1.0)


# ----------------------------------------------------------------------------
# Single fused kernel:
#   LSTM recurrence over tx  ->  h  (stays in vregs, never leaves the kernel)
#   vfc + ReLU on vx
#   mfc1 as split matmul:  cat((v, h), 1) @ Wm == v @ Wm[:256] + h @ Wm[256:]
#   5 heads packed (zero-padded to 128 lanes) into one (256, 128) matmul
# ----------------------------------------------------------------------------
def _mm_fused_kernel(tx_ref, wih_ref, vx_ref, wv_ref, w256_ref, bias_ref,
                     out_ref, xp_ref):
    H = HIDDEN
    S = tx_ref.shape[0]
    bf16 = jnp.bfloat16

    # ---- LSTM: pre-project the whole sequence through W_ih on the MXU, and
    #      park it in a VMEM scratch so per-step reads are plain loads. ----
    xp_ref[...] = jnp.dot(tx_ref[...].astype(bf16), wih_ref[...],
                          preferred_element_type=jnp.float32)        # (S, 4H) f32

    # ---- t = 0: h = c = 0  ->  skip h@whh, gates come straight from xp[0],
    #      and c = i*g (the f*c term vanishes). ----
    g0 = xp_ref[0:1, :]                                               # (1, 4H)
    sig0 = _sigmoid(g0[:, 0:3 * H])                                   # [i, f, o]
    gg0 = jnp.tanh(g0[:, 3 * H:4 * H])                                # g
    c = sig0[:, 0:H] * gg0                                            # i * g
    h = sig0[:, 2 * H:3 * H] * jnp.tanh(c)                            # o * tanh(c)

    # S is small and static -> unrolled recurrence (inherently sequential; the
    # M=1 MXU utilization is inherent for a single sequence — batching
    # sequences at the model level is the only real fix).
    # TODO(synk): if SEQ grows beyond ~16, switch to lax.fori_loop with rows
    # read via pl.ds(t, 1) from xp_ref.
    for t in range(1, S):
        # Re-index whh from the packed ref here (short live range right next
        # to its MXU use) instead of hoisting a 512 KiB value over the loop.
        gates = xp_ref[t:t + 1, :] + jnp.dot(
            h.astype(bf16), w256_ref[:, _WHH_LO:_WHH_HI],
            preferred_element_type=jnp.float32)                       # (1, 4H)
        # Gate layout (pre-permuted at param prep): [i, f, o | g]
        sig = _sigmoid(gates[:, 0:3 * H])                             # one EUP pass
        g = jnp.tanh(gates[:, 3 * H:4 * H])                           # one EUP pass
        i = sig[:, 0 * H:1 * H]
        f = sig[:, 1 * H:2 * H]
        o = sig[:, 2 * H:3 * H]
        c = f * c + i * g
        h = o * jnp.tanh(c)

    # ---- visual branch: vfc + ReLU (vdp dropout == identity at inference) ----
    bv = bias_ref[:, _BV_LO:_BV_HI]
    v = jnp.dot(vx_ref[...].astype(bf16), wv_ref[...],
                preferred_element_type=jnp.float32)
    v = jnp.maximum(v + bv, 0.0)                                      # (B, 256) f32

    # ---- mfc1 as split matmul over static, lane-aligned views of the slab ----
    bm = bias_ref[:, _BM_LO:_BM_HI]
    t_proj = jnp.dot(h.astype(bf16), w256_ref[:, _WMH_LO:_WMH_HI],
                     preferred_element_type=jnp.float32)              # (1, 256)
    m = jnp.dot(v.astype(bf16), w256_ref[:, _WMV_LO:_WMV_HI],
                preferred_element_type=jnp.float32)                   # (B, 256)
    m = jnp.maximum(m + t_proj + bm, 0.0)                             # broadcast h over batch

    # ---- 5 classifier heads packed + zero-padded to 128 lanes ----
    bh = bias_ref[:, _BH_LO:_BH_HI]
    logits = jnp.dot(m.astype(bf16), w256_ref[:, _WH_LO:_WH_HI],
                     preferred_element_type=jnp.float32) + bh
    out_ref[...] = _sigmoid(logits)                                   # (B, 128) lane-dense store


def mm_network_forward(vx, tx, kp):
    """Returns a tuple of 5 arrays of shape (B, 1), matching the PyTorch module."""
    B = vx.shape[0]
    S = tx.shape[0]
    out_pad = pl.pallas_call(
        _mm_fused_kernel,
        out_shape=jax.ShapeDtypeStruct((B, OUT_PAD), jnp.float32),
        in_specs=[pl.BlockSpec(memory_space=pltpu.MemorySpace.VMEM)] * 6,
        out_specs=pl.BlockSpec(memory_space=pltpu.MemorySpace.VMEM),
        scratch_shapes=[pltpu.VMEM((S, 4 * HIDDEN), jnp.float32)],
        # Total VMEM use ~1 MiB (largest tensor: 832 KiB weight slab): no
        # grid / tiling needed on any generation (v7x 64 MiB is a non-issue).
        # TODO(synk): if B (or vdim) scales up, add a grid over B with
        # dimension_semantics=("parallel",); compute the LSTM once (e.g. under
        # pl.when(pl.program_id(0) == 0) into a VMEM scratch, or a separate
        # call) rather than re-running the serial recurrence per B-block.
    )(tx, kp["w_ih"], vx, kp["wv"], kp["w256"], kp["bias"])
    out = out_pad[:, :N_HEADS]
    return tuple(out[:, i:i + 1] for i in range(N_HEADS))


# ----------------------------------------------------------------------------
# Parameter construction (deterministic, synthetic, f32, torch-like layout:
# transposed weights, LSTM gate order [i, f, g, o]) + kernel-side preparation
# (gate permutation to [i, f, o, g], bf16 cast, weight/bias packing,
# lane-padding of the heads).
# ----------------------------------------------------------------------------
def init_params(key, vdim, tdim):
    ks = jax.random.split(key, 8)
    s = 0.05
    return {
        "wv":   jax.random.normal(ks[0], (vdim, HIDDEN), jnp.float32) * s,       # vfc.weight^T
        "bv":   jax.random.normal(ks[1], (1, HIDDEN), jnp.float32) * s,          # vfc.bias
        "w_ih": jax.random.normal(ks[2], (tdim, 4 * HIDDEN), jnp.float32) * s,   # weight_ih_l0^T
        "w_hh": jax.random.normal(ks[3], (HIDDEN, 4 * HIDDEN), jnp.float32) * s, # weight_hh_l0^T
        "wm":   jax.random.normal(ks[4], (2 * HIDDEN, HIDDEN), jnp.float32) * s, # mfc1.weight^T
        "bm":   jax.random.normal(ks[5], (1, HIDDEN), jnp.float32) * s,          # mfc1.bias
        "wh":   jax.random.normal(ks[6], (HIDDEN, N_HEADS), jnp.float32) * s,    # cf1..cf5 packed
        "bh":   jax.random.normal(ks[7], (1, N_HEADS), jnp.float32) * s,
    }


def prepare_kernel_params(p):
    """One-time layout/dtype prep: permute gates [i,f,g,o]->[i,f,o,g], cast MXU
    weights to bf16, pack all K=256 weights into one (256, 1664) slab and all
    biases into one (1, 640) row, pad heads lane-dense to 128."""
    H = HIDDEN
    bf16 = jnp.bfloat16

    def perm_gates(w):   # columns (.., 4H) in [i,f,g,o] -> [i,f,o,g]
        return jnp.concatenate([w[:, 0:2 * H], w[:, 3 * H:4 * H], w[:, 2 * H:3 * H]], axis=1)

    wh_pad = jnp.zeros((H, OUT_PAD), jnp.float32).at[:, :N_HEADS].set(p["wh"])
    bh_pad = jnp.zeros((1, OUT_PAD), jnp.float32).at[:, :N_HEADS].set(p["bh"])

    # (256, 1664) bf16 slab: [ whh | wm_visual | wm_hidden | wh_pad ]
    w256 = jnp.concatenate(
        [perm_gates(p["w_hh"]), p["wm"][0:H, :], p["wm"][H:2 * H, :], wh_pad],
        axis=1).astype(bf16)
    # (1, 640) f32 bias row: [ bv | bm | bh_pad ]
    bias = jnp.concatenate([p["bv"], p["bm"], bh_pad], axis=1)

    return {
        "w_ih": perm_gates(p["w_ih"]).astype(bf16),   # (tdim, 1024) bf16
        "wv":   p["wv"].astype(bf16),                 # (vdim, 256) bf16
        "w256": w256,                                 # (256, 1664) bf16
        "bias": bias,                                 # (1, 640) f32
    }


# Pure-JAX reference (same math & same bf16-matmul / f32-elementwise numerics,
# but original [i,f,g,o] gate layout, no wm split, no packing, exp-based
# sigmoid, no t=0 special case).
# NOTE: the recurrence uses bf16 matmul inputs like the kernel; parity with a
# true f32 PyTorch LSTM at tight tolerances is not asserted here.
def reference_forward(vx, tx, p):
    H = HIDDEN
    bf16 = jnp.bfloat16
    wv = p["wv"].astype(bf16)
    wih = p["w_ih"].astype(bf16)
    whh = p["w_hh"].astype(bf16)
    wm = p["wm"].astype(bf16)
    wh = p["wh"].astype(bf16)

    v = jnp.maximum(jnp.dot(vx.astype(bf16), wv, preferred_element_type=jnp.float32)
                    + p["bv"], 0.0)
    xp = jnp.dot(tx.astype(bf16), wih, preferred_element_type=jnp.float32)
    h = jnp.zeros((1, H), jnp.float32)
    c = jnp.zeros((1, H), jnp.float32)
    for t in range(tx.shape[0]):
        g_all = xp[t:t + 1] + jnp.dot(h.astype(bf16), whh, preferred_element_type=jnp.float32)
        i = jax.nn.sigmoid(g_all[:, 0 * H:1 * H])
        f = jax.nn.sigmoid(g_all[:, 1 * H:2 * H])
        g = jnp.tanh(g_all[:, 2 * H:3 * H])
        o = jax.nn.sigmoid(g_all[:, 3 * H:4 * H])
        c = f * c + i * g
        h = o * jnp.tanh(c)
    m = jnp.concatenate([v, jnp.broadcast_to(h, (vx.shape[0], H))], axis=1)
    m = jnp.maximum(jnp.dot(m.astype(bf16), wm, preferred_element_type=jnp.float32)
                    + p["bm"], 0.0)
    return jax.nn.sigmoid(jnp.dot(m.astype(bf16), wh, preferred_element_type=jnp.float32)
                          + p["bh"])


if __name__ == "__main__":
    B, VDIM, TDIM, SEQ = 8, 64, 32, 8

    key = jax.random.PRNGKey(0)
    k_params, k_vx, k_tx = jax.random.split(key, 3)
    params = init_params(k_params, VDIM, TDIM)
    kparams = prepare_kernel_params(params)

    vx = jax.random.normal(k_vx, (B, VDIM), jnp.float32)
    tx = jax.random.normal(k_tx, (SEQ, TDIM), jnp.float32)

    outs = mm_network_forward(vx, tx, kparams)
    outs = jax.block_until_ready(outs)

    ref = reference_forward(vx, tx, params)
    got = jnp.concatenate(outs, axis=1)
    assert got.shape == (B, N_HEADS)
    assert jnp.allclose(got, ref, rtol=1e-3, atol=2e-3), "mismatch vs reference"

    print("KERNEL_OK")
</pallas_src>

<mosaic_0001>
module attributes {stable_mosaic.version = 11 : i64} {
  func.func @_mm_fused_kernel(%arg0: memref<8x32xf32, #tpu.memory_space<vmem>>, %arg1: memref<32x1024xbf16, #tpu.memory_space<vmem>>, %arg2: memref<8x64xf32, #tpu.memory_space<vmem>>, %arg3: memref<64x256xbf16, #tpu.memory_space<vmem>>, %arg4: memref<256x1664xbf16, #tpu.memory_space<vmem>>, %arg5: memref<1x640xf32, #tpu.memory_space<vmem>>, %arg6: memref<8x128xf32, #tpu.memory_space<vmem>>, %arg7: memref<8x1024xf32, #tpu.memory_space<vmem>>) attributes {dimension_semantics = [], scalar_prefetch = 0 : i64, scratch_operands = 1 : i64, tpu.core_type = #tpu.core_type<tc>} {
    %c0 = arith.constant 0 : index
    %c0_0 = arith.constant 0 : index
    %0 = vector.load %arg0[%c0, %c0_0] : memref<8x32xf32, #tpu.memory_space<vmem>>, vector<8x32xf32>
    %1 = arith.truncf %0 : vector<8x32xf32> to vector<8x32xbf16>
    %c0_1 = arith.constant 0 : index
    %c0_2 = arith.constant 0 : index
    %2 = vector.load %arg1[%c0_1, %c0_2] : memref<32x1024xbf16, #tpu.memory_space<vmem>>, vector<32x1024xbf16>
    %cst = arith.constant dense<0.000000e+00> : vector<8x1024xf32>
    %3 = tpu.matmul %1, %2, %cst {dimension_numbers = #tpu.dot_dimension_numbers<[1], [0], [0], [1], [0, 0, 1, 1], [], []>} : vector<8x32xbf16>, vector<32x1024xbf16>, vector<8x1024xf32> -> vector<8x1024xf32>
    %c0_3 = arith.constant 0 : index
    %c0_4 = arith.constant 0 : index
    %4 = vector.load %arg7[%c0_3, %c0_4] : memref<8x1024xf32, #tpu.memory_space<vmem>>, vector<8x1024xf32>
    tpu.vector_store %arg7[%c0_3, %c0_4], %3 {strides = array<i32>} : memref<8x1024xf32, #tpu.memory_space<vmem>>, vector<8x1024xf32>,
    %c0_5 = arith.constant 0 : index
    %c0_6 = arith.constant 0 : index
    %5 = vector.load %arg7[%c0_5, %c0_6] : memref<8x1024xf32, #tpu.memory_space<vmem>>, vector<1x1024xf32>
    %6 = vector.extract_strided_slice %5 {offsets = [0, 0], sizes = [1, 768], strides = [1, 1]} : vector<1x1024xf32> to vector<1x768xf32>
    %cst_7 = arith.constant 5.000000e-01 : f32
    %7 = vector.broadcast %cst_7 : f32 to vector<1x768xf32>
    %8 = arith.mulf %7, %6 : vector<1x768xf32>
    %9 = math.tanh %8 : vector<1x768xf32>
    %cst_8 = arith.constant 1.000000e+00 : f32
    %10 = vector.broadcast %cst_8 : f32 to vector<1x768xf32>
    %11 = arith.addf %9, %10 : vector<1x768xf32>
    %cst_9 = arith.constant 5.000000e-01 : f32
    %12 = vector.broadcast %cst_9 : f32 to vector<1x768xf32>
    %13 = arith.mulf %12, %11 : vector<1x768xf32>
    %14 = vector.extract_strided_slice %5 {offsets = [0, 768], sizes = [1, 256], strides = [1, 1]} : vector<1x1024xf32> to vector<1x256xf32>
    %15 = math.tanh %14 : vector<1x256xf32>
    %16 = vector.extract_strided_slice %13 {offsets = [0, 0], sizes = [1, 256], strides = [1, 1]} : vector<1x768xf32> to vector<1x256xf32>
    %17 = arith.mulf %16, %15 : vector<1x256xf32>
    %18 = vector.extract_strided_slice %13 {offsets = [0, 512], sizes = [1, 256], strides = [1, 1]} : vector<1x768xf32> to vector<1x256xf32>
    %19 = math.tanh %17 : vector<1x256xf32>
    %20 = arith.mulf %18, %19 : vector<1x256xf32>
    %c1 = arith.constant 1 : index
    %c0_10 = arith.constant 0 : index
    %21 = vector.load %arg7[%c1, %c0_10] : memref<8x1024xf32, #tpu.memory_space<vmem>>, vector<1x1024xf32>
    %22 = arith.truncf %20 : vector<1x256xf32> to vector<1x256xbf16>
    %c0_11 = arith.constant 0 : index
    %c0_12 = arith.constant 0 : index
    %23 = vector.load %arg4[%c0_11, %c0_12] : memref<256x1664xbf16, #tpu.memory_space<vmem>>, vector<256x1024xbf16>
    %cst_13 = arith.constant dense<0.000000e+00> : vector<1x1024xf32>
    %24 = tpu.matmul %22, %23, %cst_13 {dimension_numbers = #tpu.dot_dimension_numbers<[1], [0], [0], [1], [0, 0, 1, 1], [], []>} : vector<1x256xbf16>, vector<256x1024xbf16>, vector<1x1024xf32> -> vector<1x1024xf32>
    %25 = arith.addf %21, %24 : vector<1x1024xf32>
    %26 = vector.extract_strided_slice %25 {offsets = [0, 0], sizes = [1, 768], strides = [1, 1]} : vector<1x1024xf32> to vector<1x768xf32>
    %cst_14 = arith.constant 5.000000e-01 : f32
    %27 = vector.broadcast %cst_14 : f32 to vector<1x768xf32>
    %28 = arith.mulf %27, %26 : vector<1x768xf32>
    %29 = math.tanh %28 : vector<1x768xf32>
    %cst_15 = arith.constant 1.000000e+00 : f32
    %30 = vector.broadcast %cst_15 : f32 to vector<1x768xf32>
    %31 = arith.addf %29, %30 : vector<1x768xf32>
    %cst_16 = arith.constant 5.000000e-01 : f32
    %32 = vector.broadcast %cst_16 : f32 to vector<1x768xf32>
    %33 = arith.mulf %32, %31 : vector<1x768xf32>
    %34 = vector.extract_strided_slice %25 {offsets = [0, 768], sizes = [1, 256], strides = [1, 1]} : vector<1x1024xf32> to vector<1x256xf32>
    %35 = math.tanh %34 : vector<1x256xf32>
    %36 = vector.extract_strided_slice %33 {offsets = [0, 0], sizes = [1, 256], strides = [1, 1]} : vector<1x768xf32> to vector<1x256xf32>
    %37 = vector.extract_strided_slice %33 {offsets = [0, 256], sizes = [1, 256], strides = [1, 1]} : vector<1x768xf32> to vector<1x256xf32>
    %38 = vector.extract_strided_slice %33 {offsets = [0, 512], sizes = [1, 256], strides = [1, 1]} : vector<1x768xf32> to vector<1x256xf32>
    %39 = arith.mulf %37, %17 : vector<1x256xf32>
    %40 = arith.mulf %36, %35 : vector<1x256xf32>
    %41 = arith.addf %39, %40 : vector<1x256xf32>
    %42 = math.tanh %41 : vector<1x256xf32>
    %43 = arith.mulf %38, %42 : vector<1x256xf32>
    %c2 = arith.constant 2 : index
    %c0_17 = arith.constant 0 : index
    %44 = vector.load %arg7[%c2, %c0_17] : memref<8x1024xf32, #tpu.memory_space<vmem>>, vector<1x1024xf32>
    %45 = arith.truncf %43 : vector<1x256xf32> to vector<1x256xbf16>
    %c0_18 = arith.constant 0 : index
    %c0_19 = arith.constant 0 : index
    %46 = vector.load %arg4[%c0_18, %c0_19] : memref<256x1664xbf16, #tpu.memory_space<vmem>>, vector<256x1024xbf16>
    %cst_20 = arith.constant dense<0.000000e+00> : vector<1x1024xf32>
    %47 = tpu.matmul %45, %46, %cst_20 {dimension_numbers = #tpu.dot_dimension_numbers<[1], [0], [0], [1], [0, 0, 1, 1], [], []>} : vector<1x256xbf16>, vector<256x1024xbf16>, vector<1x1024xf32> -> vector<1x1024xf32>
    %48 = arith.addf %44, %47 : vector<1x1024xf32>
    %49 = vector.extract_strided_slice %48 {offsets = [0, 0], sizes = [1, 768], strides = [1, 1]} : vector<1x1024xf32> to vector<1x768xf32>
    %cst_21 = arith.constant 5.000000e-01 : f32
    %50 = vector.broadcast %cst_21 : f32 to vector<1x768xf32>
    %51 = arith.mulf %50, %49 : vector<1x768xf32>
    %52 = math.tanh %51 : vector<1x768xf32>
    %cst_22 = arith.constant 1.000000e+00 : f32
    %53 = vector.broadcast %cst_22 : f32 to vector<1x768xf32>
    %54 = arith.addf %52, %53 : vector<1x768xf32>
    %cst_23 = arith.constant 5.000000e-01 : f32
    %55 = vector.broadcast %cst_23 : f32 to vector<1x768xf32>
    %56 = arith.mulf %55, %54 : vector<1x768xf32>
    %57 = vector.extract_strided_slice %48 {offsets = [0, 768], sizes = [1, 256], strides = [1, 1]} : vector<1x1024xf32> to vector<1x256xf32>
    %58 = math.tanh %57 : vector<1x256xf32>
    %59 = vector.extract_strided_slice %56 {offsets = [0, 0], sizes = [1, 256], strides = [1, 1]} : vector<1x768xf32> to vector<1x256xf32>
    %60 = vector.extract_strided_slice %56 {offsets = [0, 256], sizes = [1, 256], strides = [1, 1]} : vector<1x768xf32> to vector<1x256xf32>
    %61 = vector.extract_strided_slice %56 {offsets = [0, 512], sizes = [1, 256], strides = [1, 1]} : vector<1x768xf32> to vector<1x256xf32>
    %62 = arith.mulf %60, %41 : vector<1x256xf32>
    %63 = arith.mulf %59, %58 : vector<1x256xf32>
    %64 = arith.addf %62, %63 : vector<1x256xf32>
    %65 = math.tanh %64 : vector<1x256xf32>
    %66 = arith.mulf %61, %65 : vector<1x256xf32>
    %c3 = arith.constant 3 : index
    %c0_24 = arith.constant 0 : index
    %67 = vector.load %arg7[%c3, %c0_24] : memref<8x1024xf32, #tpu.memory_space<vmem>>, vector<1x1024xf32>
    %68 = arith.truncf %66 : vector<1x256xf32> to vector<1x256xbf16>
    %c0_25 = arith.constant 0 : index
    %c0_26 = arith.constant 0 : index
    %69 = vector.load %arg4[%c0_25, %c0_26] : memref<256x1664xbf16, #tpu.memory_space<vmem>>, vector<256x1024xbf16>
    %cst_27 = arith.constant dense<0.000000e+00> : vector<1x1024xf32>
    %70 = tpu.matmul %68, %69, %cst_27 {dimension_numbers = #tpu.dot_dimension_numbers<[1], [0], [0], [1], [0, 0, 1, 1], [], []>} : vector<1x256xbf16>, vector<256x1024xbf16>, vector<1x1024xf32> -> vector<1x1024xf32>
    %71 = arith.addf %67, %70 : vector<1x1024xf32>
    %72 = vector.extract_strided_slice %71 {offsets = [0, 0], sizes = [1, 768], strides = [1, 1]} : vector<1x1024xf32> to vector<1x768xf32>
    %cst_28 = arith.constant 5.000000e-01 : f32
    %73 = vector.broadcast %cst_28 : f32 to vector<1x768xf32>
    %74 = arith.mulf %73, %72 : vector<1x768xf32>
    %75 = math.tanh %74 : vector<1x768xf32>
    %cst_29 = arith.constant 1.000000e+00 : f32
    %76 = vector.broadcast %cst_29 : f32 to vector<1x768xf32>
    %77 = arith.addf %75, %76 : vector<1x768xf32>
    %cst_30 = arith.constant 5.000000e-01 : f32
    %78 = vector.broadcast %cst_30 : f32 to vector<1x768xf32>
    %79 = arith.mulf %78, %77 : vector<1x768xf32>
    %80 = vector.extract_strided_slice %71 {offsets = [0, 768], sizes = [1, 256], strides = [1, 1]} : vector<1x1024xf32> to vector<1x256xf32>
    %81 = math.tanh %80 : vector<1x256xf32>
    %82 = vector.extract_strided_slice %79 {offsets = [0, 0], sizes = [1, 256], strides = [1, 1]} : vector<1x768xf32> to vector<1x256xf32>
    %83 = vector.extract_strided_slice %79 {offsets = [0, 256], sizes = [1, 256], strides = [1, 1]} : vector<1x768xf32> to vector<1x256xf32>
    %84 = vector.extract_strided_slice %79 {offsets = [0, 512], sizes = [1, 256], strides = [1, 1]} : vector<1x768xf32> to vector<1x256xf32>
    %85 = arith.mulf %83, %64 : vector<1x256xf32>
    %86 = arith.mulf %82, %81 : vector<1x256xf32>
    %87 = arith.addf %85, %86 : vector<1x256xf32>
    %88 = math.tanh %87 : vector<1x256xf32>
    %89 = arith.mulf %84, %88 : vector<1x256xf32>
    %c4 = arith.constant 4 : index
    %c0_31 = arith.constant 0 : index
    %90 = vector.load %arg7[%c4, %c0_31] : memref<8x1024xf32, #tpu.memory_space<vmem>>, vector<1x1024xf32>
    %91 = arith.truncf %89 : vector<1x256xf32> to vector<1x256xbf16>
    %c0_32 = arith.constant 0 : index
    %c0_33 = arith.constant 0 : index
    %92 = vector.load %arg4[%c0_32, %c0_33] : memref<256x1664xbf16, #tpu.memory_space<vmem>>, vector<256x1024xbf16>
    %cst_34 = arith.constant dense<0.000000e+00> : vector<1x1024xf32>
    %93 = tpu.matmul %91, %92, %cst_34 {dimension_numbers = #tpu.dot_dimension_numbers<[1], [0], [0], [1], [0, 0, 1, 1], [], []>} : vector<1x256xbf16>, vector<256x1024xbf16>, vector<1x1024xf32> -> vector<1x1024xf32>
    %94 = arith.addf %90, %93 : vector<1x1024xf32>
    %95 = vector.extract_strided_slice %94 {offsets = [0, 0], sizes = [1, 768], strides = [1, 1]} : vector<1x1024xf32> to vector<1x768xf32>
    %cst_35 = arith.constant 5.000000e-01 : f32
    %96 = vector.broadcast %cst_35 : f32 to vector<1x768xf32>
    %97 = arith.mulf %96, %95 : vector<1x768xf32>
    %98 = math.tanh %97 : vector<1x768xf32>
    %cst_36 = arith.constant 1.000000e+00 : f32
    %99 = vector.broadcast %cst_36 : f32 to vector<1x768xf32>
    %100 = arith.addf %98, %99 : vector<1x768xf32>
    %cst_37 = arith.constant 5.000000e-01 : f32
    %101 = vector.broadcast %cst_37 : f32 to vector<1x768xf32>
    %102 = arith.mulf %101, %100 : vector<1x768xf32>
    %103 = vector.extract_strided_slice %94 {offsets = [0, 768], sizes = [1, 256], strides = [1, 1]} : vector<1x1024xf32> to vector<1x256xf32>
    %104 = math.tanh %103 : vector<1x256xf32>
    %105 = vector.extract_strided_slice %102 {offsets = [0, 0], sizes = [1, 256], strides = [1, 1]} : vector<1x768xf32> to vector<1x256xf32>
    %106 = vector.extract_strided_slice %102 {offsets = [0, 256], sizes = [1, 256], strides = [1, 1]} : vector<1x768xf32> to vector<1x256xf32>
    %107 = vector.extract_strided_slice %102 {offsets = [0, 512], sizes = [1, 256], strides = [1, 1]} : vector<1x768xf32> to vector<1x256xf32>
    %108 = arith.mulf %106, %87 : vector<1x256xf32>
    %109 = arith.mulf %105, %104 : vector<1x256xf32>
    %110 = arith.addf %108, %109 : vector<1x256xf32>
    %111 = math.tanh %110 : vector<1x256xf32>
    %112 = arith.mulf %107, %111 : vector<1x256xf32>
    %c5 = arith.constant 5 : index
    %c0_38 = arith.constant 0 : index
    %113 = vector.load %arg7[%c5, %c0_38] : memref<8x1024xf32, #tpu.memory_space<vmem>>, vector<1x1024xf32>
    %114 = arith.truncf %112 : vector<1x256xf32> to vector<1x256xbf16>
    %c0_39 = arith.constant 0 : index
    %c0_40 = arith.constant 0 : index
    %115 = vector.load %arg4[%c0_39, %c0_40] : memref<256x1664xbf16, #tpu.memory_space<vmem>>, vector<256x1024xbf16>
    %cst_41 = arith.constant dense<0.000000e+00> : vector<1x1024xf32>
    %116 = tpu.matmul %114, %115, %cst_41 {dimension_numbers = #tpu.dot_dimension_numbers<[1], [0], [0], [1], [0, 0, 1, 1], [], []>} : vector<1x256xbf16>, vector<256x1024xbf16>, vector<1x1024xf32> -> vector<1x1024xf32>
    %117 = arith.addf %113, %116 : vector<1x1024xf32>
    %118 = vector.extract_strided_slice %117 {offsets = [0, 0], sizes = [1, 768], strides = [1, 1]} : vector<1x1024xf32> to vector<1x768xf32>
    %cst_42 = arith.constant 5.000000e-01 : f32
    %119 = vector.broadcast %cst_42 : f32 to vector<1x768xf32>
    %120 = arith.mulf %119, %118 : vector<1x768xf32>
    %121 = math.tanh %120 : vector<1x768xf32>
    %cst_43 = arith.constant 1.000000e+00 : f32
    %122 = vector.broadcast %cst_43 : f32 to vector<1x768xf32>
    %123 = arith.addf %121, %122 : vector<1x768xf32>
    %cst_44 = arith.constant 5.000000e-01 : f32
    %124 = vector.broadcast %cst_44 : f32 to vector<1x768xf32>
    %125 = arith.mulf %124, %123 : vector<1x768xf32>
    %126 = vector.extract_strided_slice %117 {offsets = [0, 768], sizes = [1, 256], strides = [1, 1]} : vector<1x1024xf32> to vector<1x256xf32>
    %127 = math.tanh %126 : vector<1x256xf32>
    %128 = vector.extract_strided_slice %125 {offsets = [0, 0], sizes = [1, 256], strides = [1, 1]} : vector<1x768xf32> to vector<1x256xf32>
    %129 = vector.extract_strided_slice %125 {offsets = [0, 256], sizes = [1, 256], strides = [1, 1]} : vector<1x768xf32> to vector<1x256xf32>
    %130 = vector.extract_strided_slice %125 {offsets = [0, 512], sizes = [1, 256], strides = [1, 1]} : vector<1x768xf32> to vector<1x256xf32>
    %131 = arith.mulf %129, %110 : vector<1x256xf32>
    %132 = arith.mulf %128, %127 : vector<1x256xf32>
    %133 = arith.addf %131, %132 : vector<1x256xf32>
    %134 = math.tanh %133 : vector<1x256xf32>
    %135 = arith.mulf %130, %134 : vector<1x256xf32>
    %c6 = arith.constant 6 : index
    %c0_45 = arith.constant 0 : index
    %136 = vector.load %arg7[%c6, %c0_45] : memref<8x1024xf32, #tpu.memory_space<vmem>>, vector<1x1024xf32>
    %137 = arith.truncf %135 : vector<1x256xf32> to vector<1x256xbf16>
    %c0_46 = arith.constant 0 : index
    %c0_47 = arith.constant 0 : index
    %138 = vector.load %arg4[%c0_46, %c0_47] : memref<256x1664xbf16, #tpu.memory_space<vmem>>, vector<256x1024xbf16>
    %cst_48 = arith.constant dense<0.000000e+00> : vector<1x1024xf32>
    %139 = tpu.matmul %137, %138, %cst_48 {dimension_numbers = #tpu.dot_dimension_numbers<[1], [0], [0], [1], [0, 0, 1, 1], [], []>} : vector<1x256xbf16>, vector<256x1024xbf16>, vector<1x1024xf32> -> vector<1x1024xf32>
    %140 = arith.addf %136, %139 : vector<1x1024xf32>
    %141 = vector.extract_strided_slice %140 {offsets = [0, 0], sizes = [1, 768], strides = [1, 1]} : vector<1x1024xf32> to vector<1x768xf32>
    %cst_49 = arith.constant 5.000000e-01 : f32
    %142 = vector.broadcast %cst_49 : f32 to vector<1x768xf32>
    %143 = arith.mulf %142, %141 : vector<1x768xf32>
    %144 = math.tanh %143 : vector<1x768xf32>
    %cst_50 = arith.constant 1.000000e+00 : f32
    %145 = vector.broadcast %cst_50 : f32 to vector<1x768xf32>
    %146 = arith.addf %144, %145 : vector<1x768xf32>
    %cst_51 = arith.constant 5.000000e-01 : f32
    %147 = vector.broadcast %cst_51 : f32 to vector<1x768xf32>
    %148 = arith.mulf %147, %146 : vector<1x768xf32>
    %149 = vector.extract_strided_slice %140 {offsets = [0, 768], sizes = [1, 256], strides = [1, 1]} : vector<1x1024xf32> to vector<1x256xf32>
    %150 = math.tanh %149 : vector<1x256xf32>
    %151 = vector.extract_strided_slice %148 {offsets = [0, 0], sizes = [1, 256], strides = [1, 1]} : vector<1x768xf32> to vector<1x256xf32>
    %152 = vector.extract_strided_slice %148 {offsets = [0, 256], sizes = [1, 256], strides = [1, 1]} : vector<1x768xf32> to vector<1x256xf32>
    %153 = vector.extract_strided_slice %148 {offsets = [0, 512], sizes = [1, 256], strides = [1, 1]} : vector<1x768xf32> to vector<1x256xf32>
    %154 = arith.mulf %152, %133 : vector<1x256xf32>
    %155 = arith.mulf %151, %150 : vector<1x256xf32>
    %156 = arith.addf %154, %155 : vector<1x256xf32>
    %157 = math.tanh %156 : vector<1x256xf32>
    %158 = arith.mulf %153, %157 : vector<1x256xf32>
    %c7 = arith.constant 7 : index
    %c0_52 = arith.constant 0 : index
    %159 = vector.load %arg7[%c7, %c0_52] : memref<8x1024xf32, #tpu.memory_space<vmem>>, vector<1x1024xf32>
    %160 = arith.truncf %158 : vector<1x256xf32> to vector<1x256xbf16>
    %c0_53 = arith.constant 0 : index
    %c0_54 = arith.constant 0 : index
    %161 = vector.load %arg4[%c0_53, %c0_54] : memref<256x1664xbf16, #tpu.memory_space<vmem>>, vector<256x1024xbf16>
    %cst_55 = arith.constant dense<0.000000e+00> : vector<1x1024xf32>
    %162 = tpu.matmul %160, %161, %cst_55 {dimension_numbers = #tpu.dot_dimension_numbers<[1], [0], [0], [1], [0, 0, 1, 1], [], []>} : vector<1x256xbf16>, vector<256x1024xbf16>, vector<1x1024xf32> -> vector<1x1024xf32>
    %163 = arith.addf %159, %162 : vector<1x1024xf32>
    %164 = vector.extract_strided_slice %163 {offsets = [0, 0], sizes = [1, 768], strides = [1, 1]} : vector<1x1024xf32> to vector<1x768xf32>
    %cst_56 = arith.constant 5.000000e-01 : f32
    %165 = vector.broadcast %cst_56 : f32 to vector<1x768xf32>
    %166 = arith.mulf %165, %164 : vector<1x768xf32>
    %167 = math.tanh %166 : vector<1x768xf32>
    %cst_57 = arith.constant 1.000000e+00 : f32
    %168 = vector.broadcast %cst_57 : f32 to vector<1x768xf32>
    %169 = arith.addf %167, %168 : vector<1x768xf32>
    %cst_58 = arith.constant 5.000000e-01 : f32
    %170 = vector.broadcast %cst_58 : f32 to vector<1x768xf32>
    %171 = arith.mulf %170, %169 : vector<1x768xf32>
    %172 = vector.extract_strided_slice %163 {offsets = [0, 768], sizes = [1, 256], strides = [1, 1]} : vector<1x1024xf32> to vector<1x256xf32>
    %173 = math.tanh %172 : vector<1x256xf32>
    %174 = vector.extract_strided_slice %171 {offsets = [0, 0], sizes = [1, 256], strides = [1, 1]} : vector<1x768xf32> to vector<1x256xf32>
    %175 = vector.extract_strided_slice %171 {offsets = [0, 256], sizes = [1, 256], strides = [1, 1]} : vector<1x768xf32> to vector<1x256xf32>
    %176 = vector.extract_strided_slice %171 {offsets = [0, 512], sizes = [1, 256], strides = [1, 1]} : vector<1x768xf32> to vector<1x256xf32>
    %177 = arith.mulf %175, %156 : vector<1x256xf32>
    %178 = arith.mulf %174, %173 : vector<1x256xf32>
    %179 = arith.addf %177, %178 : vector<1x256xf32>
    %180 = math.tanh %179 : vector<1x256xf32>
    %181 = arith.mulf %176, %180 : vector<1x256xf32>
    %c0_59 = arith.constant 0 : index
    %c0_60 = arith.constant 0 : index
    %182 = vector.load %arg5[%c0_59, %c0_60] : memref<1x640xf32, #tpu.memory_space<vmem>>, vector<1x256xf32>
    %c0_61 = arith.constant 0 : index
    %c0_62 = arith.constant 0 : index
    %183 = vector.load %arg2[%c0_61, %c0_62] : memref<8x64xf32, #tpu.memory_space<vmem>>, vector<8x64xf32>
    %184 = arith.truncf %183 : vector<8x64xf32> to vector<8x64xbf16>
    %c0_63 = arith.constant 0 : index
    %c0_64 = arith.constant 0 : index
    %185 = vector.load %arg3[%c0_63, %c0_64] : memref<64x256xbf16, #tpu.memory_space<vmem>>, vector<64x256xbf16>
    %cst_65 = arith.constant dense<0.000000e+00> : vector<8x256xf32>
    %186 = tpu.matmul %184, %185, %cst_65 {dimension_numbers = #tpu.dot_dimension_numbers<[1], [0], [0], [1], [0, 0, 1, 1], [], []>} : vector<8x64xbf16>, vector<64x256xbf16>, vector<8x256xf32> -> vector<8x256xf32>
    %187 = vector.broadcast %182 : vector<1x256xf32> to vector<8x256xf32>
    %188 = arith.addf %186, %187 : vector<8x256xf32>
    %cst_66 = arith.constant 0.000000e+00 : f32
    %189 = vector.broadcast %cst_66 : f32 to vector<8x256xf32>
    %190 = arith.maximumf %188, %189 : vector<8x256xf32>
    %c0_67 = arith.constant 0 : index
    %c256 = arith.constant 256 : index
    %191 = vector.load %arg5[%c0_67, %c256] : memref<1x640xf32, #tpu.memory_space<vmem>>, vector<1x256xf32>
    %192 = arith.truncf %181 : vector<1x256xf32> to vector<1x256xbf16>
    %c0_68 = arith.constant 0 : index
    %c1280 = arith.constant 1280 : index
    %193 = vector.load %arg4[%c0_68, %c1280] : memref<256x1664xbf16, #tpu.memory_space<vmem>>, vector<256x256xbf16>
    %cst_69 = arith.constant dense<0.000000e+00> : vector<1x256xf32>
    %194 = tpu.matmul %192, %193, %cst_69 {dimension_numbers = #tpu.dot_dimension_numbers<[1], [0], [0], [1], [0, 0, 1, 1], [], []>} : vector<1x256xbf16>, vector<256x256xbf16>, vector<1x256xf32> -> vector<1x256xf32>
    %195 = arith.truncf %190 : vector<8x256xf32> to vector<8x256xbf16>
    %c0_70 = arith.constant 0 : index
    %c1024 = arith.constant 1024 : index
    %196 = vector.load %arg4[%c0_70, %c1024] : memref<256x1664xbf16, #tpu.memory_space<vmem>>, vector<256x256xbf16>
    %cst_71 = arith.constant dense<0.000000e+00> : vector<8x256xf32>
    %197 = tpu.matmul %195, %196, %cst_71 {dimension_numbers = #tpu.dot_dimension_numbers<[1], [0], [0], [1], [0, 0, 1, 1], [], []>} : vector<8x256xbf16>, vector<256x256xbf16>, vector<8x256xf32> -> vector<8x256xf32>
    %198 = vector.broadcast %194 : vector<1x256xf32> to vector<8x256xf32>
    %199 = arith.addf %197, %198 : vector<8x256xf32>
    %200 = vector.broadcast %191 : vector<1x256xf32> to vector<8x256xf32>
    %201 = arith.addf %199, %200 : vector<8x256xf32>
    %cst_72 = arith.constant 0.000000e+00 : f32
    %202 = vector.broadcast %cst_72 : f32 to vector<8x256xf32>
    %203 = arith.maximumf %201, %202 : vector<8x256xf32>
    %c0_73 = arith.constant 0 : index
    %c512 = arith.constant 512 : index
    %204 = vector.load %arg5[%c0_73, %c512] : memref<1x640xf32, #tpu.memory_space<vmem>>, vector<1x128xf32>
    %205 = arith.truncf %203 : vector<8x256xf32> to vector<8x256xbf16>
    %c0_74 = arith.constant 0 : index
    %c1536 = arith.constant 1536 : index
    %206 = vector.load %arg4[%c0_74, %c1536] : memref<256x1664xbf16, #tpu.memory_space<vmem>>, vector<256x128xbf16>
    %cst_75 = arith.constant dense<0.000000e+00> : vector<8x128xf32>
    %207 = tpu.matmul %205, %206, %cst_75 {dimension_numbers = #tpu.dot_dimension_numbers<[1], [0], [0], [1], [0, 0, 1, 1], [], []>} : vector<8x256xbf16>, vector<256x128xbf16>, vector<8x128xf32> -> vector<8x128xf32>
    %208 = vector.broadcast %204 : vector<1x128xf32> to vector<8x128xf32>
    %209 = arith.addf %207, %208 : vector<8x128xf32>
    %cst_76 = arith.constant 5.000000e-01 : f32
    %210 = vector.broadcast %cst_76 : f32 to vector<8x128xf32>
    %211 = arith.mulf %210, %209 : vector<8x128xf32>
    %212 = math.tanh %211 : vector<8x128xf32>
    %cst_77 = arith.constant 1.000000e+00 : f32
    %213 = vector.broadcast %cst_77 : f32 to vector<8x128xf32>
    %214 = arith.addf %212, %213 : vector<8x128xf32>
    %cst_78 = arith.constant 5.000000e-01 : f32
    %215 = vector.broadcast %cst_78 : f32 to vector<8x128xf32>
    %216 = arith.mulf %215, %214 : vector<8x128xf32>
    %c0_79 = arith.constant 0 : index
    %c0_80 = arith.constant 0 : index
    %217 = vector.load %arg6[%c0_79, %c0_80] : memref<8x128xf32, #tpu.memory_space<vmem>>, vector<8x128xf32>
    tpu.vector_store %arg6[%c0_79, %c0_80], %216 {strides = array<i32>} : memref<8x128xf32, #tpu.memory_space<vmem>>, vector<8x128xf32>,
    return
  }
}

</mosaic_0001>

<bundles_post_ra>
// kernel: tpu_custom_call.1
= control target key start
LH: loop header
LB: loop body
LE: loop exit
PB: predicated region body
PF: predicated region fallthrough
CT: control target
= control target key end

     0   :  { %11 = vsyncpa [#allocation4], 0  ;;  %s6313_s0 = inlined_call_operand.hbm [shape: f32[8,32], index: 0, kind: input, shape index: {}]   ;;  %s6314_s1 = inlined_call_operand.hbm [shape: bf16[32,1024], index: 1, kind: input, shape index: {}]   ;;  %s6315_s2 = inlined_call_operand.hbm [shape: f32[8,64], index: 2, kind: input, shape index: {}]   ;;  %s6316_s3 = inlined_call_operand.hbm [shape: bf16[64,256], index: 3, kind: input, shape index: {}]   ;;  %s6317_s4 = inlined_call_operand.hbm [shape: bf16[256,1664], index: 4, kind: input, shape index: {}]   ;;  %s6318_s5 = inlined_call_operand.vmem [shape: f32[1,640], index: 5, kind: input, shape index: {}]   ;;  %s6319_s6 = inlined_call_operand.hbm [shape: f32[8,128], index: 6, kind: output, shape index: {}]  }
   0x1   :  { %12 = vsyncpa [#allocation7], 0 }
   0x2   :  { %13 = vsyncpa [#allocation10], 0 }
   0x3   :  { %14 = vsyncpa [#allocation5], 0  ;;  %s4791_s21 = smov [#allocation6]  }
   0x4   :  { %s30_s22 = sshll.u32 %s4791_s21, 4  ;;  %s31_s22 = int_to_ptr.vmem [resolvable:$true] %s30_s22 }
   0x5   :  { %s4671_s23 = scalar_lea.vmem %s31_s22, 2048  ;;  %p4676_p1 = scmp.lt.s32.totalorder %s31_s22, %s31_s22 }
   0x6   :  { %p4672_p0 = scmp.ne.s32.totalorder %s31_s22, %s4671_s23  ;;  %p4677_p2 = scmp.lt.s32.totalorder %s4671_s23, %s4671_s23 }
   0x8   :  { %p4678_p3 = por %p4677_p2, %p4676_p1 }
   0xa   :  { %p4679_p4 = pnand %p4678_p3, %p4672_p0 }
   0xc   :  { %4682 = shalt.err (!%p4679_p4)
}
   0xd   :  { %s4792_s24 = smov 512   ;;  %s4793_s25 = smov 32  }
   0xe   :  { %36 = dma.hbm_to_vmem [thread:$0]  %s6314_s1, 2048, %s31_s22, [#allocation7], %s4792_s24, %s4792_s24, %s4793_s25  }
   0xf   :  { %s4794_s28 = smov [#allocation9]  }
  0x10   :  { %s52_s29 = sshll.u32 %s4794_s28, 4  ;;  %s53_s29 = int_to_ptr.vmem [resolvable:$true] %s52_s29 }
  0x11   :  { %s4691_s30 = scalar_lea.vmem %s53_s29, 1024  ;;  %p4696_p6 = scmp.lt.s32.totalorder %s53_s29, %s53_s29 }
  0x12   :  { %p4692_p5 = scmp.ne.s32.totalorder %s53_s29, %s4691_s30  ;;  %p4697_p7 = scmp.lt.s32.totalorder %s4691_s30, %s4691_s30 }
  0x14   :  { %p4698_p8 = por %p4697_p7, %p4696_p6 }
  0x16   :  { %p4699_p9 = pnand %p4698_p8, %p4692_p5 }
  0x18   :  { %4702 = shalt.err (!%p4699_p9)
}
  0x19   :  { %s4795_s7 = smov 128   ;;  %s4796_s8 = smov 8  }
  0x1a   :  { %58 = dma.hbm_to_vmem [thread:$0]  %s6316_s3, 1024, %s53_s29, [#allocation10], %s4795_s7, %s4795_s7, %s4796_s8  }
  0x1b   :  { %s4797_s11 = smov [#allocation3]   ;;  %s4798_s13 = smov [#allocation8]  }
  0x1c   :  { %s21_s12 = sshll.u32 %s4797_s11, 4  ;;  %s43_s1 = sshll.u32 %s4798_s13, 4  ;;  %s22_s12 = int_to_ptr.vmem [resolvable:$true] %s21_s12  ;;  %s44_s1 = int_to_ptr.vmem [resolvable:$true] %s43_s1 }
  0x1d   :  { %s4711_s14 = scalar_lea.vmem %s22_s12, 128  ;;  %p4716_p11 = scmp.lt.s32.totalorder %s22_s12, %s22_s12 }
  0x1e   :  { %p4712_p10 = scmp.ne.s32.totalorder %s22_s12, %s4711_s14  ;;  %p4717_p12 = scmp.lt.s32.totalorder %s4711_s14, %s4711_s14 }
  0x20   :  { %p4718_p13 = por %p4717_p12, %p4716_p11 }
  0x22   :  { %p4719_p0 = pnand %p4718_p13, %p4712_p10 }
  0x24   :  { %4722 = shalt.err (!%p4719_p0)
}
  0x25   :  { %24 = dma.hbm_to_vmem [thread:$0]  %s6313_s0, 128, %s22_s12, [#allocation4]  }
  0x26   :  { %s4731_s17 = scalar_lea.vmem %s44_s1, 128  ;;  %p4736_p2 = scmp.lt.s32.totalorder %s44_s1, %s44_s1 }
  0x27   :  { %p4732_p1 = scmp.ne.s32.totalorder %s44_s1, %s4731_s17  ;;  %p4737_p3 = scmp.lt.s32.totalorder %s4731_s17, %s4731_s17 }
  0x29   :  { %p4738_p4 = por %p4737_p3, %p4736_p2 }
  0x2b   :  { %p4739_p5 = pnand %p4738_p4, %p4732_p1 }
  0x2d   :  { %4742 = shalt.err (!%p4739_p5)
}
  0x2e   :  { %46 = dma.hbm_to_vmem [thread:$0]  %s6315_s2, 128, %s44_s1, [#allocation7]  }
  0x2f   :  { %s4799_s19 = smov [#allocation11]  }
  0x30   :  { %s64_s20 = sshll.u32 %s4799_s19, 4  ;;  %s65_s20 = int_to_ptr.vmem [resolvable:$true] %s64_s20 }
  0x31   :  { %s4751_s21 = scalar_lea.vmem %s65_s20, 26624  ;;  %p4756_p7 = scmp.lt.s32.totalorder %s65_s20, %s65_s20 }
  0x32   :  { %p4752_p6 = scmp.ne.s32.totalorder %s65_s20, %s4751_s21  ;;  %p4757_p8 = scmp.lt.s32.totalorder %s4751_s21, %s4751_s21 }
  0x34   :  { %p4758_p9 = por %p4757_p8, %p4756_p7 }
  0x36   :  { %p4759_p10 = pnand %p4758_p9, %p4752_p6 }
  0x38   :  { %4762 = shalt.err (!%p4759_p10)
}
  0x39   :  { %s4800_s0 = smov 832   ;;  %s4801_s22 = smov 52  }
  0x3a   :  { %70 = dma.hbm_to_vmem [thread:$0]  %s6317_s4, 26624, %s65_s20, [#allocation10], %s4800_s0, %s4800_s0, %s4801_s22  }
  0x3b   :  { %4783 = dma.done.wait [#allocation4], 128  }
  0x3c   :  { %4784 = vsyncadd [#allocation4], 4294967168 }
  0x3d   :  { %4785 = dma.done.wait [#allocation7], 2176  }
  0x3e   :  { %4786 = vsyncadd [#allocation7], 4294965120 }
  0x3f   :  { %4787 = dma.done.wait [#allocation10], 27648  }
  0x40   :  { %4788 = vsyncadd [#allocation10], 4294939648  ;;  %v6320_v0 = vmov 0   ;;  %v99_v1 = vld [vmem:[#allocation6 + $0x40] sm:$0xff]  ;;  %v100_v7 = vld [vmem:[#allocation6 + $0x48] sm:$0xff]  ;;  %vm187_vm0 = vcmask 261120  }
  0x41   :  { %223 = vmatprep.mubr.bf16.mxu0 %v6320_v0  ;;  %346 = vmatprep.mubr.bf16.mxu1 %v6320_v0  ;;  %v103_v2 = vld [vmem:[#allocation6 + $0x60] sm:$0xff]  ;;  %v104_v9 = vld [vmem:[#allocation6 + $0x68] sm:$0xff]  ;;  %v102_v10 = vld [vmem:[#allocation6 + $0x58] sm:$0xff]  ;;  %vm3016_vm1 = vcmask 523264   ;;  %s4804_s29 = smov [#allocation12]  }
  0x42   :  { %v91_v3 = vld [vmem:[#allocation6] sm:$0xff]  ;;  %v3776_v4 = vcombine.high %v99_v1, %v103_v2  ;;  %v3775_v5 = vcombine.low %v99_v1, %v103_v2  ;;  %v106_v11 = vld [vmem:[#allocation6 + $0x78] sm:$0xff]  ;;  %v3778_v18 = vcombine.high %v100_v7, %v104_v9  ;;  %v92_v19 = vld [vmem:[#allocation6 + $0x8] sm:$0xff]  ;;  %v3777_v24 = vcombine.low %v100_v7, %v104_v9  ;;  %s3756_s30 = sshll.u32 %s4804_s29, 4  ;;  %s3757_s30 = int_to_ptr.vmem [resolvable:$true] %s3756_s30 }
  0x43   :  { %v95_v6 = vld [vmem:[#allocation6 + $0x20] sm:$0xff]  ;;  %v3782_v12 = vcombine.high %v102_v10, %v106_v11  ;;  %v3781_v13 = vcombine.low %v102_v10, %v106_v11  ;;  %v94_v14 = vld [vmem:[#allocation6 + $0x18] sm:$0xff]  ;;  %v96_v20 = vld [vmem:[#allocation6 + $0x28] sm:$0xff]  ;;  %s4763_s7 = scalar_lea.vmem %s3757_s30, 128  ;;  %p4768_p12 = scmp.lt.s32.totalorder %s3757_s30, %s3757_s30 }
  0x44   :  { %v3768_v8 = vcombine.high %v91_v3, %v95_v6  ;;  %203 = vmatprep.subr.bf16.mxu0 %v3776_v4  ;;  %v3767_v15 = vcombine.low %v91_v3, %v95_v6  ;;  %v89_v16 = vld [vmem:[#allocation3] sm:$0xff]  ;;  %v101_v25 = vld [vmem:[#allocation6 + $0x50] sm:$0xff]  ;;  %v3770_v27 = vcombine.high %v92_v19, %v96_v20  ;;  %v3769_v28 = vcombine.low %v92_v19, %v96_v20  ;;  %v4865_v36 = vld [vmem:[#allocation11 + $0x2e4] ss:$52 sps:$4 sm:$0xff]   ;;  %p4764_p11 = scmp.ne.s32.totalorder %s3757_s30, %s4763_s7  ;;  %p4769_p13 = scmp.lt.s32.totalorder %s4763_s7, %s4763_s7 }
  0x45   :  { %204 = vmatpush1.bf16.msra.mxu0 %v3775_v5  ;;  %v98_v17 = vld [vmem:[#allocation6 + $0x38] sm:$0xff]  ;;  %326 = vmatprep.subr.bf16.mxu1 %v3782_v12  ;;  %v90_v23 = vpack.c.bf16 %v89_v16, %v89_v16  ;;  %v105_v26 = vld [vmem:[#allocation6 + $0x70] sm:$0xff]  ;;  %v4899_v47 = vld [vmem:[#allocation11 + $0x1a4] ss:$52 sps:$4 sm:$0xff]  }
  0x46   :  { %205 = vmatprep.subr.bf16.mxu0 %v3768_v8  ;;  %v3774_v21 = vcombine.high %v94_v14, %v98_v17  ;;  %327 = vmatpush1.bf16.msra.mxu1 %v3781_v13  ;;  %v3773_v22 = vcombine.low %v94_v14, %v98_v17  ;;  %v93_v29 = vld [vmem:[#allocation6 + $0x10] sm:$0xff]  ;;  %v3780_v31 = vcombine.high %v101_v25, %v105_v26  ;;  %v4863_v35 = vld [vmem:[#allocation11 + $0x2dc] ss:$52 sps:$4 sm:$0xff]   ;;  %v4869_v38 = vld [vmem:[#allocation11 + $0x2e0] ss:$52 sps:$4 sm:$0xff]   ;;  %p4770_p0 = por %p4769_p13, %p4768_p12 }
  0x47   :  { %v97_v30 = vld [vmem:[#allocation6 + $0x30] sm:$0xff]  ;;  %v3779_v32 = vcombine.low %v101_v25, %v105_v26  ;;  %v4877_v40 = vld [vmem:[#allocation11 + $0x27c] ss:$52 sps:$4 sm:$0xff]   ;;  %v4903_v49 = vld [vmem:[#allocation11 + $0x1a0] ss:$52 sps:$4 sm:$0xff]  }
  0x48   :  { %328 = vmatprep.subr.bf16.mxu1 %v3774_v21  ;;  %v3772_v33 = vcombine.high %v93_v29, %v97_v30  ;;  %v3771_v34 = vcombine.low %v93_v29, %v97_v30  ;;  %v4867_v37 = vld [vmem:[#allocation11 + $0x2d8] ss:$52 sps:$4 sm:$0xff]   ;;  %v4875_v39 = vld [vmem:[#allocation11 + $0x274] ss:$52 sps:$4 sm:$0xff]   ;;  %v4879_v41 = vld [vmem:[#allocation11 + $0x270] ss:$52 sps:$4 sm:$0xff]   ;;  %p4771_p1 = pnand %p4770_p0, %p4764_p11 }
  0x49   :  { %206 = vmatpush1.bf16.msra.mxu0 %v3767_v15  ;;  %v4881_v42 = vld [vmem:[#allocation11 + $0x278] ss:$52 sps:$4 sm:$0xff]   ;;  %v4889_v44 = vld [vmem:[#allocation11 + $0x214] ss:$52 sps:$4 sm:$0xff]   ;;  %v4893_v46 = vld [vmem:[#allocation11 + $0x210] ss:$52 sps:$4 sm:$0xff]  }
  0x4a   :  { %244 = vmatprep.subr.bf16.mxu0 %v3778_v18  ;;  %329 = vmatpush1.bf16.msra.mxu1 %v3773_v22  ;;  %v4887_v43 = vld [vmem:[#allocation11 + $0x20c] ss:$52 sps:$4 sm:$0xff]   ;;  %v4891_v45 = vld [vmem:[#allocation11 + $0x208] ss:$52 sps:$4 sm:$0xff]   ;;  %v4913_v52 = vld [vmem:[#allocation11 + $0x144] ss:$52 sps:$4 sm:$0xff]  }
  0x4b   :  { %1206 = vmatprep.subr.bf16.mxu1 %v4865_v36  ;;  %v4901_v48 = vld [vmem:[#allocation11 + $0x1ac] ss:$52 sps:$4 sm:$0xff]   ;;  %v4905_v50 = vld [vmem:[#allocation11 + $0x1a8] ss:$52 sps:$4 sm:$0xff]   ;;  %v4927_v57 = vld [vmem:[#allocation11 + $0xd0] ss:$52 sps:$4 sm:$0xff]  }
  0x4c   :  { %3783 = vmatmul.mubr.msk.bf16.vlgmr.msra.gmra.mxu0 %vm187_vm0, %v90_v23  ;;  %v4911_v51 = vld [vmem:[#allocation11 + $0x13c] ss:$52 sps:$4 sm:$0xff]   ;;  %v4915_v53 = vld [vmem:[#allocation11 + $0x138] ss:$52 sps:$4 sm:$0xff]   ;;  %v4917_v54 = vld [vmem:[#allocation11 + $0x140] ss:$52 sps:$4 sm:$0xff]  }
  0x4d   :  { %245 = vmatpush1.bf16.msra.mxu0 %v3777_v24  ;;  %264 = vmatprep.mubr.bf16.mxu0 %v6320_v0  ;;  %v4919_v55 = vld [vmem:[#allocation11 + $0xd4] ss:$52 sps:$4 sm:$0xff]   ;;  %v4923_v56 = vld [vmem:[#allocation11 + $0xdc] ss:$52 sps:$4 sm:$0xff]   ;;  %v4929_v58 = vld [vmem:[#allocation11 + $0xd8] ss:$52 sps:$4 sm:$0xff]  }
  0x4e   :  { %246 = vmatprep.subr.bf16.mxu0 %v3770_v27  ;;  %3786 = vmatmul.mubr.msk.bf16.vlgmr.msra.gmra.mxu1 %vm187_vm0, %v90_v23  ;;  %v4933_v59 = vld [vmem:[#allocation11 + $0x6c] ss:$52 sps:$4 sm:$0xff]   ;;  %v4935_v60 = vld [vmem:[#allocation11 + $0x74] ss:$52 sps:$4 sm:$0xff]   ;;  %v4941_v62 = vld [vmem:[#allocation11 + $0x70] ss:$52 sps:$4 sm:$0xff]  }
  0x4f   :  { %1207 = vmatpush1.bf16.msra.mxu1 %v4869_v38  ;;  %v4939_v61 = vld [vmem:[#allocation11 + $0x68] ss:$52 sps:$4 sm:$0xff]   ;;  %v4945_v63 = vld [vmem:[#allocation11 + $0x4] ss:$52 sps:$4 sm:$0xff]   ;;  %v4947_v1 = vld [vmem:[#allocation11 + $0xc] ss:$52 sps:$4 sm:$0xff]  }
  0x50   :  { %1208 = vmatprep.subr.bf16.mxu1 %v4877_v40  ;;  %v4951_v2 = vld [vmem:[#allocation11] ss:$52 sps:$4 sm:$0xff]   ;;  %v4953_v3 = vld [vmem:[#allocation11 + $0x8] ss:$52 sps:$4 sm:$0xff]   ;;  %v4959_v5 = vld [vmem:[#allocation11 + $0x624] ss:$52 sps:$4 sm:$0xff]  }
  0x51   :  { %247 = vmatpush1.bf16.msra.mxu0 %v3769_v28  ;;  %v4957_v4 = vld [vmem:[#allocation11 + $0x61c] ss:$52 sps:$4 sm:$0xff]   ;;  %6636 = vst [vmem:[#allocation18_spill] sm:$0xff] %v4959_v5  ;;  %v4963_v6 = vld [vmem:[#allocation11 + $0x618] ss:$52 sps:$4 sm:$0xff]  }
  0x52   :  { %285 = vmatprep.subr.bf16.mxu0 %v3780_v31  ;;  %6635 = vst [vmem:[#allocation17_spill] sm:$0xff] %v4957_v4  ;;  %6637 = vst [vmem:[#allocation19_spill] sm:$0xff] %v4963_v6  ;;  %v4965_v7 = vld [vmem:[#allocation11 + $0x620] ss:$52 sps:$4 sm:$0xff]   ;;  %v4971_v9 = vld [vmem:[#allocation11 + $0x5bc] ss:$52 sps:$4 sm:$0xff]  }
  0x53   :  { %1209 = vmatpush1.bf16.msra.mxu1 %v4881_v42  ;;  %6638 = vst [vmem:[#allocation20_spill] sm:$0xff] %v4965_v7  ;;  %v4969_v8 = vld [vmem:[#allocation11 + $0x5b4] ss:$52 sps:$4 sm:$0xff]   ;;  %6640 = vst [vmem:[#allocation22_spill] sm:$0xff] %v4971_v9  ;;  %v4975_v10 = vld [vmem:[#allocation11 + $0x5b0] ss:$52 sps:$4 sm:$0xff]  }
  0x54   :  { %3784 = vmatmul.mubr.msk.bf16.vlgmr.msra.gmra.mxu0 %vm187_vm0, %v90_v23  ;;  %1210 = vmatprep.subr.bf16.mxu1 %v4889_v44  ;;  %6639 = vst [vmem:[#allocation21_spill] sm:$0xff] %v4969_v8  ;;  %6641 = vst [vmem:[#allocation23_spill] sm:$0xff] %v4975_v10  ;;  %v4977_v11 = vld [vmem:[#allocation11 + $0x5b8] ss:$52 sps:$4 sm:$0xff]   ;;  %v4983_v13 = vld [vmem:[#allocation11 + $0x554] ss:$52 sps:$4 sm:$0xff]  }
  0x55   :  { %286 = vmatpush1.bf16.msra.mxu0 %v3779_v32  ;;  %305 = vmatprep.mubr.bf16.mxu0 %v6320_v0  ;;  %6642 = vst [vmem:[#allocation24_spill] sm:$0xff] %v4977_v11  ;;  %v4981_v12 = vld [vmem:[#allocation11 + $0x54c] ss:$52 sps:$4 sm:$0xff]   ;;  %6644 = vst [vmem:[#allocation26_spill] sm:$0xff] %v4983_v13  ;;  %v4987_v14 = vld [vmem:[#allocation11 + $0x548] ss:$52 sps:$4 sm:$0xff]  }
  0x56   :  { %287 = vmatprep.subr.bf16.mxu0 %v3772_v33  ;;  %6643 = vst [vmem:[#allocation25_spill] sm:$0xff] %v4981_v12  ;;  %6645 = vst [vmem:[#allocation27_spill] sm:$0xff] %v4987_v14  ;;  %v4989_v15 = vld [vmem:[#allocation11 + $0x550] ss:$52 sps:$4 sm:$0xff]   ;;  %v4995_v17 = vld [vmem:[#allocation11 + $0x4ec] ss:$52 sps:$4 sm:$0xff]  }
  0x57   :  { %1211 = vmatpush1.bf16.msra.mxu1 %v4893_v46  ;;  %6646 = vst [vmem:[#allocation28_spill] sm:$0xff] %v4989_v15  ;;  %v4993_v16 = vld [vmem:[#allocation11 + $0x4e4] ss:$52 sps:$4 sm:$0xff]   ;;  %6648 = vst [vmem:[#allocation30_spill] sm:$0xff] %v4995_v17  ;;  %v4999_v18 = vld [vmem:[#allocation11 + $0x4e0] ss:$52 sps:$4 sm:$0xff]  }
  0x58   :  { %1212 = vmatprep.subr.bf16.mxu1 %v4901_v48  ;;  %6647 = vst [vmem:[#allocation29_spill] sm:$0xff] %v4993_v16  ;;  %6649 = vst [vmem:[#allocation31_spill] sm:$0xff] %v4999_v18  ;;  %v5001_v19 = vld [vmem:[#allocation11 + $0x4e8] ss:$52 sps:$4 sm:$0xff]   ;;  %v5007_v21 = vld [vmem:[#allocation11 + $0x484] ss:$52 sps:$4 sm:$0xff]  }
  0x59   :  { %288 = vmatpush1.bf16.msra.mxu0 %v3771_v34  ;;  %6650 = vst [vmem:[#allocation32_spill] sm:$0xff] %v5001_v19  ;;  %v5005_v20 = vld [vmem:[#allocation11 + $0x47c] ss:$52 sps:$4 sm:$0xff]   ;;  %6652 = vst [vmem:[#allocation34_spill] sm:$0xff] %v5007_v21  ;;  %v5011_v22 = vld [vmem:[#allocation11 + $0x478] ss:$52 sps:$4 sm:$0xff]  }
  0x5a   :  { %1165 = vmatprep.subr.bf16.mxu0 %v4863_v35  ;;  %6651 = vst [vmem:[#allocation33_spill] sm:$0xff] %v5005_v20  ;;  %6653 = vst [vmem:[#allocation35_spill] sm:$0xff] %v5011_v22  ;;  %v5017_v24 = vld [vmem:[#allocation11 + $0x414] ss:$52 sps:$4 sm:$0xff]   ;;  %v5019_v25 = vld [vmem:[#allocation11 + $0x41c] ss:$52 sps:$4 sm:$0xff]  }
  0x5b   :  { %1213 = vmatpush1.bf16.msra.mxu1 %v4905_v50  ;;  %6655 = vst [vmem:[#allocation37_spill] sm:$0xff] %v5017_v24  ;;  %6656 = vst [vmem:[#allocation38_spill] sm:$0xff] %v5019_v25  ;;  %v5023_v26 = vld [vmem:[#allocation11 + $0x410] ss:$52 sps:$4 sm:$0xff]   ;;  %v5025_v27 = vld [vmem:[#allocation11 + $0x418] ss:$52 sps:$4 sm:$0xff]  }
  0x5c   :  { %3785 = vmatmul.mubr.msk.bf16.vlgmr.msra.gmra.mxu0 %vm187_vm0, %v90_v23  ;;  %1214 = vmatprep.subr.bf16.mxu1 %v4913_v52  ;;  %v5013_v23 = vld [vmem:[#allocation11 + $0x480] ss:$52 sps:$4 sm:$0xff]   ;;  %6657 = vst [vmem:[#allocation39_spill] sm:$0xff] %v5023_v26  ;;  %6658 = vst [vmem:[#allocation40_spill] sm:$0xff] %v5025_v27  ;;  %v5035_v30 = vld [vmem:[#allocation11 + $0x3a8] ss:$52 sps:$4 sm:$0xff]  }
  0x5d   :  { %1166 = vmatpush1.bf16.msra.mxu0 %v4867_v37  ;;  %6654 = vst [vmem:[#allocation36_spill] sm:$0xff] %v5013_v23  ;;  %v5029_v28 = vld [vmem:[#allocation11 + $0x3ac] ss:$52 sps:$4 sm:$0xff]   ;;  %v5031_v29 = vld [vmem:[#allocation11 + $0x3b4] ss:$52 sps:$4 sm:$0xff]   ;;  %6661 = vst [vmem:[#allocation43_spill] sm:$0xff] %v5035_v30 }
  0x5e   :  { %1167 = vmatprep.subr.bf16.mxu0 %v4875_v39  ;;  %6659 = vst [vmem:[#allocation41_spill] sm:$0xff] %v5029_v28  ;;  %6660 = vst [vmem:[#allocation42_spill] sm:$0xff] %v5031_v29  ;;  %v5037_v31 = vld [vmem:[#allocation11 + $0x3b0] ss:$52 sps:$4 sm:$0xff]   ;;  %v5043_v33 = vld [vmem:[#allocation11 + $0x34c] ss:$52 sps:$4 sm:$0xff]  }
  0x5f   :  { %1215 = vmatpush1.bf16.msra.mxu1 %v4917_v54  ;;  %6662 = vst [vmem:[#allocation44_spill] sm:$0xff] %v5037_v31  ;;  %v5041_v32 = vld [vmem:[#allocation11 + $0x344] ss:$52 sps:$4 sm:$0xff]   ;;  %6664 = vst [vmem:[#allocation46_spill] sm:$0xff] %v5043_v33  ;;  %v5047_v34 = vld [vmem:[#allocation11 + $0x340] ss:$52 sps:$4 sm:$0xff]  }
  0x60   :  { %1216 = vmatprep.subr.bf16.mxu1 %v4923_v56  ;;  %6663 = vst [vmem:[#allocation45_spill] sm:$0xff] %v5041_v32  ;;  %6665 = vst [vmem:[#allocation47_spill] sm:$0xff] %v5047_v34  ;;  %v5049_v0 = vld [vmem:[#allocation11 + $0x348] ss:$52 sps:$4 sm:$0xff]  }
  0x61   :  { %1168 = vmatpush1.bf16.msra.mxu0 %v4879_v41  ;;  %6666 = vst [vmem:[#allocation48_spill] sm:$0xff] %v5049_v0 }
  0x62   :  { %1169 = vmatprep.subr.bf16.mxu0 %v4887_v43 }
  0x63   :  { %1217 = vmatpush1.bf16.msra.mxu1 %v4929_v58 }
  0x64   :  { %1218 = vmatprep.subr.bf16.mxu1 %v4935_v60 }
  0x65   :  { %1170 = vmatpush1.bf16.msra.mxu0 %v4891_v45 }
  0x66   :  { %1171 = vmatprep.subr.bf16.mxu0 %v4899_v47 }
  0x67   :  { %1219 = vmatpush1.bf16.msra.mxu1 %v4941_v62 }
  0x68   :  { %1220 = vmatprep.subr.bf16.mxu1 %v4947_v1 }
  0x69   :  { %1172 = vmatpush1.bf16.msra.mxu0 %v4903_v49 }
  0x6a   :  { %1173 = vmatprep.subr.bf16.mxu0 %v4911_v51 }
  0x6b   :  { %1221 = vmatpush1.bf16.msra.mxu1 %v4953_v3 }
  0x6c   :  { %1222 = vmatprep.subr.bf16.mxu1 %v4959_v5 }
  0x6d   :  { %1174 = vmatpush1.bf16.msra.mxu0 %v4915_v53 }
  0x6e   :  { %1175 = vmatprep.subr.bf16.mxu0 %v4919_v55 }
  0x6f   :  { %1223 = vmatpush2.bf16.msra.mxu1 %v4965_v7 }
  0x70   :  { %1224 = vmatprep.subr.bf16.mxu1 %v4971_v9 }
  0x71   :  { %1176 = vmatpush1.bf16.msra.mxu0 %v4927_v57 }
  0x72   :  { %1177 = vmatprep.subr.bf16.mxu0 %v4933_v59 }
  0x73   :  { %1225 = vmatpush2.bf16.msra.mxu1 %v4977_v11 }
  0x74   :  { %1226 = vmatprep.subr.bf16.mxu1 %v4983_v13 }
  0x75   :  { %1178 = vmatpush1.bf16.msra.mxu0 %v4939_v61 }
  0x76   :  { %1179 = vmatprep.subr.bf16.mxu0 %v4945_v63 }
  0x77   :  { %1227 = vmatpush2.bf16.msra.mxu1 %v4989_v15 }
  0x78   :  { %1228 = vmatprep.subr.bf16.mxu1 %v4995_v17 }
  0x79   :  { %1180 = vmatpush1.bf16.msra.mxu0 %v4951_v2 }
  0x7a   :  { %1181 = vmatprep.subr.bf16.mxu0 %v4957_v4 }
  0x7b   :  { %1229 = vmatpush2.bf16.msra.mxu1 %v5001_v19 }
  0x7c   :  { %1230 = vmatprep.subr.bf16.mxu1 %v5007_v21 }
  0x7d   :  { %1182 = vmatpush2.bf16.msra.mxu0 %v4963_v6 }
  0x7e   :  { %1183 = vmatprep.subr.bf16.mxu0 %v4969_v8 }
  0x7f   :  { %1231 = vmatpush2.bf16.msra.mxu1 %v5013_v23 }
  0x80   :  { %1232 = vmatprep.subr.bf16.mxu1 %v5019_v25 }
  0x81   :  { %1184 = vmatpush2.bf16.msra.mxu0 %v4975_v10 }
  0x82   :  { %1185 = vmatprep.subr.bf16.mxu0 %v4981_v12 }
  0x83   :  { %1233 = vmatpush2.bf16.msra.mxu1 %v5025_v27 }
  0x84   :  { %1234 = vmatprep.subr.bf16.mxu1 %v5031_v29  ;;  %v5055_v29 = vld [vmem:[#allocation11 + $0x2ec] ss:$52 sps:$4 sm:$0xff]  }
  0x85   :  { %1186 = vmatpush2.bf16.msra.mxu0 %v4987_v14  ;;  %6667 = vst [vmem:[#allocation49_spill] sm:$0xff] %v5055_v29 }
  0x86   :  { %1187 = vmatprep.subr.bf16.mxu0 %v4993_v16 }
  0x87   :  { %1235 = vmatpush2.bf16.msra.mxu1 %v5037_v31 }
  0x88   :  { %1236 = vmatprep.subr.bf16.mxu1 %v5043_v33 }
  0x89   :  { %1188 = vmatpush2.bf16.msra.mxu0 %v4999_v18 }
  0x8a   :  { %1189 = vmatprep.subr.bf16.mxu0 %v5005_v20 }
  0x8b   :  { %1237 = vmatpush2.bf16.msra.mxu1 %v5049_v0 }
  0x8d   :  { %1190 = vmatpush2.bf16.msra.mxu0 %v5011_v22 }
  0x8e   :  { %1191 = vmatprep.subr.bf16.mxu0 %v5017_v24 }
  0x91   :  { %1192 = vmatpush2.bf16.msra.mxu0 %v5023_v26 }
  0x92   :  { %1193 = vmatprep.subr.bf16.mxu0 %v5029_v28  ;;  %v5057_v28 = vld [vmem:[#allocation11 + $0x2f4] ss:$52 sps:$4 sm:$0xff]  }
  0x93   :  { %6668 = vst [vmem:[#allocation50_spill] sm:$0xff] %v5057_v28  ;;  %1288 = vmatprep.subr.bf16.mxu1 %v5057_v28 }
  0x95   :  { %1194 = vmatpush2.bf16.msra.mxu0 %v5035_v30 }
  0x96   :  { %1195 = vmatprep.subr.bf16.mxu0 %v5041_v32 }
  0x99   :  { %1196 = vmatpush2.bf16.msra.mxu0 %v5047_v34 }
  0x9a   :  { %1247 = vmatprep.subr.bf16.mxu0 %v5055_v29 }
 0x10c   :  { %v225_v31 = vpop.f32.mrf.mxu0 }
 0x10d   :  { %355 = vst [vmem:[#allocation2] sm:$0xff] %v225_v31 }
 0x10e   :  { %v227_v30 = vpop.f32.mrf.mxu0  ;;  %v348_v27 = vpop.f32.mrf.mxu1 }
 0x10f   :  { %356 = vst [vmem:[#allocation2 + $0x8] sm:$0xff] %v227_v30  ;;  %361 = vst [vmem:[#allocation2 + $0x30] sm:$0xff] %v348_v27 }
 0x110   :  { %v229_v32 = vpop.f32.mrf.mxu0  ;;  %v350_v33 = vpop.f32.mrf.mxu1 }
 0x111   :  { %362 = vst [vmem:[#allocation2 + $0x38] sm:$0xff] %v350_v33 }
 0x112   :  { %v230_v34 = vpop.f32.mrf.mxu0  ;;  %v352_v26 = vpop.f32.mrf.mxu1 }
 0x114   :  { %v266_v0 = vpop.f32.mrf.mxu0  ;;  %v353_v25 = vpop.f32.mrf.mxu1 }
 0x115   :  { %357 = vst [vmem:[#allocation2 + $0x10] sm:$0xff] %v266_v0 }
 0x116   :  { %v268_v24 = vpop.f32.mrf.mxu0 }
 0x117   :  { %358 = vst [vmem:[#allocation2 + $0x18] sm:$0xff] %v268_v24 }
 0x118   :  { %v270_v23 = vpop.f32.mrf.mxu0 }
 0x11a   :  { %v271_v29 = vpop.f32.mrf.mxu0 }
 0x11c   :  { %v307_v22 = vpop.f32.mrf.mxu0 }
 0x11d   :  { %359 = vst [vmem:[#allocation2 + $0x20] sm:$0xff] %v307_v22  ;;  %v385_v22 = vlaneseq }
 0x11e   :  { %v309_v28 = vpop.f32.mrf.mxu0  ;;  %v363_v30 = vld [vmem:[#allocation2] ss:$8 sm:$0xf] }
 0x11f   :  { %360 = vst [vmem:[#allocation2 + $0x28] sm:$0xff] %v309_v28  ;;  %v5064_v23 = vshrl.u32 %v385_v22, 7  ;;  %v5088_v22 = vld [vmem:[#allocation11 + $0x280] ss:$52 sps:$4 sm:$0xff]  }
 0x120   :  { %v311_v31 = vpop.f32.mrf.mxu0  ;;  %6671 = vst [vmem:[#allocation53_spill] sm:$0xff] %v5088_v22 }
 0x121   :  { %v5070_v29 = vsub.s32 1, %v5064_v23 }
 0x122   :  { %v312_v21 = vpop.f32.mrf.mxu0 }
 0x123   :  { %v5067_v21 = vsub.s32 0, %v5064_v23 }
 0x126   :  { %v364_v27 = vld [vmem:[#allocation2] ss:$8 sm:$0xf0] }
 0x127   :  { %v365_v32 = vor.u32 %v364_v27, %v363_v30 }
 0x129   :  { %v366_v20 = vmul.f32 0.5, %v365_v32  ;;  %v371_v33 = vrot.slane %v365_v32, 6 }
 0x12b   :  { %4357 = vtanh.f32 %v366_v20 }
 0x12c   :  { %4359 = vtanh.f32 %v371_v33 }
 0x138   :  { %v4358_v26 = vpop.eup %4357 }
 0x139   :  { %v368_v25 = vadd.f32 1.0, %v4358_v26  ;;  %v4360_v34 = vpop.eup %4359  ;;  %v5076_v26 = vld [vmem:[#allocation11 + $0x2e8] ss:$52 sps:$4 sm:$0xff]  }
 0x13b   :  { %v369_v0 = vmul.f32 0.5, %v368_v25  ;;  %v5078_v25 = vld [vmem:[#allocation11 + $0x2f0] ss:$52 sps:$4 sm:$0xff]  }
 0x13c   :  { %6669 = vst [vmem:[#allocation51_spill] sm:$0xff] %v5078_v25 }
 0x13d   :  { %v5061_v24 = vmul.f32 %v4360_v34, %v369_v0  ;;  %v377_v28 = vrot.slane %v369_v0, 4  ;;  %v5080_v0 = vld [vmem:[#allocation11 + $0x284] ss:$52 sps:$4 sm:$0xff]   ;;  %v5082_v34 = vld [vmem:[#allocation11 + $0x28c] ss:$52 sps:$4 sm:$0xff]  }
 0x13e   :  { %6670 = vst [vmem:[#allocation52_spill] sm:$0xff] %v5082_v34 }
 0x13f   :  { %4361 = vtanh.f32 %v5061_v24 }
 0x14c   :  { %v4362_v20 = vpop.eup %4361 }
 0x14d   :  { %v379_v31 = vmul.f32 %v4362_v20, %v377_v28  ;;  %v5090_v28 = vld [vmem:[#allocation11 + $0x288] ss:$52 sps:$4 sm:$0xff]  }
 0x14e   :  { %6672 = vst [vmem:[#allocation54_spill] sm:$0xff] %v5090_v28  ;;  %v5092_v20 = vld [vmem:[#allocation11 + $0x21c] ss:$52 sps:$4 sm:$0xff]  }
 0x14f   :  { %v392_v30 = vrot.slane %v379_v31, %v5070_v29  ;;  %v388_v27 = vrot.slane %v379_v31, %v5067_v21  ;;  %6673 = vst [vmem:[#allocation55_spill] sm:$0xff] %v5092_v20  ;;  %v5094_v31 = vld [vmem:[#allocation11 + $0x224] ss:$52 sps:$4 sm:$0xff]  }
 0x150   :  { %6674 = vst [vmem:[#allocation56_spill] sm:$0xff] %v5094_v31 }
 0x151   :  { %v396_v32 = vpack.c.bf16 %v392_v30, %v392_v30  ;;  %v5074_v33 = vpack.c.bf16 %v388_v27, %v388_v27  ;;  %v5100_v30 = vld [vmem:[#allocation11 + $0x218] ss:$52 sps:$4 sm:$0xff]   ;;  %v5102_v27 = vld [vmem:[#allocation11 + $0x220] ss:$52 sps:$4 sm:$0xff]  }
 0x152   :  { %6675 = vst [vmem:[#allocation57_spill] sm:$0xff] %v5100_v30  ;;  %6676 = vst [vmem:[#allocation58_spill] sm:$0xff] %v5102_v27 }
 0x153   :  { %1197 = vmatprep.mubr.bf16.mxu0 %v396_v32  ;;  %1238 = vmatprep.mubr.bf16.mxu1 %v396_v32 }
 0x154   :  { %1198 = vmatmul.mubr.bf16.vlgmr.msra.gmra.mxu0 %v5074_v33  ;;  %1239 = vmatmul.mubr.bf16.vlgmr.msra.gmra.mxu1 %v5074_v33 }
 0x155   :  { %1248 = vmatpush1.bf16.msra.mxu0 %v5076_v26  ;;  %1289 = vmatpush1.bf16.msra.mxu1 %v5078_v25  ;;  %v5108_v25 = vld [vmem:[#allocation11 + $0x1bc] ss:$52 sps:$4 sm:$0xff]  }
 0x156   :  { %1279 = vmatprep.mubr.bf16.mxu0 %v396_v32  ;;  %1320 = vmatprep.mubr.bf16.mxu1 %v396_v32  ;;  %v5106_v32 = vld [vmem:[#allocation11 + $0x1b4] ss:$52 sps:$4 sm:$0xff]   ;;  %6678 = vst [vmem:[#allocation60_spill] sm:$0xff] %v5108_v25 }
 0x157   :  { %1249 = vmatprep.subr.bf16.mxu0 %v5080_v0  ;;  %1290 = vmatprep.subr.bf16.mxu1 %v5082_v34  ;;  %6677 = vst [vmem:[#allocation59_spill] sm:$0xff] %v5106_v32  ;;  %v5112_v34 = vld [vmem:[#allocation11 + $0x1b0] ss:$52 sps:$4 sm:$0xff]  }
 0x158   :  { %6679 = vst [vmem:[#allocation61_spill] sm:$0xff] %v5112_v34 }
 0x159   :  { %1250 = vmatpush1.bf16.msra.mxu0 %v5088_v22  ;;  %1291 = vmatpush1.bf16.msra.mxu1 %v5090_v28  ;;  %v5114_v22 = vld [vmem:[#allocation11 + $0x1b8] ss:$52 sps:$4 sm:$0xff]  }
 0x15a   :  { %1251 = vmatprep.subr.bf16.mxu0 %v5092_v20  ;;  %1292 = vmatprep.subr.bf16.mxu1 %v5094_v31  ;;  %6680 = vst [vmem:[#allocation62_spill] sm:$0xff] %v5114_v22  ;;  %v5118_v28 = vld [vmem:[#allocation11 + $0x14c] ss:$52 sps:$4 sm:$0xff]   ;;  %v5120_v20 = vld [vmem:[#allocation11 + $0x154] ss:$52 sps:$4 sm:$0xff]  }
 0x15b   :  { %6681 = vst [vmem:[#allocation63_spill] sm:$0xff] %v5118_v28  ;;  %6682 = vst [vmem:[#allocation64_spill] sm:$0xff] %v5120_v20  ;;  %v5124_v31 = vld [vmem:[#allocation11 + $0x148] ss:$52 sps:$4 sm:$0xff]  }
 0x15c   :  { %6683 = vst [vmem:[#allocation65_spill] sm:$0xff] %v5124_v31 }
 0x15d   :  { %1252 = vmatpush1.bf16.msra.mxu0 %v5100_v30  ;;  %1293 = vmatpush1.bf16.msra.mxu1 %v5102_v27  ;;  %v5126_v30 = vld [vmem:[#allocation11 + $0x150] ss:$52 sps:$4 sm:$0xff]  }
 0x15e   :  { %1253 = vmatprep.subr.bf16.mxu0 %v5106_v32  ;;  %1294 = vmatprep.subr.bf16.mxu1 %v5108_v25  ;;  %6684 = vst [vmem:[#allocation66_spill] sm:$0xff] %v5126_v30  ;;  %v5130_v27 = vld [vmem:[#allocation11 + $0xe4] ss:$52 sps:$4 sm:$0xff]   ;;  %v5132_v32 = vld [vmem:[#allocation11 + $0xec] ss:$52 sps:$4 sm:$0xff]  }
 0x15f   :  { %6685 = vst [vmem:[#allocation67_spill] sm:$0xff] %v5130_v27  ;;  %6686 = vst [vmem:[#allocation68_spill] sm:$0xff] %v5132_v32  ;;  %v5136_v25 = vld [vmem:[#allocation11 + $0xe0] ss:$52 sps:$4 sm:$0xff]  }
 0x160   :  { %6687 = vst [vmem:[#allocation69_spill] sm:$0xff] %v5136_v25 }
 0x161   :  { %1254 = vmatpush1.bf16.msra.mxu0 %v5112_v34  ;;  %1295 = vmatpush1.bf16.msra.mxu1 %v5114_v22  ;;  %v5138_v34 = vld [vmem:[#allocation11 + $0xe8] ss:$52 sps:$4 sm:$0xff]  }
 0x162   :  { %1255 = vmatprep.subr.bf16.mxu0 %v5118_v28  ;;  %1296 = vmatprep.subr.bf16.mxu1 %v5120_v20  ;;  %6688 = vst [vmem:[#allocation70_spill] sm:$0xff] %v5138_v34  ;;  %v5142_v22 = vld [vmem:[#allocation11 + $0x7c] ss:$52 sps:$4 sm:$0xff]   ;;  %v5144_v28 = vld [vmem:[#allocation11 + $0x84] ss:$52 sps:$4 sm:$0xff]  }
 0x163   :  { %6689 = vst [vmem:[#allocation71_spill] sm:$0xff] %v5142_v22  ;;  %6690 = vst [vmem:[#allocation72_spill] sm:$0xff] %v5144_v28  ;;  %v5148_v20 = vld [vmem:[#allocation11 + $0x78] ss:$52 sps:$4 sm:$0xff]  }
 0x164   :  { %6691 = vst [vmem:[#allocation73_spill] sm:$0xff] %v5148_v20 }
 0x165   :  { %1256 = vmatpush1.bf16.msra.mxu0 %v5124_v31  ;;  %1297 = vmatpush1.bf16.msra.mxu1 %v5126_v30  ;;  %v5150_v31 = vld [vmem:[#allocation11 + $0x80] ss:$52 sps:$4 sm:$0xff]  }
 0x166   :  { %1257 = vmatprep.subr.bf16.mxu0 %v5130_v27  ;;  %1298 = vmatprep.subr.bf16.mxu1 %v5132_v32  ;;  %6692 = vst [vmem:[#allocation74_spill] sm:$0xff] %v5150_v31  ;;  %v5154_v30 = vld [vmem:[#allocation11 + $0x14] ss:$52 sps:$4 sm:$0xff]   ;;  %v5156_v27 = vld [vmem:[#allocation11 + $0x1c] ss:$52 sps:$4 sm:$0xff]  }
 0x167   :  { %6693 = vst [vmem:[#allocation75_spill] sm:$0xff] %v5154_v30  ;;  %6694 = vst [vmem:[#allocation76_spill] sm:$0xff] %v5156_v27  ;;  %v5160_v32 = vld [vmem:[#allocation11 + $0x10] ss:$52 sps:$4 sm:$0xff]  }
 0x168   :  { %6695 = vst [vmem:[#allocation77_spill] sm:$0xff] %v5160_v32 }
 0x169   :  { %1258 = vmatpush1.bf16.msra.mxu0 %v5136_v25  ;;  %1299 = vmatpush1.bf16.msra.mxu1 %v5138_v34  ;;  %v5162_v25 = vld [vmem:[#allocation11 + $0x18] ss:$52 sps:$4 sm:$0xff]  }
 0x16a   :  { %1259 = vmatprep.subr.bf16.mxu0 %v5142_v22  ;;  %1300 = vmatprep.subr.bf16.mxu1 %v5144_v28  ;;  %6696 = vst [vmem:[#allocation78_spill] sm:$0xff] %v5162_v25  ;;  %v5166_v34 = vld [vmem:[#allocation11 + $0x62c] ss:$52 sps:$4 sm:$0xff]   ;;  %v5168_v22 = vld [vmem:[#allocation11 + $0x634] ss:$52 sps:$4 sm:$0xff]  }
 0x16b   :  { %6697 = vst [vmem:[#allocation79_spill] sm:$0xff] %v5166_v34  ;;  %6698 = vst [vmem:[#allocation80_spill] sm:$0xff] %v5168_v22  ;;  %v5172_v28 = vld [vmem:[#allocation11 + $0x628] ss:$52 sps:$4 sm:$0xff]  }
 0x16c   :  { %6699 = vst [vmem:[#allocation81_spill] sm:$0xff] %v5172_v28 }
 0x16d   :  { %1260 = vmatpush1.bf16.msra.mxu0 %v5148_v20  ;;  %1301 = vmatpush1.bf16.msra.mxu1 %v5150_v31  ;;  %v5174_v20 = vld [vmem:[#allocation11 + $0x630] ss:$52 sps:$4 sm:$0xff]  }
 0x16e   :  { %1261 = vmatprep.subr.bf16.mxu0 %v5154_v30  ;;  %1302 = vmatprep.subr.bf16.mxu1 %v5156_v27  ;;  %6700 = vst [vmem:[#allocation82_spill] sm:$0xff] %v5174_v20  ;;  %v5178_v31 = vld [vmem:[#allocation11 + $0x5c4] ss:$52 sps:$4 sm:$0xff]   ;;  %v5180_v30 = vld [vmem:[#allocation11 + $0x5cc] ss:$52 sps:$4 sm:$0xff]  }
 0x16f   :  { %6701 = vst [vmem:[#allocation83_spill] sm:$0xff] %v5178_v31  ;;  %6702 = vst [vmem:[#allocation84_spill] sm:$0xff] %v5180_v30  ;;  %v5184_v27 = vld [vmem:[#allocation11 + $0x5c0] ss:$52 sps:$4 sm:$0xff]  }
 0x170   :  { %6703 = vst [vmem:[#allocation85_spill] sm:$0xff] %v5184_v27 }
 0x171   :  { %1262 = vmatpush1.bf16.msra.mxu0 %v5160_v32  ;;  %1303 = vmatpush1.bf16.msra.mxu1 %v5162_v25  ;;  %v5186_v32 = vld [vmem:[#allocation11 + $0x5c8] ss:$52 sps:$4 sm:$0xff]  }
 0x172   :  { %1263 = vmatprep.subr.bf16.mxu0 %v5166_v34  ;;  %1304 = vmatprep.subr.bf16.mxu1 %v5168_v22  ;;  %6704 = vst [vmem:[#allocation86_spill] sm:$0xff] %v5186_v32  ;;  %v5190_v25 = vld [vmem:[#allocation11 + $0x55c] ss:$52 sps:$4 sm:$0xff]   ;;  %v5192_v34 = vld [vmem:[#allocation11 + $0x564] ss:$52 sps:$4 sm:$0xff]  }
 0x173   :  { %6705 = vst [vmem:[#allocation87_spill] sm:$0xff] %v5190_v25  ;;  %6706 = vst [vmem:[#allocation88_spill] sm:$0xff] %v5192_v34  ;;  %v5196_v22 = vld [vmem:[#allocation11 + $0x558] ss:$52 sps:$4 sm:$0xff]  }
 0x174   :  { %6707 = vst [vmem:[#allocation89_spill] sm:$0xff] %v5196_v22 }
 0x175   :  { %1264 = vmatpush2.bf16.msra.mxu0 %v5172_v28  ;;  %1305 = vmatpush2.bf16.msra.mxu1 %v5174_v20  ;;  %v5198_v28 = vld [vmem:[#allocation11 + $0x560] ss:$52 sps:$4 sm:$0xff]  }
 0x176   :  { %1265 = vmatprep.subr.bf16.mxu0 %v5178_v31  ;;  %1306 = vmatprep.subr.bf16.mxu1 %v5180_v30  ;;  %6708 = vst [vmem:[#allocation90_spill] sm:$0xff] %v5198_v28  ;;  %v5202_v20 = vld [vmem:[#allocation11 + $0x4f4] ss:$52 sps:$4 sm:$0xff]   ;;  %v5204_v31 = vld [vmem:[#allocation11 + $0x4fc] ss:$52 sps:$4 sm:$0xff]  }
 0x177   :  { %6709 = vst [vmem:[#allocation91_spill] sm:$0xff] %v5202_v20  ;;  %6710 = vst [vmem:[#allocation92_spill] sm:$0xff] %v5204_v31  ;;  %v5208_v30 = vld [vmem:[#allocation11 + $0x4f0] ss:$52 sps:$4 sm:$0xff]  }
 0x178   :  { %6711 = vst [vmem:[#allocation93_spill] sm:$0xff] %v5208_v30 }
 0x179   :  { %1266 = vmatpush2.bf16.msra.mxu0 %v5184_v27  ;;  %1307 = vmatpush2.bf16.msra.mxu1 %v5186_v32  ;;  %v5210_v27 = vld [vmem:[#allocation11 + $0x4f8] ss:$52 sps:$4 sm:$0xff]  }
 0x17a   :  { %1267 = vmatprep.subr.bf16.mxu0 %v5190_v25  ;;  %1308 = vmatprep.subr.bf16.mxu1 %v5192_v34  ;;  %6712 = vst [vmem:[#allocation94_spill] sm:$0xff] %v5210_v27  ;;  %v5214_v32 = vld [vmem:[#allocation11 + $0x48c] ss:$52 sps:$4 sm:$0xff]   ;;  %v5216_v25 = vld [vmem:[#allocation11 + $0x494] ss:$52 sps:$4 sm:$0xff]  }
 0x17b   :  { %6713 = vst [vmem:[#allocation95_spill] sm:$0xff] %v5214_v32  ;;  %6714 = vst [vmem:[#allocation96_spill] sm:$0xff] %v5216_v25  ;;  %v5220_v34 = vld [vmem:[#allocation11 + $0x488] ss:$52 sps:$4 sm:$0xff]  }
 0x17c   :  { %6715 = vst [vmem:[#allocation97_spill] sm:$0xff] %v5220_v34 }
 0x17d   :  { %1268 = vmatpush2.bf16.msra.mxu0 %v5196_v22  ;;  %1309 = vmatpush2.bf16.msra.mxu1 %v5198_v28  ;;  %v5222_v22 = vld [vmem:[#allocation11 + $0x490] ss:$52 sps:$4 sm:$0xff]  }
 0x17e   :  { %1269 = vmatprep.subr.bf16.mxu0 %v5202_v20  ;;  %1310 = vmatprep.subr.bf16.mxu1 %v5204_v31  ;;  %6716 = vst [vmem:[#allocation98_spill] sm:$0xff] %v5222_v22  ;;  %v5226_v28 = vld [vmem:[#allocation11 + $0x424] ss:$52 sps:$4 sm:$0xff]   ;;  %v5228_v20 = vld [vmem:[#allocation11 + $0x42c] ss:$52 sps:$4 sm:$0xff]  }
 0x17f   :  { %6717 = vst [vmem:[#allocation99_spill] sm:$0xff] %v5226_v28  ;;  %6718 = vst [vmem:[#allocation100_spill] sm:$0xff] %v5228_v20  ;;  %v5232_v31 = vld [vmem:[#allocation11 + $0x420] ss:$52 sps:$4 sm:$0xff]  }
 0x180   :  { %6719 = vst [vmem:[#allocation101_spill] sm:$0xff] %v5232_v31 }
 0x181   :  { %1270 = vmatpush2.bf16.msra.mxu0 %v5208_v30  ;;  %1311 = vmatpush2.bf16.msra.mxu1 %v5210_v27  ;;  %v5234_v30 = vld [vmem:[#allocation11 + $0x428] ss:$52 sps:$4 sm:$0xff]  }
 0x182   :  { %1271 = vmatprep.subr.bf16.mxu0 %v5214_v32  ;;  %1312 = vmatprep.subr.bf16.mxu1 %v5216_v25  ;;  %6720 = vst [vmem:[#allocation102_spill] sm:$0xff] %v5234_v30  ;;  %v5238_v27 = vld [vmem:[#allocation11 + $0x3bc] ss:$52 sps:$4 sm:$0xff]   ;;  %v5240_v32 = vld [vmem:[#allocation11 + $0x3c4] ss:$52 sps:$4 sm:$0xff]  }
 0x183   :  { %v5244_v25 = vld [vmem:[#allocation11 + $0x3b8] ss:$52 sps:$4 sm:$0xff]  }
 0x185   :  { %1272 = vmatpush2.bf16.msra.mxu0 %v5220_v34  ;;  %1313 = vmatpush2.bf16.msra.mxu1 %v5222_v22  ;;  %v5246_v34 = vld [vmem:[#allocation11 + $0x3c0] ss:$52 sps:$4 sm:$0xff]  }
 0x186   :  { %1273 = vmatprep.subr.bf16.mxu0 %v5226_v28  ;;  %1314 = vmatprep.subr.bf16.mxu1 %v5228_v20  ;;  %6721 = vst [vmem:[#allocation103_spill] sm:$0xff] %v5246_v34  ;;  %v5250_v22 = vld [vmem:[#allocation11 + $0x354] ss:$52 sps:$4 sm:$0xff]   ;;  %v5252_v28 = vld [vmem:[#allocation11 + $0x35c] ss:$52 sps:$4 sm:$0xff]  }
 0x187   :  { %6722 = vst [vmem:[#allocation104_spill] sm:$0xff] %v5252_v28  ;;  %v5256_v20 = vld [vmem:[#allocation11 + $0x350] ss:$52 sps:$4 sm:$0xff]  }
 0x189   :  { %1274 = vmatpush2.bf16.msra.mxu0 %v5232_v31  ;;  %1315 = vmatpush2.bf16.msra.mxu1 %v5234_v30  ;;  %v5258_v31 = vld [vmem:[#allocation11 + $0x358] ss:$52 sps:$4 sm:$0xff]  }
 0x18a   :  { %1275 = vmatprep.subr.bf16.mxu0 %v5238_v27  ;;  %1316 = vmatprep.subr.bf16.mxu1 %v5240_v32 }
 0x18d   :  { %1276 = vmatpush2.bf16.msra.mxu0 %v5244_v25  ;;  %1317 = vmatpush2.bf16.msra.mxu1 %v5246_v34 }
 0x18e   :  { %1277 = vmatprep.subr.bf16.mxu0 %v5250_v22  ;;  %1318 = vmatprep.subr.bf16.mxu1 %v5252_v28 }
 0x191   :  { %1278 = vmatpush2.bf16.msra.mxu0 %v5256_v20  ;;  %1319 = vmatpush2.bf16.msra.mxu1 %v5258_v31 }
 0x192   :  { %1423 = vmatprep.subr.bf16.mxu0 %v4863_v35  ;;  %1464 = vmatprep.subr.bf16.mxu1 %v4865_v36  ;;  %v6723_v35 = vld [vmem:[#allocation33_spill] sm:$0xff]  ;;  %v6724_v36 = vld [vmem:[#allocation34_spill] sm:$0xff] }
 0x194   :  { %1280 = vmatmul.mubr.bf16.vlgmr.msra.gmra.mxu0 %v5074_v33  ;;  %1321 = vmatmul.mubr.bf16.vlgmr.msra.gmra.mxu1 %v5074_v33  ;;  %v6727_v33 = vld [vmem:[#allocation37_spill] sm:$0xff] }
 0x195   :  { %1424 = vmatpush1.bf16.msra.mxu0 %v4867_v37  ;;  %1465 = vmatpush1.bf16.msra.mxu1 %v4869_v38  ;;  %v6725_v37 = vld [vmem:[#allocation35_spill] sm:$0xff]  ;;  %v6726_v38 = vld [vmem:[#allocation36_spill] sm:$0xff] }
 0x196   :  { %1425 = vmatprep.subr.bf16.mxu0 %v4875_v39  ;;  %1466 = vmatprep.subr.bf16.mxu1 %v4877_v40 }
 0x199   :  { %1426 = vmatpush1.bf16.msra.mxu0 %v4879_v41  ;;  %1467 = vmatpush1.bf16.msra.mxu1 %v4881_v42 }
 0x19a   :  { %1427 = vmatprep.subr.bf16.mxu0 %v4887_v43  ;;  %1468 = vmatprep.subr.bf16.mxu1 %v4889_v44 }
 0x19d   :  { %1428 = vmatpush1.bf16.msra.mxu0 %v4891_v45  ;;  %1469 = vmatpush1.bf16.msra.mxu1 %v4893_v46 }
 0x19e   :  { %1429 = vmatprep.subr.bf16.mxu0 %v4899_v47  ;;  %1470 = vmatprep.subr.bf16.mxu1 %v4901_v48 }
 0x1a1   :  { %1430 = vmatpush1.bf16.msra.mxu0 %v4903_v49  ;;  %1471 = vmatpush1.bf16.msra.mxu1 %v4905_v50 }
 0x1a2   :  { %1431 = vmatprep.subr.bf16.mxu0 %v4911_v51  ;;  %1472 = vmatprep.subr.bf16.mxu1 %v4913_v52 }
 0x1a5   :  { %1432 = vmatpush1.bf16.msra.mxu0 %v4915_v53  ;;  %1473 = vmatpush1.bf16.msra.mxu1 %v4917_v54 }
 0x1a6   :  { %1433 = vmatprep.subr.bf16.mxu0 %v4919_v55  ;;  %1474 = vmatprep.subr.bf16.mxu1 %v4923_v56 }
 0x1a9   :  { %1434 = vmatpush1.bf16.msra.mxu0 %v4927_v57  ;;  %1475 = vmatpush1.bf16.msra.mxu1 %v4929_v58 }
 0x1aa   :  { %1435 = vmatprep.subr.bf16.mxu0 %v4933_v59  ;;  %1476 = vmatprep.subr.bf16.mxu1 %v4935_v60 }
 0x1ad   :  { %1436 = vmatpush1.bf16.msra.mxu0 %v4939_v61  ;;  %1477 = vmatpush1.bf16.msra.mxu1 %v4941_v62 }
 0x1ae   :  { %1437 = vmatprep.subr.bf16.mxu0 %v4945_v63  ;;  %1478 = vmatprep.subr.bf16.mxu1 %v4947_v1 }
 0x1b1   :  { %1438 = vmatpush1.bf16.msra.mxu0 %v4951_v2  ;;  %1479 = vmatpush1.bf16.msra.mxu1 %v4953_v3 }
 0x1b2   :  { %1439 = vmatprep.subr.bf16.mxu0 %v4957_v4  ;;  %1480 = vmatprep.subr.bf16.mxu1 %v4959_v5 }
 0x1b5   :  { %1440 = vmatpush2.bf16.msra.mxu0 %v4963_v6  ;;  %1481 = vmatpush2.bf16.msra.mxu1 %v4965_v7 }
 0x1b6   :  { %1441 = vmatprep.subr.bf16.mxu0 %v4969_v8  ;;  %1482 = vmatprep.subr.bf16.mxu1 %v4971_v9 }
 0x1b9   :  { %1442 = vmatpush2.bf16.msra.mxu0 %v4975_v10  ;;  %1483 = vmatpush2.bf16.msra.mxu1 %v4977_v11 }
 0x1ba   :  { %1443 = vmatprep.subr.bf16.mxu0 %v4981_v12  ;;  %1484 = vmatprep.subr.bf16.mxu1 %v4983_v13 }
 0x1bd   :  { %1444 = vmatpush2.bf16.msra.mxu0 %v4987_v14  ;;  %1485 = vmatpush2.bf16.msra.mxu1 %v4989_v15  ;;  %v6728_v14 = vld [vmem:[#allocation38_spill] sm:$0xff]  ;;  %v6729_v15 = vld [vmem:[#allocation39_spill] sm:$0xff] }
 0x1be   :  { %1445 = vmatprep.subr.bf16.mxu0 %v4993_v16  ;;  %1486 = vmatprep.subr.bf16.mxu1 %v4995_v17  ;;  %v6730_v16 = vld [vmem:[#allocation40_spill] sm:$0xff]  ;;  %v6731_v17 = vld [vmem:[#allocation41_spill] sm:$0xff] }
 0x1c1   :  { %1446 = vmatpush2.bf16.msra.mxu0 %v4999_v18  ;;  %1487 = vmatpush2.bf16.msra.mxu1 %v5001_v19  ;;  %v6732_v18 = vld [vmem:[#allocation42_spill] sm:$0xff]  ;;  %v6733_v19 = vld [vmem:[#allocation43_spill] sm:$0xff] }
 0x1c2   :  { %1447 = vmatprep.subr.bf16.mxu0 %v6723_v35  ;;  %1488 = vmatprep.subr.bf16.mxu1 %v6724_v36  ;;  %v6734_v35 = vld [vmem:[#allocation44_spill] sm:$0xff]  ;;  %v6735_v36 = vld [vmem:[#allocation45_spill] sm:$0xff] }
 0x1c5   :  { %1448 = vmatpush2.bf16.msra.mxu0 %v6725_v37  ;;  %1489 = vmatpush2.bf16.msra.mxu1 %v6726_v38  ;;  %v6736_v37 = vld [vmem:[#allocation46_spill] sm:$0xff]  ;;  %v6737_v38 = vld [vmem:[#allocation47_spill] sm:$0xff] }
 0x1c6   :  { %1449 = vmatprep.subr.bf16.mxu0 %v6727_v33  ;;  %1490 = vmatprep.subr.bf16.mxu1 %v6728_v14  ;;  %v6738_v33 = vld [vmem:[#allocation48_spill] sm:$0xff]  ;;  %v6739_v14 = vld [vmem:[#allocation49_spill] sm:$0xff] }
 0x1c9   :  { %1450 = vmatpush2.bf16.msra.mxu0 %v6729_v15  ;;  %1491 = vmatpush2.bf16.msra.mxu1 %v6730_v16  ;;  %v6740_v15 = vld [vmem:[#allocation50_spill] sm:$0xff]  ;;  %v4803_v16 = vmov 1966171168  }
 0x1ca   :  { %1451 = vmatprep.subr.bf16.mxu0 %v6731_v17  ;;  %1492 = vmatprep.subr.bf16.mxu1 %v6732_v18  ;;  %v1342_v17 = vunpack.c.l.s4 %v4803_v16 }
 0x1cc   :  { %v1343_v13 = vunpack.c.0.s8 %v1342_v17 }
 0x1cd   :  { %1452 = vmatpush2.bf16.msra.mxu0 %v6733_v19  ;;  %1493 = vmatpush2.bf16.msra.mxu1 %v6734_v35 }
 0x1ce   :  { %1453 = vmatprep.subr.bf16.mxu0 %v6735_v36  ;;  %1494 = vmatprep.subr.bf16.mxu1 %v6736_v37  ;;  %v5333_v19 = vsub.s32 %v1343_v13, %v5064_v23 }
 0x1d1   :  { %1454 = vmatpush2.bf16.msra.mxu0 %v6737_v38  ;;  %1495 = vmatpush2.bf16.msra.mxu1 %v6738_v33 }
 0x1d2   :  { %1505 = vmatprep.subr.bf16.mxu0 %v6739_v14  ;;  %1546 = vmatprep.subr.bf16.mxu1 %v6740_v15 }
 0x214   :  { %v1199_v18 = vpop.f32.mrf.mxu0  ;;  %v1240_v12 = vpop.f32.mrf.mxu1 }
 0x216   :  { %v1201_v35 = vpop.f32.mrf.mxu0  ;;  %v1242_v36 = vpop.f32.mrf.mxu1 }
 0x217   :  { %v1337_v11 = vcombine.low %v1199_v18, %v1201_v35  ;;  %v1338_v37 = vcombine.low %v1240_v12, %v1242_v36  ;;  %v382_v36 = vld [vmem:[#allocation2 + $0x1] ss:$8 sm:$0xf0] }
 0x218   :  { %v1203_v10 = vpop.f32.mrf.mxu0  ;;  %v1244_v38 = vpop.f32.mrf.mxu1 }
 0x219   :  { %v1347_v33 = vrot.slane %v1337_v11, %v5333_v19  ;;  %v1354_v14 = vrot.slane %v1338_v37, %v5333_v19 }
 0x21a   :  { %v1204_v9 = vpop.f32.mrf.mxu0  ;;  %v1245_v15 = vpop.f32.mrf.mxu1 }
 0x21b   :  { %v1369_v8 = vcombine.low %v1347_v33, %v1354_v14  ;;  %v381_v15 = vld [vmem:[#allocation2 + $0x1] ss:$8 sm:$0xf] }
 0x21c   :  { %v383_v37 = vor.u32 %v382_v36, %v381_v15  ;;  %v6742_v15 = vld [vmem:[#allocation52_spill] sm:$0xff] }
 0x21d   :  { %v1377_v9 = vrot.slane %v1369_v8, %v5333_v19 }
 0x254   :  { %v1281_v16 = vpop.f32.mrf.mxu0  ;;  %v1322_v17 = vpop.f32.mrf.mxu1 }
 0x256   :  { %v1283_v7 = vpop.f32.mrf.mxu0  ;;  %v1324_v6 = vpop.f32.mrf.mxu1 }
 0x257   :  { %v1339_v5 = vcombine.low %v1281_v16, %v1283_v7  ;;  %v1340_v13 = vcombine.low %v1322_v17, %v1324_v6 }
 0x258   :  { %v1285_v23 = vpop.f32.mrf.mxu0  ;;  %v1326_v4 = vpop.f32.mrf.mxu1 }
 0x259   :  { %v1361_v18 = vrot.slane %v1339_v5, %v5333_v19  ;;  %v1368_v10 = vrot.slane %v1340_v13, %v5333_v19 }
 0x25a   :  { %v1286_v12 = vpop.f32.mrf.mxu0  ;;  %v1327_v35 = vpop.f32.mrf.mxu1 }
 0x25b   :  { %v1370_v11 = vcombine.low %v1361_v18, %v1368_v10 }
 0x25d   :  { %v1384_v14 = vrot.slane %v1370_v11, %v5333_v19 }
 0x25f   :  { %v1385_v38 = vcombine.low %v1377_v9, %v1384_v14 }
 0x261   :  { %v1387_v33 = vadd.f32 %v1385_v38, %v383_v37  ;;  %v6743_v37 = vld [vmem:[#allocation53_spill] sm:$0xff]  ;;  %v6744_v38 = vld [vmem:[#allocation54_spill] sm:$0xff] }
 0x263   :  { %v1388_v7 = vmul.f32 0.5, %v1387_v33  ;;  %v1393_v6 = vrot.slane %v1387_v33, 6  ;;  %v6745_v33 = vld [vmem:[#allocation55_spill] sm:$0xff] }
 0x265   :  { %4363 = vtanh.f32 %v1388_v7  ;;  %v6746_v7 = vld [vmem:[#allocation56_spill] sm:$0xff] }
 0x266   :  { %4365 = vtanh.f32 %v1393_v6  ;;  %v6747_v6 = vld [vmem:[#allocation57_spill] sm:$0xff] }
 0x272   :  { %v4364_v4 = vpop.eup %4363 }
 0x273   :  { %v1390_v5 = vadd.f32 1.0, %v4364_v4  ;;  %v4366_v13 = vpop.eup %4365  ;;  %v6748_v4 = vld [vmem:[#allocation58_spill] sm:$0xff] }
 0x275   :  { %v1391_v16 = vmul.f32 0.5, %v1390_v5  ;;  %v6749_v5 = vld [vmem:[#allocation59_spill] sm:$0xff] }
 0x277   :  { %v1397_v17 = vrot.slane %v1391_v16, 2  ;;  %v1400_v18 = vmul.f32 %v4366_v13, %v1391_v16  ;;  %v1403_v8 = vrot.slane %v1391_v16, 4  ;;  %v6750_v16 = vld [vmem:[#allocation60_spill] sm:$0xff]  ;;  %v6752_v13 = vld [vmem:[#allocation62_spill] sm:$0xff] }
 0x279   :  { %v1399_v23 = vmul.f32 %v1397_v17, %v5061_v24  ;;  %v6741_v24 = vld [vmem:[#allocation51_spill] sm:$0xff]  ;;  %v6751_v17 = vld [vmem:[#allocation61_spill] sm:$0xff] }
 0x27b   :  { %v5342_v10 = vadd.f32 %v1400_v18, %v1399_v23  ;;  %v6753_v23 = vld [vmem:[#allocation63_spill] sm:$0xff]  ;;  %v6754_v18 = vld [vmem:[#allocation64_spill] sm:$0xff] }
 0x27d   :  { %4367 = vtanh.f32 %v5342_v10 }
 0x28a   :  { %v4368_v12 = vpop.eup %4367 }
 0x28b   :  { %v1405_v35 = vmul.f32 %v4368_v12, %v1403_v8  ;;  %v6755_v8 = vld [vmem:[#allocation65_spill] sm:$0xff]  ;;  %v6756_v12 = vld [vmem:[#allocation66_spill] sm:$0xff] }
 0x28d   :  { %v1418_v11 = vrot.slane %v1405_v35, %v5070_v29  ;;  %v1414_v36 = vrot.slane %v1405_v35, %v5067_v21  ;;  %v6757_v35 = vld [vmem:[#allocation67_spill] sm:$0xff] }
 0x28f   :  { %v1422_v9 = vpack.c.bf16 %v1418_v11, %v1418_v11  ;;  %v5347_v14 = vpack.c.bf16 %v1414_v36, %v1414_v36  ;;  %v6758_v11 = vld [vmem:[#allocation68_spill] sm:$0xff]  ;;  %v6759_v36 = vld [vmem:[#allocation69_spill] sm:$0xff] }
 0x291   :  { %1455 = vmatprep.mubr.bf16.mxu0 %v1422_v9  ;;  %1496 = vmatprep.mubr.bf16.mxu1 %v1422_v9 }
 0x292   :  { %1456 = vmatmul.mubr.bf16.vlgmr.msra.gmra.mxu0 %v5347_v14  ;;  %1497 = vmatmul.mubr.bf16.vlgmr.msra.gmra.mxu1 %v5347_v14 }
 0x293   :  { %1506 = vmatpush1.bf16.msra.mxu0 %v5076_v26  ;;  %1547 = vmatpush1.bf16.msra.mxu1 %v6741_v24 }
 0x294   :  { %1537 = vmatprep.mubr.bf16.mxu0 %v1422_v9  ;;  %1578 = vmatprep.mubr.bf16.mxu1 %v1422_v9  ;;  %v6760_v9 = vld [vmem:[#allocation70_spill] sm:$0xff] }
 0x295   :  { %1507 = vmatprep.subr.bf16.mxu0 %v5080_v0  ;;  %1548 = vmatprep.subr.bf16.mxu1 %v6742_v15 }
 0x297   :  { %1508 = vmatpush1.bf16.msra.mxu0 %v6743_v37  ;;  %1549 = vmatpush1.bf16.msra.mxu1 %v6744_v38 }
 0x298   :  { %1509 = vmatprep.subr.bf16.mxu0 %v6745_v33  ;;  %1550 = vmatprep.subr.bf16.mxu1 %v6746_v7 }
 0x29b   :  { %1510 = vmatpush1.bf16.msra.mxu0 %v6747_v6  ;;  %1551 = vmatpush1.bf16.msra.mxu1 %v6748_v4 }
 0x29c   :  { %1511 = vmatprep.subr.bf16.mxu0 %v6749_v5  ;;  %1552 = vmatprep.subr.bf16.mxu1 %v6750_v16  ;;  %v6761_v16 = vld [vmem:[#allocation71_spill] sm:$0xff] }
 0x29f   :  { %1512 = vmatpush1.bf16.msra.mxu0 %v6751_v17  ;;  %1553 = vmatpush1.bf16.msra.mxu1 %v6752_v13  ;;  %v6762_v17 = vld [vmem:[#allocation72_spill] sm:$0xff]  ;;  %v6763_v13 = vld [vmem:[#allocation73_spill] sm:$0xff] }
 0x2a0   :  { %1513 = vmatprep.subr.bf16.mxu0 %v6753_v23  ;;  %1554 = vmatprep.subr.bf16.mxu1 %v6754_v18  ;;  %v6764_v23 = vld [vmem:[#allocation74_spill] sm:$0xff]  ;;  %v6765_v18 = vld [vmem:[#allocation75_spill] sm:$0xff] }
 0x2a3   :  { %1514 = vmatpush1.bf16.msra.mxu0 %v6755_v8  ;;  %1555 = vmatpush1.bf16.msra.mxu1 %v6756_v12  ;;  %v6766_v8 = vld [vmem:[#allocation76_spill] sm:$0xff]  ;;  %v6767_v12 = vld [vmem:[#allocation77_spill] sm:$0xff] }
 0x2a4   :  { %1515 = vmatprep.subr.bf16.mxu0 %v6757_v35  ;;  %1556 = vmatprep.subr.bf16.mxu1 %v6758_v11  ;;  %v6768_v35 = vld [vmem:[#allocation78_spill] sm:$0xff]  ;;  %v6769_v11 = vld [vmem:[#allocation79_spill] sm:$0xff] }
 0x2a7   :  { %1516 = vmatpush1.bf16.msra.mxu0 %v6759_v36  ;;  %1557 = vmatpush1.bf16.msra.mxu1 %v6760_v9  ;;  %v6770_v36 = vld [vmem:[#allocation80_spill] sm:$0xff]  ;;  %v6771_v9 = vld [vmem:[#allocation81_spill] sm:$0xff] }
 0x2a8   :  { %1517 = vmatprep.subr.bf16.mxu0 %v6761_v16  ;;  %1558 = vmatprep.subr.bf16.mxu1 %v6762_v17  ;;  %v6772_v16 = vld [vmem:[#allocation82_spill] sm:$0xff]  ;;  %v6773_v17 = vld [vmem:[#allocation83_spill] sm:$0xff] }
 0x2ab   :  { %1518 = vmatpush1.bf16.msra.mxu0 %v6763_v13  ;;  %1559 = vmatpush1.bf16.msra.mxu1 %v6764_v23  ;;  %v6774_v13 = vld [vmem:[#allocation84_spill] sm:$0xff]  ;;  %v6775_v23 = vld [vmem:[#allocation85_spill] sm:$0xff] }
 0x2ac   :  { %1519 = vmatprep.subr.bf16.mxu0 %v6765_v18  ;;  %1560 = vmatprep.subr.bf16.mxu1 %v6766_v8  ;;  %v6776_v18 = vld [vmem:[#allocation86_spill] sm:$0xff]  ;;  %v6777_v8 = vld [vmem:[#allocation87_spill] sm:$0xff] }
 0x2af   :  { %1520 = vmatpush1.bf16.msra.mxu0 %v6767_v12  ;;  %1561 = vmatpush1.bf16.msra.mxu1 %v6768_v35  ;;  %v6778_v12 = vld [vmem:[#allocation88_spill] sm:$0xff]  ;;  %v6779_v35 = vld [vmem:[#allocation89_spill] sm:$0xff] }
 0x2b0   :  { %1521 = vmatprep.subr.bf16.mxu0 %v6769_v11  ;;  %1562 = vmatprep.subr.bf16.mxu1 %v6770_v36  ;;  %v6780_v11 = vld [vmem:[#allocation90_spill] sm:$0xff]  ;;  %v6781_v36 = vld [vmem:[#allocation91_spill] sm:$0xff] }
 0x2b3   :  { %1522 = vmatpush2.bf16.msra.mxu0 %v6771_v9  ;;  %1563 = vmatpush2.bf16.msra.mxu1 %v6772_v16  ;;  %v6782_v9 = vld [vmem:[#allocation92_spill] sm:$0xff]  ;;  %v6783_v16 = vld [vmem:[#allocation93_spill] sm:$0xff] }
 0x2b4   :  { %1523 = vmatprep.subr.bf16.mxu0 %v6773_v17  ;;  %1564 = vmatprep.subr.bf16.mxu1 %v6774_v13  ;;  %v6784_v17 = vld [vmem:[#allocation94_spill] sm:$0xff]  ;;  %v6785_v13 = vld [vmem:[#allocation95_spill] sm:$0xff] }
 0x2b7   :  { %1524 = vmatpush2.bf16.msra.mxu0 %v6775_v23  ;;  %1565 = vmatpush2.bf16.msra.mxu1 %v6776_v18  ;;  %v6786_v23 = vld [vmem:[#allocation96_spill] sm:$0xff]  ;;  %v6787_v18 = vld [vmem:[#allocation97_spill] sm:$0xff] }
 0x2b8   :  { %1525 = vmatprep.subr.bf16.mxu0 %v6777_v8  ;;  %1566 = vmatprep.subr.bf16.mxu1 %v6778_v12  ;;  %v6788_v8 = vld [vmem:[#allocation98_spill] sm:$0xff]  ;;  %v6789_v12 = vld [vmem:[#allocation99_spill] sm:$0xff] }
 0x2bb   :  { %1526 = vmatpush2.bf16.msra.mxu0 %v6779_v35  ;;  %1567 = vmatpush2.bf16.msra.mxu1 %v6780_v11  ;;  %v6790_v35 = vld [vmem:[#allocation100_spill] sm:$0xff]  ;;  %v6791_v11 = vld [vmem:[#allocation101_spill] sm:$0xff] }
 0x2bc   :  { %1527 = vmatprep.subr.bf16.mxu0 %v6781_v36  ;;  %1568 = vmatprep.subr.bf16.mxu1 %v6782_v9 }
 0x2bf   :  { %1528 = vmatpush2.bf16.msra.mxu0 %v6783_v16  ;;  %1569 = vmatpush2.bf16.msra.mxu1 %v6784_v17 }
 0x2c0   :  { %1529 = vmatprep.subr.bf16.mxu0 %v6785_v13  ;;  %1570 = vmatprep.subr.bf16.mxu1 %v6786_v23 }
 0x2c3   :  { %1530 = vmatpush2.bf16.msra.mxu0 %v6787_v18  ;;  %1571 = vmatpush2.bf16.msra.mxu1 %v6788_v8 }
 0x2c4   :  { %1531 = vmatprep.subr.bf16.mxu0 %v6789_v12  ;;  %1572 = vmatprep.subr.bf16.mxu1 %v6790_v35  ;;  %v5413_v35 = vld [vmem:[#allocation11 + $0x2dc] ss:$52 sps:$4 sm:$0xff]  }
 0x2c7   :  { %1532 = vmatpush2.bf16.msra.mxu0 %v6791_v11  ;;  %1573 = vmatpush2.bf16.msra.mxu1 %v5234_v30  ;;  %v5416_v30 = vld [vmem:[#allocation11 + $0x2e4] ss:$52 sps:$4 sm:$0xff]  }
 0x2c8   :  { %1533 = vmatprep.subr.bf16.mxu0 %v5238_v27  ;;  %1574 = vmatprep.subr.bf16.mxu1 %v5240_v32 }
 0x2cb   :  { %1534 = vmatpush2.bf16.msra.mxu0 %v5244_v25  ;;  %1575 = vmatpush2.bf16.msra.mxu1 %v5246_v34  ;;  %v5421_v34 = vld [vmem:[#allocation11 + $0x2d8] ss:$52 sps:$4 sm:$0xff]  }
 0x2cc   :  { %1535 = vmatprep.subr.bf16.mxu0 %v5250_v22  ;;  %1576 = vmatprep.subr.bf16.mxu1 %v5252_v28  ;;  %v5424_v28 = vld [vmem:[#allocation11 + $0x2e0] ss:$52 sps:$4 sm:$0xff]  }
 0x2cf   :  { %1536 = vmatpush2.bf16.msra.mxu0 %v5256_v20  ;;  %1577 = vmatpush2.bf16.msra.mxu1 %v5258_v31 }
 0x2d0   :  { %1681 = vmatprep.subr.bf16.mxu0 %v5413_v35  ;;  %1722 = vmatprep.subr.bf16.mxu1 %v5416_v30 }
 0x2d2   :  { %1538 = vmatmul.mubr.bf16.vlgmr.msra.gmra.mxu0 %v5347_v14  ;;  %1579 = vmatmul.mubr.bf16.vlgmr.msra.gmra.mxu1 %v5347_v14  ;;  %v6820_v14 = vld [vmem:[#allocation45_spill] sm:$0xff] }
 0x2d3   :  { %1682 = vmatpush1.bf16.msra.mxu0 %v5421_v34  ;;  %1723 = vmatpush1.bf16.msra.mxu1 %v5424_v28 }
 0x2d4   :  { %1683 = vmatprep.subr.bf16.mxu0 %v4875_v39  ;;  %1724 = vmatprep.subr.bf16.mxu1 %v4877_v40  ;;  %v6792_v39 = vld [vmem:[#allocation17_spill] sm:$0xff]  ;;  %v6793_v40 = vld [vmem:[#allocation18_spill] sm:$0xff] }
 0x2d7   :  { %1684 = vmatpush1.bf16.msra.mxu0 %v4879_v41  ;;  %1725 = vmatpush1.bf16.msra.mxu1 %v4881_v42  ;;  %v6794_v41 = vld [vmem:[#allocation19_spill] sm:$0xff]  ;;  %v6795_v42 = vld [vmem:[#allocation20_spill] sm:$0xff] }
 0x2d8   :  { %1685 = vmatprep.subr.bf16.mxu0 %v4887_v43  ;;  %1726 = vmatprep.subr.bf16.mxu1 %v4889_v44  ;;  %v6796_v43 = vld [vmem:[#allocation21_spill] sm:$0xff]  ;;  %v6797_v44 = vld [vmem:[#allocation22_spill] sm:$0xff] }
 0x2db   :  { %1686 = vmatpush1.bf16.msra.mxu0 %v4891_v45  ;;  %1727 = vmatpush1.bf16.msra.mxu1 %v4893_v46  ;;  %v6798_v45 = vld [vmem:[#allocation23_spill] sm:$0xff]  ;;  %v6799_v46 = vld [vmem:[#allocation24_spill] sm:$0xff] }
 0x2dc   :  { %1687 = vmatprep.subr.bf16.mxu0 %v4899_v47  ;;  %1728 = vmatprep.subr.bf16.mxu1 %v4901_v48  ;;  %v6800_v47 = vld [vmem:[#allocation25_spill] sm:$0xff]  ;;  %v6801_v48 = vld [vmem:[#allocation26_spill] sm:$0xff] }
 0x2df   :  { %1688 = vmatpush1.bf16.msra.mxu0 %v4903_v49  ;;  %1729 = vmatpush1.bf16.msra.mxu1 %v4905_v50  ;;  %v6802_v49 = vld [vmem:[#allocation27_spill] sm:$0xff]  ;;  %v6803_v50 = vld [vmem:[#allocation28_spill] sm:$0xff] }
 0x2e0   :  { %1689 = vmatprep.subr.bf16.mxu0 %v4911_v51  ;;  %1730 = vmatprep.subr.bf16.mxu1 %v4913_v52  ;;  %v6804_v51 = vld [vmem:[#allocation29_spill] sm:$0xff]  ;;  %v6805_v52 = vld [vmem:[#allocation30_spill] sm:$0xff] }
 0x2e3   :  { %1690 = vmatpush1.bf16.msra.mxu0 %v4915_v53  ;;  %1731 = vmatpush1.bf16.msra.mxu1 %v4917_v54  ;;  %v6806_v53 = vld [vmem:[#allocation31_spill] sm:$0xff]  ;;  %v6807_v54 = vld [vmem:[#allocation32_spill] sm:$0xff] }
 0x2e4   :  { %1691 = vmatprep.subr.bf16.mxu0 %v4919_v55  ;;  %1732 = vmatprep.subr.bf16.mxu1 %v4923_v56  ;;  %v6808_v55 = vld [vmem:[#allocation33_spill] sm:$0xff]  ;;  %v6809_v56 = vld [vmem:[#allocation34_spill] sm:$0xff] }
 0x2e7   :  { %1692 = vmatpush1.bf16.msra.mxu0 %v4927_v57  ;;  %1733 = vmatpush1.bf16.msra.mxu1 %v4929_v58  ;;  %v6810_v57 = vld [vmem:[#allocation35_spill] sm:$0xff]  ;;  %v6811_v58 = vld [vmem:[#allocation36_spill] sm:$0xff] }
 0x2e8   :  { %1693 = vmatprep.subr.bf16.mxu0 %v4933_v59  ;;  %1734 = vmatprep.subr.bf16.mxu1 %v4935_v60  ;;  %v6812_v59 = vld [vmem:[#allocation37_spill] sm:$0xff]  ;;  %v6813_v60 = vld [vmem:[#allocation38_spill] sm:$0xff] }
 0x2eb   :  { %1694 = vmatpush1.bf16.msra.mxu0 %v4939_v61  ;;  %1735 = vmatpush1.bf16.msra.mxu1 %v4941_v62  ;;  %v6814_v61 = vld [vmem:[#allocation39_spill] sm:$0xff]  ;;  %v6815_v62 = vld [vmem:[#allocation40_spill] sm:$0xff] }
 0x2ec   :  { %1695 = vmatprep.subr.bf16.mxu0 %v4945_v63  ;;  %1736 = vmatprep.subr.bf16.mxu1 %v4947_v1  ;;  %v6816_v63 = vld [vmem:[#allocation41_spill] sm:$0xff]  ;;  %v6817_v1 = vld [vmem:[#allocation42_spill] sm:$0xff] }
 0x2ef   :  { %1696 = vmatpush1.bf16.msra.mxu0 %v4951_v2  ;;  %1737 = vmatpush1.bf16.msra.mxu1 %v4953_v3  ;;  %v6818_v2 = vld [vmem:[#allocation43_spill] sm:$0xff]  ;;  %v6819_v3 = vld [vmem:[#allocation44_spill] sm:$0xff] }
 0x2f0   :  { %1697 = vmatprep.subr.bf16.mxu0 %v6792_v39  ;;  %1738 = vmatprep.subr.bf16.mxu1 %v6793_v40  ;;  %v6821_v39 = vld [vmem:[#allocation46_spill] sm:$0xff]  ;;  %v6822_v40 = vld [vmem:[#allocation47_spill] sm:$0xff] }
 0x2f3   :  { %1698 = vmatpush2.bf16.msra.mxu0 %v6794_v41  ;;  %1739 = vmatpush2.bf16.msra.mxu1 %v6795_v42  ;;  %v6823_v41 = vld [vmem:[#allocation48_spill] sm:$0xff]  ;;  %v6824_v42 = vld [vmem:[#allocation49_spill] sm:$0xff] }
 0x2f4   :  { %1699 = vmatprep.subr.bf16.mxu0 %v6796_v43  ;;  %1740 = vmatprep.subr.bf16.mxu1 %v6797_v44  ;;  %v6825_v43 = vld [vmem:[#allocation50_spill] sm:$0xff] }
 0x2f7   :  { %1700 = vmatpush2.bf16.msra.mxu0 %v6798_v45  ;;  %1741 = vmatpush2.bf16.msra.mxu1 %v6799_v46 }
 0x2f8   :  { %1701 = vmatprep.subr.bf16.mxu0 %v6800_v47  ;;  %1742 = vmatprep.subr.bf16.mxu1 %v6801_v48 }
 0x2fb   :  { %1702 = vmatpush2.bf16.msra.mxu0 %v6802_v49  ;;  %1743 = vmatpush2.bf16.msra.mxu1 %v6803_v50 }
 0x2fc   :  { %1703 = vmatprep.subr.bf16.mxu0 %v6804_v51  ;;  %1744 = vmatprep.subr.bf16.mxu1 %v6805_v52 }
 0x2ff   :  { %1704 = vmatpush2.bf16.msra.mxu0 %v6806_v53  ;;  %1745 = vmatpush2.bf16.msra.mxu1 %v6807_v54 }
 0x300   :  { %1705 = vmatprep.subr.bf16.mxu0 %v6808_v55  ;;  %1746 = vmatprep.subr.bf16.mxu1 %v6809_v56 }
 0x303   :  { %1706 = vmatpush2.bf16.msra.mxu0 %v6810_v57  ;;  %1747 = vmatpush2.bf16.msra.mxu1 %v6811_v58 }
 0x304   :  { %1707 = vmatprep.subr.bf16.mxu0 %v6812_v59  ;;  %1748 = vmatprep.subr.bf16.mxu1 %v6813_v60 }
 0x307   :  { %1708 = vmatpush2.bf16.msra.mxu0 %v6814_v61  ;;  %1749 = vmatpush2.bf16.msra.mxu1 %v6815_v62 }
 0x308   :  { %1709 = vmatprep.subr.bf16.mxu0 %v6816_v63  ;;  %1750 = vmatprep.subr.bf16.mxu1 %v6817_v1 }
 0x30b   :  { %1710 = vmatpush2.bf16.msra.mxu0 %v6818_v2  ;;  %1751 = vmatpush2.bf16.msra.mxu1 %v6819_v3 }
 0x30c   :  { %1711 = vmatprep.subr.bf16.mxu0 %v6820_v14  ;;  %1752 = vmatprep.subr.bf16.mxu1 %v6821_v39 }
 0x30f   :  { %1712 = vmatpush2.bf16.msra.mxu0 %v6822_v40  ;;  %1753 = vmatpush2.bf16.msra.mxu1 %v6823_v41  ;;  %v1408_v41 = vld [vmem:[#allocation2 + $0x2] ss:$8 sm:$0xf0] }
 0x310   :  { %1763 = vmatprep.subr.bf16.mxu0 %v6824_v42  ;;  %1804 = vmatprep.subr.bf16.mxu1 %v6825_v43 }
 0x352   :  { %v1457_v44 = vpop.f32.mrf.mxu0  ;;  %v1498_v45 = vpop.f32.mrf.mxu1 }
 0x354   :  { %v1459_v46 = vpop.f32.mrf.mxu0  ;;  %v1500_v47 = vpop.f32.mrf.mxu1 }
 0x355   :  { %v1595_v48 = vcombine.low %v1457_v44, %v1459_v46  ;;  %v1596_v49 = vcombine.low %v1498_v45, %v1500_v47  ;;  %v1407_v44 = vld [vmem:[#allocation2 + $0x2] ss:$8 sm:$0xf] }
 0x356   :  { %v1461_v50 = vpop.f32.mrf.mxu0  ;;  %v1502_v51 = vpop.f32.mrf.mxu1  ;;  %v1409_v45 = vor.u32 %v1408_v41, %v1407_v44  ;;  %v6843_v41 = vld [vmem:[#allocation77_spill] sm:$0xff]  ;;  %v6846_v44 = vld [vmem:[#allocation80_spill] sm:$0xff] }
 0x357   :  { %v1605_v52 = vrot.slane %v1595_v48, %v5333_v19  ;;  %v1612_v53 = vrot.slane %v1596_v49, %v5333_v19 }
 0x358   :  { %v1462_v54 = vpop.f32.mrf.mxu0  ;;  %v1503_v55 = vpop.f32.mrf.mxu1 }
 0x359   :  { %v1627_v56 = vcombine.low %v1605_v52, %v1612_v53 }
 0x35b   :  { %v1635_v42 = vrot.slane %v1627_v56, %v5333_v19 }
 0x392   :  { %v1539_v57 = vpop.f32.mrf.mxu0  ;;  %v1580_v58 = vpop.f32.mrf.mxu1 }
 0x394   :  { %v1541_v59 = vpop.f32.mrf.mxu0  ;;  %v1582_v60 = vpop.f32.mrf.mxu1 }
 0x395   :  { %v1597_v61 = vcombine.low %v1539_v57, %v1541_v59  ;;  %v1598_v62 = vcombine.low %v1580_v58, %v1582_v60 }
 0x396   :  { %v1543_v63 = vpop.f32.mrf.mxu0  ;;  %v1584_v1 = vpop.f32.mrf.mxu1 }
 0x397   :  { %v1619_v2 = vrot.slane %v1597_v61, %v5333_v19  ;;  %v1626_v3 = vrot.slane %v1598_v62, %v5333_v19 }
 0x398   :  { %v1544_v14 = vpop.f32.mrf.mxu0  ;;  %v1585_v39 = vpop.f32.mrf.mxu1 }
 0x399   :  { %v1628_v40 = vcombine.low %v1619_v2, %v1626_v3  ;;  %v6838_v2 = vld [vmem:[#allocation72_spill] sm:$0xff]  ;;  %v6839_v3 = vld [vmem:[#allocation73_spill] sm:$0xff]  ;;  %v6840_v14 = vld [vmem:[#allocation74_spill] sm:$0xff] }
 0x39a   :  { %v6841_v39 = vld [vmem:[#allocation75_spill] sm:$0xff] }
 0x39b   :  { %v1642_v43 = vrot.slane %v1628_v40, %v5333_v19  ;;  %v6842_v40 = vld [vmem:[#allocation76_spill] sm:$0xff] }
 0x39d   :  { %v1643_v46 = vcombine.low %v1635_v42, %v1642_v43  ;;  %v6844_v42 = vld [vmem:[#allocation78_spill] sm:$0xff]  ;;  %v6845_v43 = vld [vmem:[#allocation79_spill] sm:$0xff] }
 0x39f   :  { %v1645_v47 = vadd.f32 %v1643_v46, %v1409_v45  ;;  %v6847_v45 = vld [vmem:[#allocation81_spill] sm:$0xff]  ;;  %v6848_v46 = vld [vmem:[#allocation82_spill] sm:$0xff] }
 0x3a1   :  { %v1646_v48 = vmul.f32 0.5, %v1645_v47  ;;  %v1651_v49 = vrot.slane %v1645_v47, 6  ;;  %v6849_v47 = vld [vmem:[#allocation83_spill] sm:$0xff] }
 0x3a3   :  { %4369 = vtanh.f32 %v1646_v48  ;;  %v6850_v48 = vld [vmem:[#allocation84_spill] sm:$0xff] }
 0x3a4   :  { %4371 = vtanh.f32 %v1651_v49  ;;  %v6851_v49 = vld [vmem:[#allocation85_spill] sm:$0xff] }
 0x3b0   :  { %v4370_v50 = vpop.eup %4369 }
 0x3b1   :  { %v1648_v51 = vadd.f32 1.0, %v4370_v50  ;;  %v4372_v54 = vpop.eup %4371  ;;  %v6852_v50 = vld [vmem:[#allocation86_spill] sm:$0xff] }
 0x3b3   :  { %v1649_v52 = vmul.f32 0.5, %v1648_v51  ;;  %v6853_v51 = vld [vmem:[#allocation87_spill] sm:$0xff] }
 0x3b5   :  { %v1655_v53 = vrot.slane %v1649_v52, 2  ;;  %v1658_v57 = vmul.f32 %v4372_v54, %v1649_v52  ;;  %v1661_v56 = vrot.slane %v1649_v52, 4  ;;  %v6854_v52 = vld [vmem:[#allocation88_spill] sm:$0xff]  ;;  %v6856_v54 = vld [vmem:[#allocation90_spill] sm:$0xff] }
 0x3b7   :  { %v1657_v55 = vmul.f32 %v1655_v53, %v5342_v10  ;;  %v6827_v10 = vld [vmem:[#allocation61_spill] sm:$0xff] }
 0x3b8   :  { %v6855_v53 = vld [vmem:[#allocation89_spill] sm:$0xff] }
 0x3b9   :  { %v5496_v58 = vadd.f32 %v1658_v57, %v1657_v55  ;;  %v6857_v55 = vld [vmem:[#allocation100_spill] sm:$0xff] }
 0x3ba   :  { %v5612_v57 = vld [vmem:[#allocation11 + $0x144] ss:$52 sps:$4 sm:$0xff]  }
 0x3bb   :  { %4373 = vtanh.f32 %v5496_v58 }
 0x3c8   :  { %v4374_v59 = vpop.eup %4373 }
 0x3c9   :  { %v1663_v60 = vmul.f32 %v4374_v59, %v1661_v56  ;;  %v5615_v56 = vld [vmem:[#allocation11 + $0x138] ss:$52 sps:$4 sm:$0xff]   ;;  %v5618_v59 = vld [vmem:[#allocation11 + $0x140] ss:$52 sps:$4 sm:$0xff]  }
 0x3cb   :  { %v1676_v61 = vrot.slane %v1663_v60, %v5070_v29  ;;  %v1672_v62 = vrot.slane %v1663_v60, %v5067_v21  ;;  %v5621_v60 = vld [vmem:[#allocation11 + $0xd4] ss:$52 sps:$4 sm:$0xff]  }
 0x3cd   :  { %v1680_v63 = vpack.c.bf16 %v1676_v61, %v1676_v61  ;;  %v5501_v1 = vpack.c.bf16 %v1672_v62, %v1672_v62  ;;  %v5624_v61 = vld [vmem:[#allocation11 + $0xdc] ss:$52 sps:$4 sm:$0xff]  }
 0x3ce   :  { %v5627_v62 = vld [vmem:[#allocation11 + $0xd0] ss:$52 sps:$4 sm:$0xff]  }
 0x3cf   :  { %1713 = vmatprep.mubr.bf16.mxu0 %v1680_v63  ;;  %1754 = vmatprep.mubr.bf16.mxu1 %v1680_v63 }
 0x3d0   :  { %1714 = vmatmul.mubr.bf16.vlgmr.msra.gmra.mxu0 %v5501_v1  ;;  %1755 = vmatmul.mubr.bf16.vlgmr.msra.gmra.mxu1 %v5501_v1 }
 0x3d1   :  { %1764 = vmatpush1.bf16.msra.mxu0 %v5076_v26  ;;  %1805 = vmatpush1.bf16.msra.mxu1 %v6741_v24  ;;  %v6826_v26 = vld [vmem:[#allocation60_spill] sm:$0xff]  ;;  %v6829_v24 = vld [vmem:[#allocation63_spill] sm:$0xff] }
 0x3d2   :  { %1795 = vmatprep.mubr.bf16.mxu0 %v1680_v63  ;;  %1836 = vmatprep.mubr.bf16.mxu1 %v1680_v63  ;;  %v5630_v63 = vld [vmem:[#allocation11 + $0xd8] ss:$52 sps:$4 sm:$0xff]  }
 0x3d3   :  { %1765 = vmatprep.subr.bf16.mxu0 %v5080_v0  ;;  %1806 = vmatprep.subr.bf16.mxu1 %v6742_v15  ;;  %v6828_v0 = vld [vmem:[#allocation62_spill] sm:$0xff]  ;;  %v6830_v15 = vld [vmem:[#allocation64_spill] sm:$0xff]  ;;  %6861 = vst [vmem:[#allocation51_spill] sm:$0xff] %v5630_v63 }
 0x3d5   :  { %1766 = vmatpush1.bf16.msra.mxu0 %v6743_v37  ;;  %1807 = vmatpush1.bf16.msra.mxu1 %v6744_v38  ;;  %v6831_v37 = vld [vmem:[#allocation65_spill] sm:$0xff]  ;;  %v6832_v38 = vld [vmem:[#allocation66_spill] sm:$0xff] }
 0x3d6   :  { %1767 = vmatprep.subr.bf16.mxu0 %v6745_v33  ;;  %1808 = vmatprep.subr.bf16.mxu1 %v6746_v7  ;;  %v6833_v33 = vld [vmem:[#allocation67_spill] sm:$0xff]  ;;  %v6834_v7 = vld [vmem:[#allocation68_spill] sm:$0xff] }
 0x3d9   :  { %1768 = vmatpush1.bf16.msra.mxu0 %v6747_v6  ;;  %1809 = vmatpush1.bf16.msra.mxu1 %v6748_v4  ;;  %v6835_v6 = vld [vmem:[#allocation69_spill] sm:$0xff]  ;;  %v6836_v4 = vld [vmem:[#allocation70_spill] sm:$0xff] }
 0x3da   :  { %1769 = vmatprep.subr.bf16.mxu0 %v6749_v5  ;;  %1810 = vmatprep.subr.bf16.mxu1 %v6826_v26  ;;  %v6837_v5 = vld [vmem:[#allocation71_spill] sm:$0xff]  ;;  %v5636_v26 = vld [vmem:[#allocation11 + $0x74] ss:$52 sps:$4 sm:$0xff]  }
 0x3db   :  { %6863 = vst [vmem:[#allocation53_spill] sm:$0xff] %v5636_v26 }
 0x3dd   :  { %1770 = vmatpush1.bf16.msra.mxu0 %v6827_v10  ;;  %1811 = vmatpush1.bf16.msra.mxu1 %v6828_v0  ;;  %v5639_v10 = vld [vmem:[#allocation11 + $0x68] ss:$52 sps:$4 sm:$0xff]   ;;  %v5642_v0 = vld [vmem:[#allocation11 + $0x70] ss:$52 sps:$4 sm:$0xff]  }
 0x3de   :  { %1771 = vmatprep.subr.bf16.mxu0 %v6829_v24  ;;  %1812 = vmatprep.subr.bf16.mxu1 %v6830_v15  ;;  %6864 = vst [vmem:[#allocation54_spill] sm:$0xff] %v5639_v10  ;;  %6865 = vst [vmem:[#allocation55_spill] sm:$0xff] %v5642_v0  ;;  %v5645_v24 = vld [vmem:[#allocation11 + $0x4] ss:$52 sps:$4 sm:$0xff]   ;;  %v5648_v15 = vld [vmem:[#allocation11 + $0xc] ss:$52 sps:$4 sm:$0xff]  }
 0x3df   :  { %6866 = vst [vmem:[#allocation56_spill] sm:$0xff] %v5645_v24  ;;  %6867 = vst [vmem:[#allocation57_spill] sm:$0xff] %v5648_v15 }
 0x3e1   :  { %1772 = vmatpush1.bf16.msra.mxu0 %v6831_v37  ;;  %1813 = vmatpush1.bf16.msra.mxu1 %v6832_v38  ;;  %v5651_v37 = vld [vmem:[#allocation11] ss:$52 sps:$4 sm:$0xff]   ;;  %v5654_v38 = vld [vmem:[#allocation11 + $0x8] ss:$52 sps:$4 sm:$0xff]  }
 0x3e2   :  { %1773 = vmatprep.subr.bf16.mxu0 %v6833_v33  ;;  %1814 = vmatprep.subr.bf16.mxu1 %v6834_v7  ;;  %6868 = vst [vmem:[#allocation58_spill] sm:$0xff] %v5651_v37  ;;  %6869 = vst [vmem:[#allocation59_spill] sm:$0xff] %v5654_v38  ;;  %v5657_v33 = vld [vmem:[#allocation11 + $0x61c] ss:$52 sps:$4 sm:$0xff]   ;;  %v5660_v7 = vld [vmem:[#allocation11 + $0x624] ss:$52 sps:$4 sm:$0xff]  }
 0x3e3   :  { %6870 = vst [vmem:[#allocation91_spill] sm:$0xff] %v5657_v33  ;;  %6871 = vst [vmem:[#allocation92_spill] sm:$0xff] %v5660_v7 }
 0x3e5   :  { %1774 = vmatpush1.bf16.msra.mxu0 %v6835_v6  ;;  %1815 = vmatpush1.bf16.msra.mxu1 %v6836_v4  ;;  %v5663_v6 = vld [vmem:[#allocation11 + $0x618] ss:$52 sps:$4 sm:$0xff]   ;;  %v5666_v4 = vld [vmem:[#allocation11 + $0x620] ss:$52 sps:$4 sm:$0xff]  }
 0x3e6   :  { %1775 = vmatprep.subr.bf16.mxu0 %v6837_v5  ;;  %1816 = vmatprep.subr.bf16.mxu1 %v6838_v2  ;;  %6872 = vst [vmem:[#allocation93_spill] sm:$0xff] %v5663_v6  ;;  %6873 = vst [vmem:[#allocation94_spill] sm:$0xff] %v5666_v4  ;;  %v5669_v5 = vld [vmem:[#allocation11 + $0x5b4] ss:$52 sps:$4 sm:$0xff]   ;;  %v5672_v2 = vld [vmem:[#allocation11 + $0x5bc] ss:$52 sps:$4 sm:$0xff]  }
 0x3e7   :  { %6874 = vst [vmem:[#allocation95_spill] sm:$0xff] %v5669_v5  ;;  %6875 = vst [vmem:[#allocation96_spill] sm:$0xff] %v5672_v2 }
 0x3e9   :  { %1776 = vmatpush1.bf16.msra.mxu0 %v6839_v3  ;;  %1817 = vmatpush1.bf16.msra.mxu1 %v6840_v14  ;;  %v5675_v3 = vld [vmem:[#allocation11 + $0x5b0] ss:$52 sps:$4 sm:$0xff]   ;;  %v5678_v14 = vld [vmem:[#allocation11 + $0x5b8] ss:$52 sps:$4 sm:$0xff]  }
 0x3ea   :  { %1777 = vmatprep.subr.bf16.mxu0 %v6841_v39  ;;  %1818 = vmatprep.subr.bf16.mxu1 %v6842_v40  ;;  %6876 = vst [vmem:[#allocation97_spill] sm:$0xff] %v5675_v3  ;;  %6877 = vst [vmem:[#allocation98_spill] sm:$0xff] %v5678_v14  ;;  %v5681_v39 = vld [vmem:[#allocation11 + $0x54c] ss:$52 sps:$4 sm:$0xff]   ;;  %v5684_v40 = vld [vmem:[#allocation11 + $0x554] ss:$52 sps:$4 sm:$0xff]  }
 0x3eb   :  { %6878 = vst [vmem:[#allocation99_spill] sm:$0xff] %v5681_v39  ;;  %6879 = vst [vmem:[#allocation101_spill] sm:$0xff] %v5684_v40 }
 0x3ed   :  { %1778 = vmatpush1.bf16.msra.mxu0 %v6843_v41  ;;  %1819 = vmatpush1.bf16.msra.mxu1 %v6844_v42  ;;  %v5687_v41 = vld [vmem:[#allocation11 + $0x548] ss:$52 sps:$4 sm:$0xff]   ;;  %v5690_v42 = vld [vmem:[#allocation11 + $0x550] ss:$52 sps:$4 sm:$0xff]  }
 0x3ee   :  { %1779 = vmatprep.subr.bf16.mxu0 %v6845_v43  ;;  %1820 = vmatprep.subr.bf16.mxu1 %v6846_v44  ;;  %6880 = vst [vmem:[#allocation17_spill] sm:$0xff] %v5687_v41  ;;  %6881 = vst [vmem:[#allocation18_spill] sm:$0xff] %v5690_v42  ;;  %v5693_v43 = vld [vmem:[#allocation11 + $0x4e4] ss:$52 sps:$4 sm:$0xff]   ;;  %v5696_v44 = vld [vmem:[#allocation11 + $0x4ec] ss:$52 sps:$4 sm:$0xff]  }
 0x3ef   :  { %6882 = vst [vmem:[#allocation19_spill] sm:$0xff] %v5693_v43  ;;  %6883 = vst [vmem:[#allocation20_spill] sm:$0xff] %v5696_v44 }
 0x3f1   :  { %1780 = vmatpush2.bf16.msra.mxu0 %v6847_v45  ;;  %1821 = vmatpush2.bf16.msra.mxu1 %v6848_v46  ;;  %v5699_v45 = vld [vmem:[#allocation11 + $0x4e0] ss:$52 sps:$4 sm:$0xff]   ;;  %v5702_v46 = vld [vmem:[#allocation11 + $0x4e8] ss:$52 sps:$4 sm:$0xff]  }
 0x3f2   :  { %1781 = vmatprep.subr.bf16.mxu0 %v6849_v47  ;;  %1822 = vmatprep.subr.bf16.mxu1 %v6850_v48  ;;  %6884 = vst [vmem:[#allocation21_spill] sm:$0xff] %v5699_v45  ;;  %6885 = vst [vmem:[#allocation22_spill] sm:$0xff] %v5702_v46  ;;  %v5705_v47 = vld [vmem:[#allocation11 + $0x47c] ss:$52 sps:$4 sm:$0xff]   ;;  %v5708_v48 = vld [vmem:[#allocation11 + $0x484] ss:$52 sps:$4 sm:$0xff]  }
 0x3f3   :  { %6886 = vst [vmem:[#allocation23_spill] sm:$0xff] %v5705_v47  ;;  %6887 = vst [vmem:[#allocation24_spill] sm:$0xff] %v5708_v48 }
 0x3f5   :  { %1782 = vmatpush2.bf16.msra.mxu0 %v6851_v49  ;;  %1823 = vmatpush2.bf16.msra.mxu1 %v6852_v50  ;;  %v5711_v49 = vld [vmem:[#allocation11 + $0x478] ss:$52 sps:$4 sm:$0xff]   ;;  %v5714_v50 = vld [vmem:[#allocation11 + $0x480] ss:$52 sps:$4 sm:$0xff]  }
 0x3f6   :  { %1783 = vmatprep.subr.bf16.mxu0 %v6853_v51  ;;  %1824 = vmatprep.subr.bf16.mxu1 %v6854_v52  ;;  %6888 = vst [vmem:[#allocation25_spill] sm:$0xff] %v5711_v49  ;;  %6889 = vst [vmem:[#allocation26_spill] sm:$0xff] %v5714_v50  ;;  %v5717_v51 = vld [vmem:[#allocation11 + $0x414] ss:$52 sps:$4 sm:$0xff]   ;;  %v5720_v52 = vld [vmem:[#allocation11 + $0x41c] ss:$52 sps:$4 sm:$0xff]  }
 0x3f7   :  { %6890 = vst [vmem:[#allocation27_spill] sm:$0xff] %v5717_v51  ;;  %6891 = vst [vmem:[#allocation28_spill] sm:$0xff] %v5720_v52 }
 0x3f9   :  { %1784 = vmatpush2.bf16.msra.mxu0 %v6855_v53  ;;  %1825 = vmatpush2.bf16.msra.mxu1 %v6856_v54  ;;  %v5723_v53 = vld [vmem:[#allocation11 + $0x410] ss:$52 sps:$4 sm:$0xff]   ;;  %v5726_v54 = vld [vmem:[#allocation11 + $0x418] ss:$52 sps:$4 sm:$0xff]  }
 0x3fa   :  { %1785 = vmatprep.subr.bf16.mxu0 %v6781_v36  ;;  %1826 = vmatprep.subr.bf16.mxu1 %v6782_v9  ;;  %v6858_v36 = vld [vmem:[#allocation102_spill] sm:$0xff]  ;;  %6892 = vst [vmem:[#allocation29_spill] sm:$0xff] %v5723_v53  ;;  %6893 = vst [vmem:[#allocation30_spill] sm:$0xff] %v5726_v54 }
 0x3fb   :  { %v5609_v9 = vld [vmem:[#allocation11 + $0x13c] ss:$52 sps:$4 sm:$0xff]  }
 0x3fd   :  { %1786 = vmatpush2.bf16.msra.mxu0 %v6783_v16  ;;  %1827 = vmatpush2.bf16.msra.mxu1 %v6784_v17  ;;  %v6859_v16 = vld [vmem:[#allocation103_spill] sm:$0xff]  ;;  %v6860_v17 = vld [vmem:[#allocation104_spill] sm:$0xff] }
 0x3fe   :  { %1787 = vmatprep.subr.bf16.mxu0 %v6785_v13  ;;  %1828 = vmatprep.subr.bf16.mxu1 %v6786_v23  ;;  %v5591_v13 = vld [vmem:[#allocation11 + $0x208] ss:$52 sps:$4 sm:$0xff]   ;;  %v5594_v23 = vld [vmem:[#allocation11 + $0x210] ss:$52 sps:$4 sm:$0xff]  }
 0x401   :  { %1788 = vmatpush2.bf16.msra.mxu0 %v6787_v18  ;;  %1829 = vmatpush2.bf16.msra.mxu1 %v6788_v8  ;;  %v5597_v18 = vld [vmem:[#allocation11 + $0x1a4] ss:$52 sps:$4 sm:$0xff]   ;;  %v5600_v8 = vld [vmem:[#allocation11 + $0x1ac] ss:$52 sps:$4 sm:$0xff]  }
 0x402   :  { %1789 = vmatprep.subr.bf16.mxu0 %v6789_v12  ;;  %1830 = vmatprep.subr.bf16.mxu1 %v6857_v55  ;;  %v5603_v12 = vld [vmem:[#allocation11 + $0x1a0] ss:$52 sps:$4 sm:$0xff]  }
 0x403   :  { %v5729_v55 = vld [vmem:[#allocation11 + $0x3ac] ss:$52 sps:$4 sm:$0xff]  }
 0x404   :  { %6894 = vst [vmem:[#allocation31_spill] sm:$0xff] %v5729_v55 }
 0x405   :  { %1790 = vmatpush2.bf16.msra.mxu0 %v6791_v11  ;;  %1831 = vmatpush2.bf16.msra.mxu1 %v6858_v36  ;;  %v5606_v11 = vld [vmem:[#allocation11 + $0x1a8] ss:$52 sps:$4 sm:$0xff]  }
 0x406   :  { %1791 = vmatprep.subr.bf16.mxu0 %v5238_v27  ;;  %1832 = vmatprep.subr.bf16.mxu1 %v5240_v32  ;;  %v5585_v27 = vld [vmem:[#allocation11 + $0x20c] ss:$52 sps:$4 sm:$0xff]   ;;  %v5588_v32 = vld [vmem:[#allocation11 + $0x214] ss:$52 sps:$4 sm:$0xff]  }
 0x407   :  { %v5732_v36 = vld [vmem:[#allocation11 + $0x3b4] ss:$52 sps:$4 sm:$0xff]  }
 0x408   :  { %6895 = vst [vmem:[#allocation32_spill] sm:$0xff] %v5732_v36 }
 0x409   :  { %1792 = vmatpush2.bf16.msra.mxu0 %v5244_v25  ;;  %1833 = vmatpush2.bf16.msra.mxu1 %v6859_v16  ;;  %v5573_v25 = vld [vmem:[#allocation11 + $0x274] ss:$52 sps:$4 sm:$0xff]  }
 0x40a   :  { %1793 = vmatprep.subr.bf16.mxu0 %v5250_v22  ;;  %1834 = vmatprep.subr.bf16.mxu1 %v6860_v17  ;;  %v5576_v22 = vld [vmem:[#allocation11 + $0x27c] ss:$52 sps:$4 sm:$0xff]  }
 0x40b   :  { %v5735_v16 = vld [vmem:[#allocation11 + $0x3a8] ss:$52 sps:$4 sm:$0xff]   ;;  %v5738_v17 = vld [vmem:[#allocation11 + $0x3b0] ss:$52 sps:$4 sm:$0xff]  }
 0x40c   :  { %6896 = vst [vmem:[#allocation33_spill] sm:$0xff] %v5735_v16  ;;  %6897 = vst [vmem:[#allocation34_spill] sm:$0xff] %v5738_v17 }
 0x40d   :  { %1794 = vmatpush2.bf16.msra.mxu0 %v5256_v20  ;;  %1835 = vmatpush2.bf16.msra.mxu1 %v5258_v31  ;;  %v5579_v20 = vld [vmem:[#allocation11 + $0x270] ss:$52 sps:$4 sm:$0xff]   ;;  %v5582_v31 = vld [vmem:[#allocation11 + $0x278] ss:$52 sps:$4 sm:$0xff]  }
 0x40e   :  { %1939 = vmatprep.subr.bf16.mxu0 %v5413_v35  ;;  %1980 = vmatprep.subr.bf16.mxu1 %v5416_v30 }
 0x410   :  { %1796 = vmatmul.mubr.bf16.vlgmr.msra.gmra.mxu0 %v5501_v1  ;;  %1837 = vmatmul.mubr.bf16.vlgmr.msra.gmra.mxu1 %v5501_v1  ;;  %v5633_v1 = vld [vmem:[#allocation11 + $0x6c] ss:$52 sps:$4 sm:$0xff]  }
 0x411   :  { %1940 = vmatpush1.bf16.msra.mxu0 %v5421_v34  ;;  %1981 = vmatpush1.bf16.msra.mxu1 %v5424_v28  ;;  %6862 = vst [vmem:[#allocation52_spill] sm:$0xff] %v5633_v1 }
 0x412   :  { %1941 = vmatprep.subr.bf16.mxu0 %v5573_v25  ;;  %1982 = vmatprep.subr.bf16.mxu1 %v5576_v22 }
 0x415   :  { %1942 = vmatpush1.bf16.msra.mxu0 %v5579_v20  ;;  %1983 = vmatpush1.bf16.msra.mxu1 %v5582_v31 }
 0x416   :  { %1943 = vmatprep.subr.bf16.mxu0 %v5585_v27  ;;  %1984 = vmatprep.subr.bf16.mxu1 %v5588_v32 }
 0x419   :  { %1944 = vmatpush1.bf16.msra.mxu0 %v5591_v13  ;;  %1985 = vmatpush1.bf16.msra.mxu1 %v5594_v23 }
 0x41a   :  { %1945 = vmatprep.subr.bf16.mxu0 %v5597_v18  ;;  %1986 = vmatprep.subr.bf16.mxu1 %v5600_v8 }
 0x41d   :  { %1946 = vmatpush1.bf16.msra.mxu0 %v5603_v12  ;;  %1987 = vmatpush1.bf16.msra.mxu1 %v5606_v11 }
 0x41e   :  { %1947 = vmatprep.subr.bf16.mxu0 %v5609_v9  ;;  %1988 = vmatprep.subr.bf16.mxu1 %v5612_v57 }
 0x421   :  { %1948 = vmatpush1.bf16.msra.mxu0 %v5615_v56  ;;  %1989 = vmatpush1.bf16.msra.mxu1 %v5618_v59 }
 0x422   :  { %1949 = vmatprep.subr.bf16.mxu0 %v5621_v60  ;;  %1990 = vmatprep.subr.bf16.mxu1 %v5624_v61 }
 0x425   :  { %1950 = vmatpush1.bf16.msra.mxu0 %v5627_v62  ;;  %1991 = vmatpush1.bf16.msra.mxu1 %v5630_v63 }
 0x426   :  { %1951 = vmatprep.subr.bf16.mxu0 %v5633_v1  ;;  %1992 = vmatprep.subr.bf16.mxu1 %v5636_v26 }
 0x429   :  { %1952 = vmatpush1.bf16.msra.mxu0 %v5639_v10  ;;  %1993 = vmatpush1.bf16.msra.mxu1 %v5642_v0 }
 0x42a   :  { %1953 = vmatprep.subr.bf16.mxu0 %v5645_v24  ;;  %1994 = vmatprep.subr.bf16.mxu1 %v5648_v15 }
 0x42d   :  { %1954 = vmatpush1.bf16.msra.mxu0 %v5651_v37  ;;  %1995 = vmatpush1.bf16.msra.mxu1 %v5654_v38 }
 0x42e   :  { %1955 = vmatprep.subr.bf16.mxu0 %v5657_v33  ;;  %1996 = vmatprep.subr.bf16.mxu1 %v5660_v7 }
 0x431   :  { %1956 = vmatpush2.bf16.msra.mxu0 %v5663_v6  ;;  %1997 = vmatpush2.bf16.msra.mxu1 %v5666_v4 }
 0x432   :  { %1957 = vmatprep.subr.bf16.mxu0 %v5669_v5  ;;  %1998 = vmatprep.subr.bf16.mxu1 %v5672_v2 }
 0x435   :  { %1958 = vmatpush2.bf16.msra.mxu0 %v5675_v3  ;;  %1999 = vmatpush2.bf16.msra.mxu1 %v5678_v14 }
 0x436   :  { %1959 = vmatprep.subr.bf16.mxu0 %v5681_v39  ;;  %2000 = vmatprep.subr.bf16.mxu1 %v5684_v40 }
 0x439   :  { %1960 = vmatpush2.bf16.msra.mxu0 %v5687_v41  ;;  %2001 = vmatpush2.bf16.msra.mxu1 %v5690_v42 }
 0x43a   :  { %1961 = vmatprep.subr.bf16.mxu0 %v5693_v43  ;;  %2002 = vmatprep.subr.bf16.mxu1 %v5696_v44 }
 0x43d   :  { %1962 = vmatpush2.bf16.msra.mxu0 %v5699_v45  ;;  %2003 = vmatpush2.bf16.msra.mxu1 %v5702_v46 }
 0x43e   :  { %1963 = vmatprep.subr.bf16.mxu0 %v5705_v47  ;;  %2004 = vmatprep.subr.bf16.mxu1 %v5708_v48 }
 0x441   :  { %1964 = vmatpush2.bf16.msra.mxu0 %v5711_v49  ;;  %2005 = vmatpush2.bf16.msra.mxu1 %v5714_v50 }
 0x442   :  { %1965 = vmatprep.subr.bf16.mxu0 %v5717_v51  ;;  %2006 = vmatprep.subr.bf16.mxu1 %v5720_v52 }
 0x445   :  { %1966 = vmatpush2.bf16.msra.mxu0 %v5723_v53  ;;  %2007 = vmatpush2.bf16.msra.mxu1 %v5726_v54  ;;  %v5741_v53 = vld [vmem:[#allocation11 + $0x344] ss:$52 sps:$4 sm:$0xff]   ;;  %v5744_v54 = vld [vmem:[#allocation11 + $0x34c] ss:$52 sps:$4 sm:$0xff]  }
 0x446   :  { %1967 = vmatprep.subr.bf16.mxu0 %v5729_v55  ;;  %2008 = vmatprep.subr.bf16.mxu1 %v5732_v36  ;;  %6898 = vst [vmem:[#allocation35_spill] sm:$0xff] %v5741_v53  ;;  %6899 = vst [vmem:[#allocation36_spill] sm:$0xff] %v5744_v54  ;;  %v5747_v55 = vld [vmem:[#allocation11 + $0x340] ss:$52 sps:$4 sm:$0xff]   ;;  %v5750_v36 = vld [vmem:[#allocation11 + $0x348] ss:$52 sps:$4 sm:$0xff]  }
 0x447   :  { %6900 = vst [vmem:[#allocation37_spill] sm:$0xff] %v5747_v55  ;;  %6901 = vst [vmem:[#allocation38_spill] sm:$0xff] %v5750_v36 }
 0x449   :  { %1968 = vmatpush2.bf16.msra.mxu0 %v5735_v16  ;;  %2009 = vmatpush2.bf16.msra.mxu1 %v5738_v17  ;;  %v5753_v16 = vld [vmem:[#allocation11 + $0x2ec] ss:$52 sps:$4 sm:$0xff]   ;;  %v5756_v17 = vld [vmem:[#allocation11 + $0x2f4] ss:$52 sps:$4 sm:$0xff]  }
 0x44a   :  { %1969 = vmatprep.subr.bf16.mxu0 %v5741_v53  ;;  %2010 = vmatprep.subr.bf16.mxu1 %v5744_v54  ;;  %6902 = vst [vmem:[#allocation39_spill] sm:$0xff] %v5753_v16  ;;  %6903 = vst [vmem:[#allocation40_spill] sm:$0xff] %v5756_v17 }
 0x44d   :  { %1970 = vmatpush2.bf16.msra.mxu0 %v5747_v55  ;;  %2011 = vmatpush2.bf16.msra.mxu1 %v5750_v36 }
 0x44e   :  { %2021 = vmatprep.subr.bf16.mxu0 %v5753_v16  ;;  %2062 = vmatprep.subr.bf16.mxu1 %v5756_v17 }
 0x490   :  { %v1715_v53 = vpop.f32.mrf.mxu0  ;;  %v1756_v52 = vpop.f32.mrf.mxu1 }
 0x492   :  { %v1717_v51 = vpop.f32.mrf.mxu0  ;;  %v1758_v54 = vpop.f32.mrf.mxu1 }
 0x493   :  { %v1853_v50 = vcombine.low %v1715_v53, %v1717_v51  ;;  %v1854_v49 = vcombine.low %v1756_v52, %v1758_v54  ;;  %v1666_v54 = vld [vmem:[#allocation2 + $0x3] ss:$8 sm:$0xf0] }
 0x494   :  { %v1719_v48 = vpop.f32.mrf.mxu0  ;;  %v1760_v55 = vpop.f32.mrf.mxu1 }
 0x495   :  { %v1863_v47 = vrot.slane %v1853_v50, %v5333_v19  ;;  %v1870_v36 = vrot.slane %v1854_v49, %v5333_v19 }
 0x496   :  { %v1720_v46 = vpop.f32.mrf.mxu0  ;;  %v1761_v45 = vpop.f32.mrf.mxu1 }
 0x497   :  { %v1885_v44 = vcombine.low %v1863_v47, %v1870_v36  ;;  %v1665_v47 = vld [vmem:[#allocation2 + $0x3] ss:$8 sm:$0xf] }
 0x498   :  { %v1667_v49 = vor.u32 %v1666_v54, %v1665_v47  ;;  %v5778_v47 = vld [vmem:[#allocation11 + $0x2f0] ss:$52 sps:$4 sm:$0xff]  }
 0x499   :  { %v1893_v46 = vrot.slane %v1885_v44, %v5333_v19 }
 0x4d0   :  { %v1797_v16 = vpop.f32.mrf.mxu0  ;;  %v1838_v43 = vpop.f32.mrf.mxu1 }
 0x4d2   :  { %v1799_v42 = vpop.f32.mrf.mxu0  ;;  %v1840_v41 = vpop.f32.mrf.mxu1 }
 0x4d3   :  { %v1855_v17 = vcombine.low %v1797_v16, %v1799_v42  ;;  %v1856_v40 = vcombine.low %v1838_v43, %v1840_v41 }
 0x4d4   :  { %v1801_v39 = vpop.f32.mrf.mxu0  ;;  %v1842_v14 = vpop.f32.mrf.mxu1 }
 0x4d5   :  { %v1877_v51 = vrot.slane %v1855_v17, %v5333_v19  ;;  %v1884_v48 = vrot.slane %v1856_v40, %v5333_v19 }
 0x4d6   :  { %v1802_v52 = vpop.f32.mrf.mxu0  ;;  %v1843_v53 = vpop.f32.mrf.mxu1 }
 0x4d7   :  { %v1886_v50 = vcombine.low %v1877_v51, %v1884_v48 }
 0x4d9   :  { %v1900_v45 = vrot.slane %v1886_v50, %v5333_v19 }
 0x4db   :  { %v1901_v55 = vcombine.low %v1893_v46, %v1900_v45 }
 0x4dd   :  { %v1903_v36 = vadd.f32 %v1901_v55, %v1667_v49  ;;  %v5781_v49 = vld [vmem:[#allocation11 + $0x284] ss:$52 sps:$4 sm:$0xff]   ;;  %v5784_v55 = vld [vmem:[#allocation11 + $0x28c] ss:$52 sps:$4 sm:$0xff]  }
 0x4df   :  { %v1904_v42 = vmul.f32 0.5, %v1903_v36  ;;  %v1909_v39 = vrot.slane %v1903_v36, 6  ;;  %v5787_v36 = vld [vmem:[#allocation11 + $0x280] ss:$52 sps:$4 sm:$0xff]  }
 0x4e1   :  { %4375 = vtanh.f32 %v1904_v42  ;;  %v5790_v42 = vld [vmem:[#allocation11 + $0x288] ss:$52 sps:$4 sm:$0xff]  }
 0x4e2   :  { %4377 = vtanh.f32 %v1909_v39  ;;  %v5793_v39 = vld [vmem:[#allocation11 + $0x21c] ss:$52 sps:$4 sm:$0xff]  }
 0x4ee   :  { %v4376_v14 = vpop.eup %4375 }
 0x4ef   :  { %v1906_v41 = vadd.f32 1.0, %v4376_v14  ;;  %v4378_v16 = vpop.eup %4377  ;;  %v5796_v14 = vld [vmem:[#allocation11 + $0x224] ss:$52 sps:$4 sm:$0xff]  }
 0x4f1   :  { %v1907_v43 = vmul.f32 0.5, %v1906_v41  ;;  %v5799_v41 = vld [vmem:[#allocation11 + $0x218] ss:$52 sps:$4 sm:$0xff]  }
 0x4f3   :  { %v1913_v40 = vrot.slane %v1907_v43, 2  ;;  %v1916_v51 = vmul.f32 %v4378_v16, %v1907_v43  ;;  %v1919_v44 = vrot.slane %v1907_v43, 4  ;;  %v5802_v43 = vld [vmem:[#allocation11 + $0x220] ss:$52 sps:$4 sm:$0xff]   ;;  %v5808_v16 = vld [vmem:[#allocation11 + $0x1bc] ss:$52 sps:$4 sm:$0xff]  }
 0x4f5   :  { %v1915_v17 = vmul.f32 %v1913_v40, %v5496_v58  ;;  %v5775_v58 = vld [vmem:[#allocation11 + $0x2e8] ss:$52 sps:$4 sm:$0xff]  }
 0x4f6   :  { %v5805_v40 = vld [vmem:[#allocation11 + $0x1b4] ss:$52 sps:$4 sm:$0xff]  }
 0x4f7   :  { %v5766_v48 = vadd.f32 %v1916_v51, %v1915_v17  ;;  %v5811_v17 = vld [vmem:[#allocation11 + $0x1b0] ss:$52 sps:$4 sm:$0xff]   ;;  %v5814_v51 = vld [vmem:[#allocation11 + $0x1b8] ss:$52 sps:$4 sm:$0xff]  }
 0x4f9   :  { %4379 = vtanh.f32 %v5766_v48 }
 0x506   :  { %v4380_v52 = vpop.eup %4379 }
 0x507   :  { %v1921_v53 = vmul.f32 %v4380_v52, %v1919_v44  ;;  %v5817_v44 = vld [vmem:[#allocation11 + $0x14c] ss:$52 sps:$4 sm:$0xff]   ;;  %v5820_v52 = vld [vmem:[#allocation11 + $0x154] ss:$52 sps:$4 sm:$0xff]  }
 0x508   :  { %6904 = vst [vmem:[#allocation41_spill] sm:$0xff] %v5817_v44  ;;  %6905 = vst [vmem:[#allocation42_spill] sm:$0xff] %v5820_v52 }
 0x509   :  { %v1934_v50 = vrot.slane %v1921_v53, %v5070_v29  ;;  %v1930_v54 = vrot.slane %v1921_v53, %v5067_v21  ;;  %v5823_v53 = vld [vmem:[#allocation11 + $0x148] ss:$52 sps:$4 sm:$0xff]  }
 0x50a   :  { %6906 = vst [vmem:[#allocation43_spill] sm:$0xff] %v5823_v53 }
 0x50b   :  { %v1938_v46 = vpack.c.bf16 %v1934_v50, %v1934_v50  ;;  %v5771_v45 = vpack.c.bf16 %v1930_v54, %v1930_v54  ;;  %v5826_v50 = vld [vmem:[#allocation11 + $0x150] ss:$52 sps:$4 sm:$0xff]  }
 0x50c   :  { %6907 = vst [vmem:[#allocation44_spill] sm:$0xff] %v5826_v50  ;;  %v5829_v54 = vld [vmem:[#allocation11 + $0xe4] ss:$52 sps:$4 sm:$0xff]  }
 0x50d   :  { %1971 = vmatprep.mubr.bf16.mxu0 %v1938_v46  ;;  %2012 = vmatprep.mubr.bf16.mxu1 %v1938_v46  ;;  %6908 = vst [vmem:[#allocation45_spill] sm:$0xff] %v5829_v54 }
 0x50e   :  { %1972 = vmatmul.mubr.bf16.vlgmr.msra.gmra.mxu0 %v5771_v45  ;;  %2013 = vmatmul.mubr.bf16.vlgmr.msra.gmra.mxu1 %v5771_v45 }
 0x50f   :  { %2022 = vmatpush1.bf16.msra.mxu0 %v5775_v58  ;;  %2063 = vmatpush1.bf16.msra.mxu1 %v5778_v47 }
 0x510   :  { %2053 = vmatprep.mubr.bf16.mxu0 %v1938_v46  ;;  %2094 = vmatprep.mubr.bf16.mxu1 %v1938_v46  ;;  %v5832_v46 = vld [vmem:[#allocation11 + $0xec] ss:$52 sps:$4 sm:$0xff]  }
 0x511   :  { %2023 = vmatprep.subr.bf16.mxu0 %v5781_v49  ;;  %2064 = vmatprep.subr.bf16.mxu1 %v5784_v55  ;;  %6909 = vst [vmem:[#allocation46_spill] sm:$0xff] %v5832_v46 }
 0x513   :  { %2024 = vmatpush1.bf16.msra.mxu0 %v5787_v36  ;;  %2065 = vmatpush1.bf16.msra.mxu1 %v5790_v42 }
 0x514   :  { %2025 = vmatprep.subr.bf16.mxu0 %v5793_v39  ;;  %2066 = vmatprep.subr.bf16.mxu1 %v5796_v14 }
 0x517   :  { %2026 = vmatpush1.bf16.msra.mxu0 %v5799_v41  ;;  %2067 = vmatpush1.bf16.msra.mxu1 %v5802_v43 }
 0x518   :  { %2027 = vmatprep.subr.bf16.mxu0 %v5805_v40  ;;  %2068 = vmatprep.subr.bf16.mxu1 %v5808_v16 }
 0x51b   :  { %2028 = vmatpush1.bf16.msra.mxu0 %v5811_v17  ;;  %2069 = vmatpush1.bf16.msra.mxu1 %v5814_v51 }
 0x51c   :  { %2029 = vmatprep.subr.bf16.mxu0 %v5817_v44  ;;  %2070 = vmatprep.subr.bf16.mxu1 %v5820_v52  ;;  %v5835_v44 = vld [vmem:[#allocation11 + $0xe0] ss:$52 sps:$4 sm:$0xff]   ;;  %v5838_v52 = vld [vmem:[#allocation11 + $0xe8] ss:$52 sps:$4 sm:$0xff]  }
 0x51d   :  { %6910 = vst [vmem:[#allocation47_spill] sm:$0xff] %v5835_v44  ;;  %6911 = vst [vmem:[#allocation48_spill] sm:$0xff] %v5838_v52 }
 0x51f   :  { %2030 = vmatpush1.bf16.msra.mxu0 %v5823_v53  ;;  %2071 = vmatpush1.bf16.msra.mxu1 %v5826_v50  ;;  %v5841_v53 = vld [vmem:[#allocation11 + $0x7c] ss:$52 sps:$4 sm:$0xff]   ;;  %v5844_v50 = vld [vmem:[#allocation11 + $0x84] ss:$52 sps:$4 sm:$0xff]  }
 0x520   :  { %2031 = vmatprep.subr.bf16.mxu0 %v5829_v54  ;;  %2072 = vmatprep.subr.bf16.mxu1 %v5832_v46  ;;  %6912 = vst [vmem:[#allocation49_spill] sm:$0xff] %v5841_v53  ;;  %6913 = vst [vmem:[#allocation50_spill] sm:$0xff] %v5844_v50  ;;  %v5847_v54 = vld [vmem:[#allocation11 + $0x78] ss:$52 sps:$4 sm:$0xff]   ;;  %v5850_v46 = vld [vmem:[#allocation11 + $0x80] ss:$52 sps:$4 sm:$0xff]  }
 0x521   :  { %6914 = vst [vmem:[#allocation60_spill] sm:$0xff] %v5847_v54  ;;  %6915 = vst [vmem:[#allocation61_spill] sm:$0xff] %v5850_v46 }
 0x523   :  { %2032 = vmatpush1.bf16.msra.mxu0 %v5835_v44  ;;  %2073 = vmatpush1.bf16.msra.mxu1 %v5838_v52  ;;  %v5853_v44 = vld [vmem:[#allocation11 + $0x14] ss:$52 sps:$4 sm:$0xff]   ;;  %v5856_v52 = vld [vmem:[#allocation11 + $0x1c] ss:$52 sps:$4 sm:$0xff]  }
 0x524   :  { %2033 = vmatprep.subr.bf16.mxu0 %v5841_v53  ;;  %2074 = vmatprep.subr.bf16.mxu1 %v5844_v50  ;;  %6916 = vst [vmem:[#allocation62_spill] sm:$0xff] %v5853_v44  ;;  %6917 = vst [vmem:[#allocation63_spill] sm:$0xff] %v5856_v52  ;;  %v5859_v53 = vld [vmem:[#allocation11 + $0x10] ss:$52 sps:$4 sm:$0xff]   ;;  %v5862_v50 = vld [vmem:[#allocation11 + $0x18] ss:$52 sps:$4 sm:$0xff]  }
 0x525   :  { %6918 = vst [vmem:[#allocation64_spill] sm:$0xff] %v5859_v53  ;;  %6919 = vst [vmem:[#allocation65_spill] sm:$0xff] %v5862_v50 }
 0x527   :  { %2034 = vmatpush1.bf16.msra.mxu0 %v5847_v54  ;;  %2075 = vmatpush1.bf16.msra.mxu1 %v5850_v46  ;;  %v5865_v54 = vld [vmem:[#allocation11 + $0x62c] ss:$52 sps:$4 sm:$0xff]   ;;  %v5868_v46 = vld [vmem:[#allocation11 + $0x634] ss:$52 sps:$4 sm:$0xff]  }
 0x528   :  { %2035 = vmatprep.subr.bf16.mxu0 %v5853_v44  ;;  %2076 = vmatprep.subr.bf16.mxu1 %v5856_v52  ;;  %6920 = vst [vmem:[#allocation66_spill] sm:$0xff] %v5865_v54  ;;  %6921 = vst [vmem:[#allocation67_spill] sm:$0xff] %v5868_v46  ;;  %v5871_v44 = vld [vmem:[#allocation11 + $0x628] ss:$52 sps:$4 sm:$0xff]   ;;  %v5874_v52 = vld [vmem:[#allocation11 + $0x630] ss:$52 sps:$4 sm:$0xff]  }
 0x529   :  { %6922 = vst [vmem:[#allocation68_spill] sm:$0xff] %v5871_v44  ;;  %6923 = vst [vmem:[#allocation69_spill] sm:$0xff] %v5874_v52 }
 0x52b   :  { %2036 = vmatpush1.bf16.msra.mxu0 %v5859_v53  ;;  %2077 = vmatpush1.bf16.msra.mxu1 %v5862_v50  ;;  %v5877_v53 = vld [vmem:[#allocation11 + $0x5c4] ss:$52 sps:$4 sm:$0xff]   ;;  %v5880_v50 = vld [vmem:[#allocation11 + $0x5cc] ss:$52 sps:$4 sm:$0xff]  }
 0x52c   :  { %2037 = vmatprep.subr.bf16.mxu0 %v5865_v54  ;;  %2078 = vmatprep.subr.bf16.mxu1 %v5868_v46  ;;  %6924 = vst [vmem:[#allocation70_spill] sm:$0xff] %v5877_v53  ;;  %6925 = vst [vmem:[#allocation71_spill] sm:$0xff] %v5880_v50  ;;  %v5883_v54 = vld [vmem:[#allocation11 + $0x5c0] ss:$52 sps:$4 sm:$0xff]   ;;  %v5886_v46 = vld [vmem:[#allocation11 + $0x5c8] ss:$52 sps:$4 sm:$0xff]  }
 0x52d   :  { %6926 = vst [vmem:[#allocation72_spill] sm:$0xff] %v5883_v54  ;;  %6927 = vst [vmem:[#allocation73_spill] sm:$0xff] %v5886_v46 }
 0x52f   :  { %2038 = vmatpush2.bf16.msra.mxu0 %v5871_v44  ;;  %2079 = vmatpush2.bf16.msra.mxu1 %v5874_v52  ;;  %v5889_v44 = vld [vmem:[#allocation11 + $0x55c] ss:$52 sps:$4 sm:$0xff]   ;;  %v5892_v52 = vld [vmem:[#allocation11 + $0x564] ss:$52 sps:$4 sm:$0xff]  }
 0x530   :  { %2039 = vmatprep.subr.bf16.mxu0 %v5877_v53  ;;  %2080 = vmatprep.subr.bf16.mxu1 %v5880_v50  ;;  %6928 = vst [vmem:[#allocation74_spill] sm:$0xff] %v5889_v44  ;;  %6929 = vst [vmem:[#allocation75_spill] sm:$0xff] %v5892_v52  ;;  %v5895_v53 = vld [vmem:[#allocation11 + $0x558] ss:$52 sps:$4 sm:$0xff]   ;;  %v5898_v50 = vld [vmem:[#allocation11 + $0x560] ss:$52 sps:$4 sm:$0xff]  }
 0x531   :  { %6930 = vst [vmem:[#allocation76_spill] sm:$0xff] %v5895_v53  ;;  %6931 = vst [vmem:[#allocation77_spill] sm:$0xff] %v5898_v50 }
 0x533   :  { %2040 = vmatpush2.bf16.msra.mxu0 %v5883_v54  ;;  %2081 = vmatpush2.bf16.msra.mxu1 %v5886_v46  ;;  %v5901_v54 = vld [vmem:[#allocation11 + $0x4f4] ss:$52 sps:$4 sm:$0xff]   ;;  %v5904_v46 = vld [vmem:[#allocation11 + $0x4fc] ss:$52 sps:$4 sm:$0xff]  }
 0x534   :  { %2041 = vmatprep.subr.bf16.mxu0 %v5889_v44  ;;  %2082 = vmatprep.subr.bf16.mxu1 %v5892_v52  ;;  %6932 = vst [vmem:[#allocation78_spill] sm:$0xff] %v5901_v54  ;;  %6933 = vst [vmem:[#allocation79_spill] sm:$0xff] %v5904_v46  ;;  %v5907_v44 = vld [vmem:[#allocation11 + $0x4f0] ss:$52 sps:$4 sm:$0xff]   ;;  %v5910_v52 = vld [vmem:[#allocation11 + $0x4f8] ss:$52 sps:$4 sm:$0xff]  }
 0x535   :  { %6934 = vst [vmem:[#allocation80_spill] sm:$0xff] %v5907_v44  ;;  %6935 = vst [vmem:[#allocation81_spill] sm:$0xff] %v5910_v52 }
 0x537   :  { %2042 = vmatpush2.bf16.msra.mxu0 %v5895_v53  ;;  %2083 = vmatpush2.bf16.msra.mxu1 %v5898_v50  ;;  %v5913_v53 = vld [vmem:[#allocation11 + $0x48c] ss:$52 sps:$4 sm:$0xff]   ;;  %v5916_v50 = vld [vmem:[#allocation11 + $0x494] ss:$52 sps:$4 sm:$0xff]  }
 0x538   :  { %2043 = vmatprep.subr.bf16.mxu0 %v5901_v54  ;;  %2084 = vmatprep.subr.bf16.mxu1 %v5904_v46  ;;  %6936 = vst [vmem:[#allocation82_spill] sm:$0xff] %v5913_v53  ;;  %6937 = vst [vmem:[#allocation83_spill] sm:$0xff] %v5916_v50  ;;  %v5919_v54 = vld [vmem:[#allocation11 + $0x488] ss:$52 sps:$4 sm:$0xff]   ;;  %v5922_v46 = vld [vmem:[#allocation11 + $0x490] ss:$52 sps:$4 sm:$0xff]  }
 0x539   :  { %6938 = vst [vmem:[#allocation84_spill] sm:$0xff] %v5919_v54  ;;  %6939 = vst [vmem:[#allocation85_spill] sm:$0xff] %v5922_v46 }
 0x53b   :  { %2044 = vmatpush2.bf16.msra.mxu0 %v5907_v44  ;;  %2085 = vmatpush2.bf16.msra.mxu1 %v5910_v52  ;;  %v5925_v44 = vld [vmem:[#allocation11 + $0x424] ss:$52 sps:$4 sm:$0xff]   ;;  %v5928_v52 = vld [vmem:[#allocation11 + $0x42c] ss:$52 sps:$4 sm:$0xff]  }
 0x53c   :  { %2045 = vmatprep.subr.bf16.mxu0 %v5913_v53  ;;  %2086 = vmatprep.subr.bf16.mxu1 %v5916_v50  ;;  %6940 = vst [vmem:[#allocation86_spill] sm:$0xff] %v5925_v44  ;;  %6941 = vst [vmem:[#allocation87_spill] sm:$0xff] %v5928_v52  ;;  %v5931_v53 = vld [vmem:[#allocation11 + $0x420] ss:$52 sps:$4 sm:$0xff]   ;;  %v5934_v50 = vld [vmem:[#allocation11 + $0x428] ss:$52 sps:$4 sm:$0xff]  }
 0x53d   :  { %6942 = vst [vmem:[#allocation88_spill] sm:$0xff] %v5931_v53  ;;  %6943 = vst [vmem:[#allocation89_spill] sm:$0xff] %v5934_v50 }
 0x53f   :  { %2046 = vmatpush2.bf16.msra.mxu0 %v5919_v54  ;;  %2087 = vmatpush2.bf16.msra.mxu1 %v5922_v46  ;;  %v5937_v54 = vld [vmem:[#allocation11 + $0x3bc] ss:$52 sps:$4 sm:$0xff]   ;;  %v5940_v46 = vld [vmem:[#allocation11 + $0x3c4] ss:$52 sps:$4 sm:$0xff]  }
 0x540   :  { %2047 = vmatprep.subr.bf16.mxu0 %v5925_v44  ;;  %2088 = vmatprep.subr.bf16.mxu1 %v5928_v52  ;;  %6944 = vst [vmem:[#allocation90_spill] sm:$0xff] %v5937_v54  ;;  %6945 = vst [vmem:[#allocation100_spill] sm:$0xff] %v5940_v46  ;;  %v5943_v44 = vld [vmem:[#allocation11 + $0x3b8] ss:$52 sps:$4 sm:$0xff]   ;;  %v5946_v52 = vld [vmem:[#allocation11 + $0x3c0] ss:$52 sps:$4 sm:$0xff]  }
 0x541   :  { %6946 = vst [vmem:[#allocation102_spill] sm:$0xff] %v5946_v52 }
 0x543   :  { %2048 = vmatpush2.bf16.msra.mxu0 %v5931_v53  ;;  %2089 = vmatpush2.bf16.msra.mxu1 %v5934_v50  ;;  %v5949_v53 = vld [vmem:[#allocation11 + $0x354] ss:$52 sps:$4 sm:$0xff]   ;;  %v5952_v50 = vld [vmem:[#allocation11 + $0x35c] ss:$52 sps:$4 sm:$0xff]  }
 0x544   :  { %2049 = vmatprep.subr.bf16.mxu0 %v5937_v54  ;;  %2090 = vmatprep.subr.bf16.mxu1 %v5940_v46  ;;  %6947 = vst [vmem:[#allocation103_spill] sm:$0xff] %v5952_v50  ;;  %v5955_v54 = vld [vmem:[#allocation11 + $0x350] ss:$52 sps:$4 sm:$0xff]   ;;  %v5958_v46 = vld [vmem:[#allocation11 + $0x358] ss:$52 sps:$4 sm:$0xff]  }
 0x547   :  { %2050 = vmatpush2.bf16.msra.mxu0 %v5943_v44  ;;  %2091 = vmatpush2.bf16.msra.mxu1 %v5946_v52 }
 0x548   :  { %2051 = vmatprep.subr.bf16.mxu0 %v5949_v53  ;;  %2092 = vmatprep.subr.bf16.mxu1 %v5952_v50 }
 0x54b   :  { %2052 = vmatpush2.bf16.msra.mxu0 %v5955_v54  ;;  %2093 = vmatpush2.bf16.msra.mxu1 %v5958_v46 }
 0x54c   :  { %2197 = vmatprep.subr.bf16.mxu0 %v5413_v35  ;;  %2238 = vmatprep.subr.bf16.mxu1 %v5416_v30  ;;  %v6950_v30 = vld [vmem:[#allocation101_spill] sm:$0xff] }
 0x54d   :  { %v6951_v35 = vld [vmem:[#allocation17_spill] sm:$0xff] }
 0x54e   :  { %2054 = vmatmul.mubr.bf16.vlgmr.msra.gmra.mxu0 %v5771_v45  ;;  %2095 = vmatmul.mubr.bf16.vlgmr.msra.gmra.mxu1 %v5771_v45  ;;  %v6952_v45 = vld [vmem:[#allocation18_spill] sm:$0xff] }
 0x54f   :  { %2198 = vmatpush1.bf16.msra.mxu0 %v5421_v34  ;;  %2239 = vmatpush1.bf16.msra.mxu1 %v5424_v28  ;;  %v6948_v34 = vld [vmem:[#allocation98_spill] sm:$0xff]  ;;  %v6949_v28 = vld [vmem:[#allocation99_spill] sm:$0xff] }
 0x550   :  { %2199 = vmatprep.subr.bf16.mxu0 %v5573_v25  ;;  %2240 = vmatprep.subr.bf16.mxu1 %v5576_v22 }
 0x553   :  { %2200 = vmatpush1.bf16.msra.mxu0 %v5579_v20  ;;  %2241 = vmatpush1.bf16.msra.mxu1 %v5582_v31 }
 0x554   :  { %2201 = vmatprep.subr.bf16.mxu0 %v5585_v27  ;;  %2242 = vmatprep.subr.bf16.mxu1 %v5588_v32 }
 0x557   :  { %2202 = vmatpush1.bf16.msra.mxu0 %v5591_v13  ;;  %2243 = vmatpush1.bf16.msra.mxu1 %v5594_v23 }
 0x558   :  { %2203 = vmatprep.subr.bf16.mxu0 %v5597_v18  ;;  %2244 = vmatprep.subr.bf16.mxu1 %v5600_v8 }
 0x55b   :  { %2204 = vmatpush1.bf16.msra.mxu0 %v5603_v12  ;;  %2245 = vmatpush1.bf16.msra.mxu1 %v5606_v11 }
 0x55c   :  { %2205 = vmatprep.subr.bf16.mxu0 %v5609_v9  ;;  %2246 = vmatprep.subr.bf16.mxu1 %v5612_v57 }
 0x55f   :  { %2206 = vmatpush1.bf16.msra.mxu0 %v5615_v56  ;;  %2247 = vmatpush1.bf16.msra.mxu1 %v5618_v59 }
 0x560   :  { %2207 = vmatprep.subr.bf16.mxu0 %v5621_v60  ;;  %2248 = vmatprep.subr.bf16.mxu1 %v5624_v61 }
 0x563   :  { %2208 = vmatpush1.bf16.msra.mxu0 %v5627_v62  ;;  %2249 = vmatpush1.bf16.msra.mxu1 %v5630_v63 }
 0x564   :  { %2209 = vmatprep.subr.bf16.mxu0 %v5633_v1  ;;  %2250 = vmatprep.subr.bf16.mxu1 %v5636_v26 }
 0x567   :  { %2210 = vmatpush1.bf16.msra.mxu0 %v5639_v10  ;;  %2251 = vmatpush1.bf16.msra.mxu1 %v5642_v0 }
 0x568   :  { %2211 = vmatprep.subr.bf16.mxu0 %v5645_v24  ;;  %2252 = vmatprep.subr.bf16.mxu1 %v5648_v15 }
 0x56b   :  { %2212 = vmatpush1.bf16.msra.mxu0 %v5651_v37  ;;  %2253 = vmatpush1.bf16.msra.mxu1 %v5654_v38 }
 0x56c   :  { %2213 = vmatprep.subr.bf16.mxu0 %v5657_v33  ;;  %2254 = vmatprep.subr.bf16.mxu1 %v5660_v7  ;;  %v6953_v7 = vld [vmem:[#allocation19_spill] sm:$0xff] }
 0x56f   :  { %2214 = vmatpush2.bf16.msra.mxu0 %v5663_v6  ;;  %2255 = vmatpush2.bf16.msra.mxu1 %v5666_v4  ;;  %v6954_v6 = vld [vmem:[#allocation20_spill] sm:$0xff]  ;;  %v6955_v4 = vld [vmem:[#allocation21_spill] sm:$0xff] }
 0x570   :  { %2215 = vmatprep.subr.bf16.mxu0 %v5669_v5  ;;  %2256 = vmatprep.subr.bf16.mxu1 %v5672_v2  ;;  %v6956_v5 = vld [vmem:[#allocation22_spill] sm:$0xff]  ;;  %v6957_v2 = vld [vmem:[#allocation23_spill] sm:$0xff] }
 0x573   :  { %2216 = vmatpush2.bf16.msra.mxu0 %v5675_v3  ;;  %2257 = vmatpush2.bf16.msra.mxu1 %v6948_v34  ;;  %v6958_v3 = vld [vmem:[#allocation24_spill] sm:$0xff]  ;;  %v6959_v34 = vld [vmem:[#allocation25_spill] sm:$0xff] }
 0x574   :  { %2217 = vmatprep.subr.bf16.mxu0 %v6949_v28  ;;  %2258 = vmatprep.subr.bf16.mxu1 %v6950_v30  ;;  %v6960_v28 = vld [vmem:[#allocation26_spill] sm:$0xff]  ;;  %v6961_v30 = vld [vmem:[#allocation27_spill] sm:$0xff] }
 0x577   :  { %2218 = vmatpush2.bf16.msra.mxu0 %v6951_v35  ;;  %2259 = vmatpush2.bf16.msra.mxu1 %v6952_v45  ;;  %v6962_v35 = vld [vmem:[#allocation28_spill] sm:$0xff]  ;;  %v6963_v45 = vld [vmem:[#allocation29_spill] sm:$0xff] }
 0x578   :  { %2219 = vmatprep.subr.bf16.mxu0 %v6953_v7  ;;  %2260 = vmatprep.subr.bf16.mxu1 %v6954_v6  ;;  %v6964_v7 = vld [vmem:[#allocation30_spill] sm:$0xff]  ;;  %v6965_v6 = vld [vmem:[#allocation31_spill] sm:$0xff] }
 0x57b   :  { %2220 = vmatpush2.bf16.msra.mxu0 %v6955_v4  ;;  %2261 = vmatpush2.bf16.msra.mxu1 %v6956_v5  ;;  %v6966_v4 = vld [vmem:[#allocation32_spill] sm:$0xff]  ;;  %v6967_v5 = vld [vmem:[#allocation33_spill] sm:$0xff] }
 0x57c   :  { %2221 = vmatprep.subr.bf16.mxu0 %v6957_v2  ;;  %2262 = vmatprep.subr.bf16.mxu1 %v6958_v3  ;;  %v6968_v2 = vld [vmem:[#allocation34_spill] sm:$0xff]  ;;  %v6969_v3 = vld [vmem:[#allocation35_spill] sm:$0xff] }
 0x57f   :  { %2222 = vmatpush2.bf16.msra.mxu0 %v6959_v34  ;;  %2263 = vmatpush2.bf16.msra.mxu1 %v6960_v28  ;;  %v6970_v34 = vld [vmem:[#allocation36_spill] sm:$0xff]  ;;  %v6971_v28 = vld [vmem:[#allocation37_spill] sm:$0xff] }
 0x580   :  { %2223 = vmatprep.subr.bf16.mxu0 %v6961_v30  ;;  %2264 = vmatprep.subr.bf16.mxu1 %v6962_v35  ;;  %v6972_v30 = vld [vmem:[#allocation38_spill] sm:$0xff]  ;;  %v6973_v35 = vld [vmem:[#allocation39_spill] sm:$0xff] }
 0x583   :  { %2224 = vmatpush2.bf16.msra.mxu0 %v6963_v45  ;;  %2265 = vmatpush2.bf16.msra.mxu1 %v6964_v7  ;;  %v6974_v45 = vld [vmem:[#allocation40_spill] sm:$0xff] }
 0x584   :  { %2225 = vmatprep.subr.bf16.mxu0 %v6965_v6  ;;  %2266 = vmatprep.subr.bf16.mxu1 %v6966_v4 }
 0x587   :  { %2226 = vmatpush2.bf16.msra.mxu0 %v6967_v5  ;;  %2267 = vmatpush2.bf16.msra.mxu1 %v6968_v2 }
 0x588   :  { %2227 = vmatprep.subr.bf16.mxu0 %v6969_v3  ;;  %2268 = vmatprep.subr.bf16.mxu1 %v6970_v34 }
 0x58b   :  { %2228 = vmatpush2.bf16.msra.mxu0 %v6971_v28  ;;  %2269 = vmatpush2.bf16.msra.mxu1 %v6972_v30 }
 0x58c   :  { %2279 = vmatprep.subr.bf16.mxu0 %v6973_v35  ;;  %2320 = vmatprep.subr.bf16.mxu1 %v6974_v45 }
 0x5ce   :  { %v1973_v7 = vpop.f32.mrf.mxu0  ;;  %v2014_v6 = vpop.f32.mrf.mxu1 }
 0x5d0   :  { %v1975_v33 = vpop.f32.mrf.mxu0  ;;  %v2016_v4 = vpop.f32.mrf.mxu1 }
 0x5d1   :  { %v2111_v38 = vcombine.low %v1973_v7, %v1975_v33  ;;  %v2112_v5 = vcombine.low %v2014_v6, %v2016_v4  ;;  %v1924_v4 = vld [vmem:[#allocation2 + $0x4] ss:$8 sm:$0xf0] }
 0x5d2   :  { %v1977_v37 = vpop.f32.mrf.mxu0  ;;  %v2018_v2 = vpop.f32.mrf.mxu1 }
 0x5d3   :  { %v2121_v3 = vrot.slane %v2111_v38, %v5333_v19  ;;  %v2128_v34 = vrot.slane %v2112_v5, %v5333_v19  ;;  %v1923_v2 = vld [vmem:[#allocation2 + $0x4] ss:$8 sm:$0xf] }
 0x5d4   :  { %v1978_v15 = vpop.f32.mrf.mxu0  ;;  %v2019_v28 = vpop.f32.mrf.mxu1 }
 0x5d5   :  { %v2143_v24 = vcombine.low %v2121_v3, %v2128_v34  ;;  %v1925_v3 = vor.u32 %v1924_v4, %v1923_v2  ;;  %v6976_v2 = vld [vmem:[#allocation42_spill] sm:$0xff] }
 0x5d7   :  { %v2151_v15 = vrot.slane %v2143_v24, %v5333_v19 }
 0x60e   :  { %v2055_v30 = vpop.f32.mrf.mxu0  ;;  %v2096_v0 = vpop.f32.mrf.mxu1 }
 0x610   :  { %v2057_v35 = vpop.f32.mrf.mxu0  ;;  %v2098_v10 = vpop.f32.mrf.mxu1 }
 0x611   :  { %v2113_v45 = vcombine.low %v2055_v30, %v2057_v35  ;;  %v2114_v26 = vcombine.low %v2096_v0, %v2098_v10 }
 0x612   :  { %v2059_v1 = vpop.f32.mrf.mxu0  ;;  %v2100_v63 = vpop.f32.mrf.mxu1 }
 0x613   :  { %v2135_v33 = vrot.slane %v2113_v45, %v5333_v19  ;;  %v2142_v37 = vrot.slane %v2114_v26, %v5333_v19 }
 0x614   :  { %v2060_v7 = vpop.f32.mrf.mxu0  ;;  %v2101_v6 = vpop.f32.mrf.mxu1 }
 0x615   :  { %v2144_v38 = vcombine.low %v2135_v33, %v2142_v37 }
 0x617   :  { %v2158_v5 = vrot.slane %v2144_v38, %v5333_v19 }
 0x619   :  { %v2159_v34 = vcombine.low %v2151_v15, %v2158_v5 }
 0x61b   :  { %v2161_v28 = vadd.f32 %v2159_v34, %v1925_v3  ;;  %v6977_v3 = vld [vmem:[#allocation43_spill] sm:$0xff]  ;;  %v6978_v34 = vld [vmem:[#allocation44_spill] sm:$0xff] }
 0x61d   :  { %v2162_v30 = vmul.f32 0.5, %v2161_v28  ;;  %v2167_v1 = vrot.slane %v2161_v28, 6  ;;  %v6979_v28 = vld [vmem:[#allocation45_spill] sm:$0xff] }
 0x61f   :  { %4381 = vtanh.f32 %v2162_v30  ;;  %v6980_v30 = vld [vmem:[#allocation46_spill] sm:$0xff] }
 0x620   :  { %4383 = vtanh.f32 %v2167_v1  ;;  %v6981_v1 = vld [vmem:[#allocation47_spill] sm:$0xff] }
 0x62c   :  { %v4382_v63 = vpop.eup %4381 }
 0x62d   :  { %v2164_v10 = vadd.f32 1.0, %v4382_v63  ;;  %v4384_v35 = vpop.eup %4383  ;;  %v6982_v63 = vld [vmem:[#allocation48_spill] sm:$0xff] }
 0x62f   :  { %v2165_v0 = vmul.f32 0.5, %v2164_v10  ;;  %v6983_v10 = vld [vmem:[#allocation49_spill] sm:$0xff] }
 0x631   :  { %v2171_v26 = vrot.slane %v2165_v0, 2  ;;  %v2174_v33 = vmul.f32 %v4384_v35, %v2165_v0  ;;  %v2177_v24 = vrot.slane %v2165_v0, 4  ;;  %v6984_v0 = vld [vmem:[#allocation50_spill] sm:$0xff]  ;;  %v6986_v35 = vld [vmem:[#allocation61_spill] sm:$0xff] }
 0x633   :  { %v2173_v45 = vmul.f32 %v2171_v26, %v5766_v48  ;;  %v6975_v48 = vld [vmem:[#allocation41_spill] sm:$0xff]  ;;  %v6985_v26 = vld [vmem:[#allocation60_spill] sm:$0xff] }
 0x635   :  { %v6036_v37 = vadd.f32 %v2174_v33, %v2173_v45  ;;  %v6987_v45 = vld [vmem:[#allocation62_spill] sm:$0xff]  ;;  %v6988_v33 = vld [vmem:[#allocation63_spill] sm:$0xff] }
 0x637   :  { %4385 = vtanh.f32 %v6036_v37 }
 0x644   :  { %v4386_v7 = vpop.eup %4385 }
 0x645   :  { %v2179_v6 = vmul.f32 %v4386_v7, %v2177_v24  ;;  %v6989_v24 = vld [vmem:[#allocation64_spill] sm:$0xff]  ;;  %v6990_v7 = vld [vmem:[#allocation65_spill] sm:$0xff] }
 0x647   :  { %v2192_v38 = vrot.slane %v2179_v6, %v5070_v29  ;;  %v2188_v4 = vrot.slane %v2179_v6, %v5067_v21  ;;  %v6991_v6 = vld [vmem:[#allocation66_spill] sm:$0xff] }
 0x649   :  { %v2196_v15 = vpack.c.bf16 %v2192_v38, %v2192_v38  ;;  %v6041_v5 = vpack.c.bf16 %v2188_v4, %v2188_v4  ;;  %v6992_v38 = vld [vmem:[#allocation67_spill] sm:$0xff]  ;;  %v6993_v4 = vld [vmem:[#allocation68_spill] sm:$0xff] }
 0x64b   :  { %2229 = vmatprep.mubr.bf16.mxu0 %v2196_v15  ;;  %2270 = vmatprep.mubr.bf16.mxu1 %v2196_v15 }
 0x64c   :  { %2230 = vmatmul.mubr.bf16.vlgmr.msra.gmra.mxu0 %v6041_v5  ;;  %2271 = vmatmul.mubr.bf16.vlgmr.msra.gmra.mxu1 %v6041_v5 }
 0x64d   :  { %2280 = vmatpush1.bf16.msra.mxu0 %v5775_v58  ;;  %2321 = vmatpush1.bf16.msra.mxu1 %v5778_v47 }
 0x64e   :  { %2311 = vmatprep.mubr.bf16.mxu0 %v2196_v15  ;;  %2352 = vmatprep.mubr.bf16.mxu1 %v2196_v15  ;;  %v6994_v15 = vld [vmem:[#allocation69_spill] sm:$0xff] }
 0x64f   :  { %2281 = vmatprep.subr.bf16.mxu0 %v5781_v49  ;;  %2322 = vmatprep.subr.bf16.mxu1 %v5784_v55 }
 0x651   :  { %2282 = vmatpush1.bf16.msra.mxu0 %v5787_v36  ;;  %2323 = vmatpush1.bf16.msra.mxu1 %v5790_v42 }
 0x652   :  { %2283 = vmatprep.subr.bf16.mxu0 %v5793_v39  ;;  %2324 = vmatprep.subr.bf16.mxu1 %v5796_v14 }
 0x655   :  { %2284 = vmatpush1.bf16.msra.mxu0 %v5799_v41  ;;  %2325 = vmatpush1.bf16.msra.mxu1 %v5802_v43 }
 0x656   :  { %2285 = vmatprep.subr.bf16.mxu0 %v5805_v40  ;;  %2326 = vmatprep.subr.bf16.mxu1 %v5808_v16 }
 0x659   :  { %2286 = vmatpush1.bf16.msra.mxu0 %v5811_v17  ;;  %2327 = vmatpush1.bf16.msra.mxu1 %v5814_v51 }
 0x65a   :  { %2287 = vmatprep.subr.bf16.mxu0 %v6975_v48  ;;  %2328 = vmatprep.subr.bf16.mxu1 %v6976_v2 }
 0x65d   :  { %2288 = vmatpush1.bf16.msra.mxu0 %v6977_v3  ;;  %2329 = vmatpush1.bf16.msra.mxu1 %v6978_v34 }
 0x65e   :  { %2289 = vmatprep.subr.bf16.mxu0 %v6979_v28  ;;  %2330 = vmatprep.subr.bf16.mxu1 %v6980_v30 }
 0x661   :  { %2290 = vmatpush1.bf16.msra.mxu0 %v6981_v1  ;;  %2331 = vmatpush1.bf16.msra.mxu1 %v6982_v63 }
 0x662   :  { %2291 = vmatprep.subr.bf16.mxu0 %v6983_v10  ;;  %2332 = vmatprep.subr.bf16.mxu1 %v6984_v0  ;;  %v6995_v0 = vld [vmem:[#allocation70_spill] sm:$0xff] }
 0x665   :  { %2292 = vmatpush1.bf16.msra.mxu0 %v6985_v26  ;;  %2333 = vmatpush1.bf16.msra.mxu1 %v6986_v35  ;;  %v6996_v26 = vld [vmem:[#allocation71_spill] sm:$0xff]  ;;  %v6997_v35 = vld [vmem:[#allocation72_spill] sm:$0xff] }
 0x666   :  { %2293 = vmatprep.subr.bf16.mxu0 %v6987_v45  ;;  %2334 = vmatprep.subr.bf16.mxu1 %v6988_v33  ;;  %v6998_v45 = vld [vmem:[#allocation73_spill] sm:$0xff]  ;;  %v6999_v33 = vld [vmem:[#allocation74_spill] sm:$0xff] }
 0x669   :  { %2294 = vmatpush1.bf16.msra.mxu0 %v6989_v24  ;;  %2335 = vmatpush1.bf16.msra.mxu1 %v6990_v7  ;;  %v7000_v24 = vld [vmem:[#allocation75_spill] sm:$0xff]  ;;  %v7001_v7 = vld [vmem:[#allocation76_spill] sm:$0xff] }
 0x66a   :  { %2295 = vmatprep.subr.bf16.mxu0 %v6991_v6  ;;  %2336 = vmatprep.subr.bf16.mxu1 %v6992_v38  ;;  %v7002_v6 = vld [vmem:[#allocation77_spill] sm:$0xff]  ;;  %v7003_v38 = vld [vmem:[#allocation78_spill] sm:$0xff] }
 0x66d   :  { %2296 = vmatpush2.bf16.msra.mxu0 %v6993_v4  ;;  %2337 = vmatpush2.bf16.msra.mxu1 %v6994_v15  ;;  %v7004_v4 = vld [vmem:[#allocation79_spill] sm:$0xff]  ;;  %v7005_v15 = vld [vmem:[#allocation80_spill] sm:$0xff] }
 0x66e   :  { %2297 = vmatprep.subr.bf16.mxu0 %v6995_v0  ;;  %2338 = vmatprep.subr.bf16.mxu1 %v6996_v26  ;;  %v7006_v0 = vld [vmem:[#allocation81_spill] sm:$0xff]  ;;  %v7007_v26 = vld [vmem:[#allocation82_spill] sm:$0xff] }
 0x671   :  { %2298 = vmatpush2.bf16.msra.mxu0 %v6997_v35  ;;  %2339 = vmatpush2.bf16.msra.mxu1 %v6998_v45  ;;  %v7008_v35 = vld [vmem:[#allocation83_spill] sm:$0xff]  ;;  %v7009_v45 = vld [vmem:[#allocation84_spill] sm:$0xff] }
 0x672   :  { %2299 = vmatprep.subr.bf16.mxu0 %v6999_v33  ;;  %2340 = vmatprep.subr.bf16.mxu1 %v7000_v24  ;;  %v7010_v33 = vld [vmem:[#allocation85_spill] sm:$0xff]  ;;  %v7011_v24 = vld [vmem:[#allocation86_spill] sm:$0xff] }
 0x675   :  { %2300 = vmatpush2.bf16.msra.mxu0 %v7001_v7  ;;  %2341 = vmatpush2.bf16.msra.mxu1 %v7002_v6  ;;  %v7012_v7 = vld [vmem:[#allocation87_spill] sm:$0xff]  ;;  %v7013_v6 = vld [vmem:[#allocation88_spill] sm:$0xff] }
 0x676   :  { %2301 = vmatprep.subr.bf16.mxu0 %v7003_v38  ;;  %2342 = vmatprep.subr.bf16.mxu1 %v7004_v4  ;;  %v7014_v38 = vld [vmem:[#allocation89_spill] sm:$0xff]  ;;  %v7015_v4 = vld [vmem:[#allocation90_spill] sm:$0xff] }
 0x679   :  { %2302 = vmatpush2.bf16.msra.mxu0 %v7005_v15  ;;  %2343 = vmatpush2.bf16.msra.mxu1 %v7006_v0  ;;  %v7016_v15 = vld [vmem:[#allocation100_spill] sm:$0xff] }
 0x67a   :  { %2303 = vmatprep.subr.bf16.mxu0 %v7007_v26  ;;  %2344 = vmatprep.subr.bf16.mxu1 %v7008_v35 }
 0x67d   :  { %2304 = vmatpush2.bf16.msra.mxu0 %v7009_v45  ;;  %2345 = vmatpush2.bf16.msra.mxu1 %v7010_v33 }
 0x67e   :  { %2305 = vmatprep.subr.bf16.mxu0 %v7011_v24  ;;  %2346 = vmatprep.subr.bf16.mxu1 %v7012_v7  ;;  %v6107_v7 = vld [vmem:[#allocation11 + $0x2dc] ss:$52 sps:$4 sm:$0xff]  }
 0x681   :  { %2306 = vmatpush2.bf16.msra.mxu0 %v7013_v6  ;;  %2347 = vmatpush2.bf16.msra.mxu1 %v7014_v38  ;;  %v6110_v38 = vld [vmem:[#allocation11 + $0x2e4] ss:$52 sps:$4 sm:$0xff]  }
 0x682   :  { %2307 = vmatprep.subr.bf16.mxu0 %v7015_v4  ;;  %2348 = vmatprep.subr.bf16.mxu1 %v7016_v15 }
 0x685   :  { %2308 = vmatpush2.bf16.msra.mxu0 %v5943_v44  ;;  %2349 = vmatpush2.bf16.msra.mxu1 %v5946_v52  ;;  %v6115_v52 = vld [vmem:[#allocation11 + $0x2d8] ss:$52 sps:$4 sm:$0xff]  }
 0x686   :  { %2309 = vmatprep.subr.bf16.mxu0 %v5949_v53  ;;  %2350 = vmatprep.subr.bf16.mxu1 %v5952_v50  ;;  %v6118_v50 = vld [vmem:[#allocation11 + $0x2e0] ss:$52 sps:$4 sm:$0xff]  }
 0x687   :  { %7017 = vst [vmem:[#allocation104_spill] sm:$0xff] %v6118_v50 }
 0x689   :  { %2310 = vmatpush2.bf16.msra.mxu0 %v5955_v54  ;;  %2351 = vmatpush2.bf16.msra.mxu1 %v5958_v46 }
 0x68a   :  { %2455 = vmatprep.subr.bf16.mxu0 %v6107_v7  ;;  %2496 = vmatprep.subr.bf16.mxu1 %v6110_v38 }
 0x68c   :  { %2312 = vmatmul.mubr.bf16.vlgmr.msra.gmra.mxu0 %v6041_v5  ;;  %2353 = vmatmul.mubr.bf16.vlgmr.msra.gmra.mxu1 %v6041_v5  ;;  %v7037_v5 = vld [vmem:[#allocation17_spill] sm:$0xff] }
 0x68d   :  { %2456 = vmatpush1.bf16.msra.mxu0 %v6115_v52  ;;  %2497 = vmatpush1.bf16.msra.mxu1 %v6118_v50 }
 0x68e   :  { %2457 = vmatprep.subr.bf16.mxu0 %v5573_v25  ;;  %2498 = vmatprep.subr.bf16.mxu1 %v5576_v22  ;;  %v7018_v25 = vld [vmem:[#allocation51_spill] sm:$0xff]  ;;  %v7019_v22 = vld [vmem:[#allocation52_spill] sm:$0xff] }
 0x691   :  { %2458 = vmatpush1.bf16.msra.mxu0 %v5579_v20  ;;  %2499 = vmatpush1.bf16.msra.mxu1 %v5582_v31  ;;  %v7020_v20 = vld [vmem:[#allocation53_spill] sm:$0xff]  ;;  %v7021_v31 = vld [vmem:[#allocation54_spill] sm:$0xff] }
 0x692   :  { %2459 = vmatprep.subr.bf16.mxu0 %v5585_v27  ;;  %2500 = vmatprep.subr.bf16.mxu1 %v5588_v32  ;;  %v7022_v27 = vld [vmem:[#allocation55_spill] sm:$0xff]  ;;  %v7023_v32 = vld [vmem:[#allocation56_spill] sm:$0xff] }
 0x695   :  { %2460 = vmatpush1.bf16.msra.mxu0 %v5591_v13  ;;  %2501 = vmatpush1.bf16.msra.mxu1 %v5594_v23  ;;  %v7024_v13 = vld [vmem:[#allocation57_spill] sm:$0xff]  ;;  %v7025_v23 = vld [vmem:[#allocation58_spill] sm:$0xff] }
 0x696   :  { %2461 = vmatprep.subr.bf16.mxu0 %v5597_v18  ;;  %2502 = vmatprep.subr.bf16.mxu1 %v5600_v8  ;;  %v7026_v18 = vld [vmem:[#allocation59_spill] sm:$0xff] }
 0x697   :  { %v7027_v8 = vld [vmem:[#allocation91_spill] sm:$0xff] }
 0x699   :  { %2462 = vmatpush1.bf16.msra.mxu0 %v5603_v12  ;;  %2503 = vmatpush1.bf16.msra.mxu1 %v5606_v11  ;;  %v7028_v12 = vld [vmem:[#allocation92_spill] sm:$0xff]  ;;  %v7029_v11 = vld [vmem:[#allocation93_spill] sm:$0xff] }
 0x69a   :  { %2463 = vmatprep.subr.bf16.mxu0 %v5609_v9  ;;  %2504 = vmatprep.subr.bf16.mxu1 %v5612_v57  ;;  %v7030_v9 = vld [vmem:[#allocation94_spill] sm:$0xff]  ;;  %v7031_v57 = vld [vmem:[#allocation95_spill] sm:$0xff] }
 0x69d   :  { %2464 = vmatpush1.bf16.msra.mxu0 %v5615_v56  ;;  %2505 = vmatpush1.bf16.msra.mxu1 %v5618_v59  ;;  %v7032_v56 = vld [vmem:[#allocation96_spill] sm:$0xff]  ;;  %v7033_v59 = vld [vmem:[#allocation97_spill] sm:$0xff] }
 0x69e   :  { %2465 = vmatprep.subr.bf16.mxu0 %v5621_v60  ;;  %2506 = vmatprep.subr.bf16.mxu1 %v5624_v61  ;;  %v7034_v60 = vld [vmem:[#allocation98_spill] sm:$0xff]  ;;  %v7035_v61 = vld [vmem:[#allocation99_spill] sm:$0xff] }
 0x6a1   :  { %2466 = vmatpush1.bf16.msra.mxu0 %v5627_v62  ;;  %2507 = vmatpush1.bf16.msra.mxu1 %v7018_v25  ;;  %v7036_v62 = vld [vmem:[#allocation101_spill] sm:$0xff]  ;;  %v7038_v25 = vld [vmem:[#allocation18_spill] sm:$0xff] }
 0x6a2   :  { %2467 = vmatprep.subr.bf16.mxu0 %v7019_v22  ;;  %2508 = vmatprep.subr.bf16.mxu1 %v7020_v20  ;;  %v7039_v22 = vld [vmem:[#allocation19_spill] sm:$0xff]  ;;  %v7040_v20 = vld [vmem:[#allocation20_spill] sm:$0xff] }
 0x6a5   :  { %2468 = vmatpush1.bf16.msra.mxu0 %v7021_v31  ;;  %2509 = vmatpush1.bf16.msra.mxu1 %v7022_v27  ;;  %v7041_v31 = vld [vmem:[#allocation21_spill] sm:$0xff]  ;;  %v7042_v27 = vld [vmem:[#allocation22_spill] sm:$0xff] }
 0x6a6   :  { %2469 = vmatprep.subr.bf16.mxu0 %v7023_v32  ;;  %2510 = vmatprep.subr.bf16.mxu1 %v7024_v13  ;;  %v7043_v32 = vld [vmem:[#allocation23_spill] sm:$0xff]  ;;  %v7044_v13 = vld [vmem:[#allocation24_spill] sm:$0xff] }
 0x6a9   :  { %2470 = vmatpush1.bf16.msra.mxu0 %v7025_v23  ;;  %2511 = vmatpush1.bf16.msra.mxu1 %v7026_v18  ;;  %v7045_v23 = vld [vmem:[#allocation25_spill] sm:$0xff]  ;;  %v7046_v18 = vld [vmem:[#allocation26_spill] sm:$0xff] }
 0x6aa   :  { %2471 = vmatprep.subr.bf16.mxu0 %v7027_v8  ;;  %2512 = vmatprep.subr.bf16.mxu1 %v7028_v12  ;;  %v7047_v8 = vld [vmem:[#allocation27_spill] sm:$0xff]  ;;  %v7048_v12 = vld [vmem:[#allocation28_spill] sm:$0xff] }
 0x6ad   :  { %2472 = vmatpush2.bf16.msra.mxu0 %v7029_v11  ;;  %2513 = vmatpush2.bf16.msra.mxu1 %v7030_v9  ;;  %v7049_v11 = vld [vmem:[#allocation29_spill] sm:$0xff]  ;;  %v7050_v9 = vld [vmem:[#allocation30_spill] sm:$0xff] }
 0x6ae   :  { %2473 = vmatprep.subr.bf16.mxu0 %v7031_v57  ;;  %2514 = vmatprep.subr.bf16.mxu1 %v7032_v56  ;;  %v7051_v57 = vld [vmem:[#allocation31_spill] sm:$0xff]  ;;  %v7052_v56 = vld [vmem:[#allocation32_spill] sm:$0xff] }
 0x6b1   :  { %2474 = vmatpush2.bf16.msra.mxu0 %v7033_v59  ;;  %2515 = vmatpush2.bf16.msra.mxu1 %v7034_v60  ;;  %v7053_v59 = vld [vmem:[#allocation33_spill] sm:$0xff]  ;;  %v7054_v60 = vld [vmem:[#allocation34_spill] sm:$0xff] }
 0x6b2   :  { %2475 = vmatprep.subr.bf16.mxu0 %v7035_v61  ;;  %2516 = vmatprep.subr.bf16.mxu1 %v7036_v62  ;;  %v7055_v61 = vld [vmem:[#allocation35_spill] sm:$0xff]  ;;  %v7056_v62 = vld [vmem:[#allocation36_spill] sm:$0xff] }
 0x6b5   :  { %2476 = vmatpush2.bf16.msra.mxu0 %v7037_v5  ;;  %2517 = vmatpush2.bf16.msra.mxu1 %v7038_v25  ;;  %v7057_v5 = vld [vmem:[#allocation37_spill] sm:$0xff]  ;;  %v7058_v25 = vld [vmem:[#allocation38_spill] sm:$0xff] }
 0x6b6   :  { %2477 = vmatprep.subr.bf16.mxu0 %v7039_v22  ;;  %2518 = vmatprep.subr.bf16.mxu1 %v7040_v20  ;;  %v7059_v22 = vld [vmem:[#allocation39_spill] sm:$0xff]  ;;  %v7060_v20 = vld [vmem:[#allocation40_spill] sm:$0xff] }
 0x6b9   :  { %2478 = vmatpush2.bf16.msra.mxu0 %v7041_v31  ;;  %2519 = vmatpush2.bf16.msra.mxu1 %v7042_v27 }
 0x6ba   :  { %2479 = vmatprep.subr.bf16.mxu0 %v7043_v32  ;;  %2520 = vmatprep.subr.bf16.mxu1 %v7044_v13 }
 0x6bd   :  { %2480 = vmatpush2.bf16.msra.mxu0 %v7045_v23  ;;  %2521 = vmatpush2.bf16.msra.mxu1 %v7046_v18 }
 0x6be   :  { %2481 = vmatprep.subr.bf16.mxu0 %v7047_v8  ;;  %2522 = vmatprep.subr.bf16.mxu1 %v7048_v12 }
 0x6c1   :  { %2482 = vmatpush2.bf16.msra.mxu0 %v7049_v11  ;;  %2523 = vmatpush2.bf16.msra.mxu1 %v7050_v9 }
 0x6c2   :  { %2483 = vmatprep.subr.bf16.mxu0 %v7051_v57  ;;  %2524 = vmatprep.subr.bf16.mxu1 %v7052_v56 }
 0x6c5   :  { %2484 = vmatpush2.bf16.msra.mxu0 %v7053_v59  ;;  %2525 = vmatpush2.bf16.msra.mxu1 %v7054_v60 }
 0x6c6   :  { %2485 = vmatprep.subr.bf16.mxu0 %v7055_v61  ;;  %2526 = vmatprep.subr.bf16.mxu1 %v7056_v62 }
 0x6c9   :  { %2486 = vmatpush2.bf16.msra.mxu0 %v7057_v5  ;;  %2527 = vmatpush2.bf16.msra.mxu1 %v7058_v25 }
 0x6ca   :  { %2537 = vmatprep.subr.bf16.mxu0 %v7059_v22  ;;  %2578 = vmatprep.subr.bf16.mxu1 %v7060_v20 }
 0x70c   :  { %v2231_v31 = vpop.f32.mrf.mxu0  ;;  %v2272_v27 = vpop.f32.mrf.mxu1 }
 0x70e   :  { %v2233_v32 = vpop.f32.mrf.mxu0  ;;  %v2274_v13 = vpop.f32.mrf.mxu1 }
 0x70f   :  { %v2369_v23 = vcombine.low %v2231_v31, %v2233_v32  ;;  %v2370_v18 = vcombine.low %v2272_v27, %v2274_v13 }
 0x710   :  { %v2235_v8 = vpop.f32.mrf.mxu0  ;;  %v2276_v12 = vpop.f32.mrf.mxu1 }
 0x711   :  { %v2379_v11 = vrot.slane %v2369_v23, %v5333_v19  ;;  %v2386_v9 = vrot.slane %v2370_v18, %v5333_v19  ;;  %v2182_v8 = vld [vmem:[#allocation2 + $0x5] ss:$8 sm:$0xf0] }
 0x712   :  { %v2236_v57 = vpop.f32.mrf.mxu0  ;;  %v2277_v56 = vpop.f32.mrf.mxu1 }
 0x713   :  { %v2401_v59 = vcombine.low %v2379_v11, %v2386_v9  ;;  %v2181_v11 = vld [vmem:[#allocation2 + $0x5] ss:$8 sm:$0xf] }
 0x714   :  { %v2183_v9 = vor.u32 %v2182_v8, %v2181_v11  ;;  %v4552_v11 = vld [vmem:[#allocation11 + $0x144] ss:$52 sps:$4 sm:$0xff]  }
 0x715   :  { %v2409_v18 = vrot.slane %v2401_v59, %v5333_v19 }
 0x74c   :  { %v2313_v60 = vpop.f32.mrf.mxu0  ;;  %v2354_v61 = vpop.f32.mrf.mxu1 }
 0x74e   :  { %v2315_v62 = vpop.f32.mrf.mxu0  ;;  %v2356_v5 = vpop.f32.mrf.mxu1 }
 0x74f   :  { %v2371_v25 = vcombine.low %v2313_v60, %v2315_v62  ;;  %v2372_v22 = vcombine.low %v2354_v61, %v2356_v5 }
 0x750   :  { %v2317_v20 = vpop.f32.mrf.mxu0  ;;  %v2358_v50 = vpop.f32.mrf.mxu1 }
 0x751   :  { %v2393_v31 = vrot.slane %v2371_v25, %v5333_v19  ;;  %v2400_v27 = vrot.slane %v2372_v22, %v5333_v19 }
 0x752   :  { %v2318_v32 = vpop.f32.mrf.mxu0  ;;  %v2359_v13 = vpop.f32.mrf.mxu1 }
 0x753   :  { %v2402_v23 = vcombine.low %v2393_v31, %v2400_v27 }
 0x755   :  { %v2416_v12 = vrot.slane %v2402_v23, %v5333_v19 }
 0x757   :  { %v2417_v57 = vcombine.low %v2409_v18, %v2416_v12 }
 0x759   :  { %v2419_v56 = vadd.f32 %v2417_v57, %v2183_v9  ;;  %v4553_v9 = vld [vmem:[#allocation11 + $0x138] ss:$52 sps:$4 sm:$0xff]   ;;  %v4554_v57 = vld [vmem:[#allocation11 + $0x140] ss:$52 sps:$4 sm:$0xff]  }
 0x75b   :  { %v2420_v60 = vmul.f32 0.5, %v2419_v56  ;;  %v2425_v61 = vrot.slane %v2419_v56, 6  ;;  %v4555_v56 = vld [vmem:[#allocation11 + $0xd4] ss:$52 sps:$4 sm:$0xff]  }
 0x75d   :  { %4387 = vtanh.f32 %v2420_v60  ;;  %v4556_v60 = vld [vmem:[#allocation11 + $0xdc] ss:$52 sps:$4 sm:$0xff]  }
 0x75e   :  { %4389 = vtanh.f32 %v2425_v61  ;;  %v4557_v61 = vld [vmem:[#allocation11 + $0xd0] ss:$52 sps:$4 sm:$0xff]  }
 0x76a   :  { %v4388_v50 = vpop.eup %4387 }
 0x76b   :  { %v2422_v62 = vadd.f32 1.0, %v4388_v50  ;;  %v4390_v22 = vpop.eup %4389  ;;  %v4558_v50 = vld [vmem:[#allocation11 + $0xd8] ss:$52 sps:$4 sm:$0xff]  }
 0x76d   :  { %v2423_v5 = vmul.f32 0.5, %v2422_v62  ;;  %v4559_v62 = vld [vmem:[#allocation11 + $0x6c] ss:$52 sps:$4 sm:$0xff]  }
 0x76f   :  { %v2429_v25 = vrot.slane %v2423_v5, 2  ;;  %v2432_v31 = vmul.f32 %v4390_v22, %v2423_v5  ;;  %v2435_v59 = vrot.slane %v2423_v5, 4  ;;  %v4560_v5 = vld [vmem:[#allocation11 + $0x74] ss:$52 sps:$4 sm:$0xff]   ;;  %v4562_v22 = vld [vmem:[#allocation11 + $0x70] ss:$52 sps:$4 sm:$0xff]  }
 0x771   :  { %v2431_v20 = vmul.f32 %v2429_v25, %v6036_v37  ;;  %v7075_v37 = vld [vmem:[#allocation73_spill] sm:$0xff] }
 0x772   :  { %v4561_v25 = vld [vmem:[#allocation11 + $0x68] ss:$52 sps:$4 sm:$0xff]  }
 0x773   :  { %v6190_v27 = vadd.f32 %v2432_v31, %v2431_v20  ;;  %v4563_v20 = vld [vmem:[#allocation11 + $0x4] ss:$52 sps:$4 sm:$0xff]   ;;  %v4564_v31 = vld [vmem:[#allocation11 + $0xc] ss:$52 sps:$4 sm:$0xff]  }
 0x775   :  { %4391 = vtanh.f32 %v6190_v27 }
 0x782   :  { %v4392_v32 = vpop.eup %4391 }
 0x783   :  { %v2437_v13 = vmul.f32 %v4392_v32, %v2435_v59  ;;  %v4565_v59 = vld [vmem:[#allocation11] ss:$52 sps:$4 sm:$0xff]   ;;  %v4566_v32 = vld [vmem:[#allocation11 + $0x8] ss:$52 sps:$4 sm:$0xff]  }
 0x785   :  { %v2450_v23 = vrot.slane %v2437_v13, %v5070_v29  ;;  %v2446_v8 = vrot.slane %v2437_v13, %v5067_v21  ;;  %v4567_v13 = vld [vmem:[#allocation11 + $0x61c] ss:$52 sps:$4 sm:$0xff]  }
 0x787   :  { %v2454_v18 = vpack.c.bf16 %v2450_v23, %v2450_v23  ;;  %v6195_v12 = vpack.c.bf16 %v2446_v8, %v2446_v8  ;;  %v4568_v23 = vld [vmem:[#allocation11 + $0x624] ss:$52 sps:$4 sm:$0xff]  }
 0x788   :  { %v4569_v8 = vld [vmem:[#allocation11 + $0x618] ss:$52 sps:$4 sm:$0xff]  }
 0x789   :  { %2487 = vmatprep.mubr.bf16.mxu0 %v2454_v18  ;;  %2528 = vmatprep.mubr.bf16.mxu1 %v2454_v18 }
 0x78a   :  { %2488 = vmatmul.mubr.bf16.vlgmr.msra.gmra.mxu0 %v6195_v12  ;;  %2529 = vmatmul.mubr.bf16.vlgmr.msra.gmra.mxu1 %v6195_v12 }
 0x78b   :  { %2538 = vmatpush1.bf16.msra.mxu0 %v5775_v58  ;;  %2579 = vmatpush1.bf16.msra.mxu1 %v5778_v47  ;;  %v7061_v58 = vld [vmem:[#allocation50_spill] sm:$0xff]  ;;  %v7062_v47 = vld [vmem:[#allocation60_spill] sm:$0xff] }
 0x78c   :  { %2569 = vmatprep.mubr.bf16.mxu0 %v2454_v18  ;;  %2610 = vmatprep.mubr.bf16.mxu1 %v2454_v18  ;;  %v4570_v18 = vld [vmem:[#allocation11 + $0x620] ss:$52 sps:$4 sm:$0xff]  }
 0x78d   :  { %2539 = vmatprep.subr.bf16.mxu0 %v5781_v49  ;;  %2580 = vmatprep.subr.bf16.mxu1 %v5784_v55  ;;  %v7063_v49 = vld [vmem:[#allocation61_spill] sm:$0xff]  ;;  %v7064_v55 = vld [vmem:[#allocation62_spill] sm:$0xff] }
 0x78f   :  { %2540 = vmatpush1.bf16.msra.mxu0 %v5787_v36  ;;  %2581 = vmatpush1.bf16.msra.mxu1 %v5790_v42  ;;  %v7065_v36 = vld [vmem:[#allocation63_spill] sm:$0xff]  ;;  %v7066_v42 = vld [vmem:[#allocation64_spill] sm:$0xff] }
 0x790   :  { %2541 = vmatprep.subr.bf16.mxu0 %v5793_v39  ;;  %2582 = vmatprep.subr.bf16.mxu1 %v5796_v14  ;;  %v7067_v39 = vld [vmem:[#allocation65_spill] sm:$0xff]  ;;  %v7068_v14 = vld [vmem:[#allocation66_spill] sm:$0xff] }
 0x793   :  { %2542 = vmatpush1.bf16.msra.mxu0 %v5799_v41  ;;  %2583 = vmatpush1.bf16.msra.mxu1 %v5802_v43  ;;  %v7069_v41 = vld [vmem:[#allocation67_spill] sm:$0xff]  ;;  %v7070_v43 = vld [vmem:[#allocation68_spill] sm:$0xff] }
 0x794   :  { %2543 = vmatprep.subr.bf16.mxu0 %v5805_v40  ;;  %2584 = vmatprep.subr.bf16.mxu1 %v5808_v16  ;;  %v7071_v40 = vld [vmem:[#allocation69_spill] sm:$0xff]  ;;  %v7072_v16 = vld [vmem:[#allocation70_spill] sm:$0xff] }
 0x797   :  { %2544 = vmatpush1.bf16.msra.mxu0 %v5811_v17  ;;  %2585 = vmatpush1.bf16.msra.mxu1 %v5814_v51  ;;  %v7073_v17 = vld [vmem:[#allocation71_spill] sm:$0xff]  ;;  %v7074_v51 = vld [vmem:[#allocation72_spill] sm:$0xff] }
 0x798   :  { %2545 = vmatprep.subr.bf16.mxu0 %v6975_v48  ;;  %2586 = vmatprep.subr.bf16.mxu1 %v6976_v2  ;;  %v7076_v48 = vld [vmem:[#allocation74_spill] sm:$0xff]  ;;  %v7077_v2 = vld [vmem:[#allocation75_spill] sm:$0xff] }
 0x79b   :  { %2546 = vmatpush1.bf16.msra.mxu0 %v6977_v3  ;;  %2587 = vmatpush1.bf16.msra.mxu1 %v6978_v34  ;;  %v7078_v3 = vld [vmem:[#allocation76_spill] sm:$0xff]  ;;  %v7079_v34 = vld [vmem:[#allocation77_spill] sm:$0xff] }
 0x79c   :  { %2547 = vmatprep.subr.bf16.mxu0 %v6979_v28  ;;  %2588 = vmatprep.subr.bf16.mxu1 %v6980_v30  ;;  %v7080_v28 = vld [vmem:[#allocation78_spill] sm:$0xff]  ;;  %v7081_v30 = vld [vmem:[#allocation79_spill] sm:$0xff] }
 0x79f   :  { %2548 = vmatpush1.bf16.msra.mxu0 %v6981_v1  ;;  %2589 = vmatpush1.bf16.msra.mxu1 %v6982_v63  ;;  %v7082_v1 = vld [vmem:[#allocation80_spill] sm:$0xff]  ;;  %v7083_v63 = vld [vmem:[#allocation87_spill] sm:$0xff] }
 0x7a0   :  { %2549 = vmatprep.subr.bf16.mxu0 %v6983_v10  ;;  %2590 = vmatprep.subr.bf16.mxu1 %v7061_v58  ;;  %v7084_v10 = vld [vmem:[#allocation89_spill] sm:$0xff]  ;;  %v4572_v58 = vld [vmem:[#allocation11 + $0x5bc] ss:$52 sps:$4 sm:$0xff]  }
 0x7a3   :  { %2550 = vmatpush1.bf16.msra.mxu0 %v7062_v47  ;;  %2591 = vmatpush1.bf16.msra.mxu1 %v7063_v49  ;;  %v4573_v47 = vld [vmem:[#allocation11 + $0x5b0] ss:$52 sps:$4 sm:$0xff]   ;;  %v4574_v49 = vld [vmem:[#allocation11 + $0x5b8] ss:$52 sps:$4 sm:$0xff]  }
 0x7a4   :  { %2551 = vmatprep.subr.bf16.mxu0 %v7064_v55  ;;  %2592 = vmatprep.subr.bf16.mxu1 %v7065_v36  ;;  %v4575_v55 = vld [vmem:[#allocation11 + $0x54c] ss:$52 sps:$4 sm:$0xff]   ;;  %v4576_v36 = vld [vmem:[#allocation11 + $0x554] ss:$52 sps:$4 sm:$0xff]  }
 0x7a7   :  { %2552 = vmatpush1.bf16.msra.mxu0 %v7066_v42  ;;  %2593 = vmatpush1.bf16.msra.mxu1 %v7067_v39  ;;  %v4577_v42 = vld [vmem:[#allocation11 + $0x548] ss:$52 sps:$4 sm:$0xff]   ;;  %v4578_v39 = vld [vmem:[#allocation11 + $0x550] ss:$52 sps:$4 sm:$0xff]  }
 0x7a8   :  { %2553 = vmatprep.subr.bf16.mxu0 %v7068_v14  ;;  %2594 = vmatprep.subr.bf16.mxu1 %v7069_v41  ;;  %v4579_v14 = vld [vmem:[#allocation11 + $0x4e4] ss:$52 sps:$4 sm:$0xff]   ;;  %v4580_v41 = vld [vmem:[#allocation11 + $0x4ec] ss:$52 sps:$4 sm:$0xff]  }
 0x7ab   :  { %2554 = vmatpush2.bf16.msra.mxu0 %v7070_v43  ;;  %2595 = vmatpush2.bf16.msra.mxu1 %v7071_v40  ;;  %v4581_v43 = vld [vmem:[#allocation11 + $0x4e0] ss:$52 sps:$4 sm:$0xff]   ;;  %v4582_v40 = vld [vmem:[#allocation11 + $0x4e8] ss:$52 sps:$4 sm:$0xff]  }
 0x7ac   :  { %2555 = vmatprep.subr.bf16.mxu0 %v7072_v16  ;;  %2596 = vmatprep.subr.bf16.mxu1 %v7073_v17  ;;  %v4583_v16 = vld [vmem:[#allocation11 + $0x47c] ss:$52 sps:$4 sm:$0xff]   ;;  %v4584_v17 = vld [vmem:[#allocation11 + $0x484] ss:$52 sps:$4 sm:$0xff]  }
 0x7af   :  { %2556 = vmatpush2.bf16.msra.mxu0 %v7074_v51  ;;  %2597 = vmatpush2.bf16.msra.mxu1 %v7075_v37  ;;  %v4585_v51 = vld [vmem:[#allocation11 + $0x478] ss:$52 sps:$4 sm:$0xff]   ;;  %v4586_v37 = vld [vmem:[#allocation11 + $0x480] ss:$52 sps:$4 sm:$0xff]  }
 0x7b0   :  { %2557 = vmatprep.subr.bf16.mxu0 %v7076_v48  ;;  %2598 = vmatprep.subr.bf16.mxu1 %v7077_v2  ;;  %v4587_v48 = vld [vmem:[#allocation11 + $0x414] ss:$52 sps:$4 sm:$0xff]   ;;  %v4588_v2 = vld [vmem:[#allocation11 + $0x41c] ss:$52 sps:$4 sm:$0xff]  }
 0x7b3   :  { %2558 = vmatpush2.bf16.msra.mxu0 %v7078_v3  ;;  %2599 = vmatpush2.bf16.msra.mxu1 %v7079_v34  ;;  %v4589_v3 = vld [vmem:[#allocation11 + $0x410] ss:$52 sps:$4 sm:$0xff]   ;;  %v4590_v34 = vld [vmem:[#allocation11 + $0x418] ss:$52 sps:$4 sm:$0xff]  }
 0x7b4   :  { %2559 = vmatprep.subr.bf16.mxu0 %v7080_v28  ;;  %2600 = vmatprep.subr.bf16.mxu1 %v7081_v30  ;;  %v4591_v28 = vld [vmem:[#allocation11 + $0x3ac] ss:$52 sps:$4 sm:$0xff]   ;;  %v4592_v30 = vld [vmem:[#allocation11 + $0x3b4] ss:$52 sps:$4 sm:$0xff]  }
 0x7b7   :  { %2560 = vmatpush2.bf16.msra.mxu0 %v7082_v1  ;;  %2601 = vmatpush2.bf16.msra.mxu1 %v7006_v0  ;;  %v7085_v0 = vld [vmem:[#allocation102_spill] sm:$0xff]  ;;  %v4593_v1 = vld [vmem:[#allocation11 + $0x3a8] ss:$52 sps:$4 sm:$0xff]  }
 0x7b8   :  { %2561 = vmatprep.subr.bf16.mxu0 %v7007_v26  ;;  %2602 = vmatprep.subr.bf16.mxu1 %v7008_v35  ;;  %v7086_v26 = vld [vmem:[#allocation103_spill] sm:$0xff]  ;;  %v4539_v35 = vld [vmem:[#allocation11 + $0x274] ss:$52 sps:$4 sm:$0xff]  }
 0x7bb   :  { %2562 = vmatpush2.bf16.msra.mxu0 %v7009_v45  ;;  %2603 = vmatpush2.bf16.msra.mxu1 %v7010_v33  ;;  %v4541_v45 = vld [vmem:[#allocation11 + $0x270] ss:$52 sps:$4 sm:$0xff]   ;;  %v4544_v33 = vld [vmem:[#allocation11 + $0x214] ss:$52 sps:$4 sm:$0xff]  }
 0x7bc   :  { %2563 = vmatprep.subr.bf16.mxu0 %v7011_v24  ;;  %2604 = vmatprep.subr.bf16.mxu1 %v7083_v63  ;;  %v4545_v24 = vld [vmem:[#allocation11 + $0x208] ss:$52 sps:$4 sm:$0xff]   ;;  %v4594_v63 = vld [vmem:[#allocation11 + $0x3b0] ss:$52 sps:$4 sm:$0xff]  }
 0x7bf   :  { %2564 = vmatpush2.bf16.msra.mxu0 %v7013_v6  ;;  %2605 = vmatpush2.bf16.msra.mxu1 %v7084_v10  ;;  %v4547_v6 = vld [vmem:[#allocation11 + $0x1a4] ss:$52 sps:$4 sm:$0xff]  }
 0x7c0   :  { %2565 = vmatprep.subr.bf16.mxu0 %v7015_v4  ;;  %2606 = vmatprep.subr.bf16.mxu1 %v7016_v15  ;;  %v4550_v4 = vld [vmem:[#allocation11 + $0x1a8] ss:$52 sps:$4 sm:$0xff]   ;;  %v4595_v10 = vld [vmem:[#allocation11 + $0x344] ss:$52 sps:$4 sm:$0xff]  }
 0x7c1   :  { %v4551_v15 = vld [vmem:[#allocation11 + $0x13c] ss:$52 sps:$4 sm:$0xff]  }
 0x7c3   :  { %2566 = vmatpush2.bf16.msra.mxu0 %v5943_v44  ;;  %2607 = vmatpush2.bf16.msra.mxu1 %v7085_v0  ;;  %v7087_v44 = vld [vmem:[#allocation104_spill] sm:$0xff] }
 0x7c4   :  { %2567 = vmatprep.subr.bf16.mxu0 %v5949_v53  ;;  %2608 = vmatprep.subr.bf16.mxu1 %v7086_v26  ;;  %v4540_v53 = vld [vmem:[#allocation11 + $0x27c] ss:$52 sps:$4 sm:$0xff]   ;;  %v4596_v0 = vld [vmem:[#allocation11 + $0x34c] ss:$52 sps:$4 sm:$0xff]  }
 0x7c5   :  { %v4597_v26 = vld [vmem:[#allocation11 + $0x340] ss:$52 sps:$4 sm:$0xff]  }
 0x7c7   :  { %2568 = vmatpush2.bf16.msra.mxu0 %v5955_v54  ;;  %2609 = vmatpush2.bf16.msra.mxu1 %v5958_v46  ;;  %v4542_v54 = vld [vmem:[#allocation11 + $0x278] ss:$52 sps:$4 sm:$0xff]  }
 0x7c8   :  { %2713 = vmatprep.subr.bf16.mxu0 %v6107_v7  ;;  %2754 = vmatprep.subr.bf16.mxu1 %v6110_v38  ;;  %v4543_v46 = vld [vmem:[#allocation11 + $0x20c] ss:$52 sps:$4 sm:$0xff]   ;;  %v4546_v7 = vld [vmem:[#allocation11 + $0x210] ss:$52 sps:$4 sm:$0xff]  }
 0x7c9   :  { %v4549_v38 = vld [vmem:[#allocation11 + $0x1a0] ss:$52 sps:$4 sm:$0xff]  }
 0x7ca   :  { %2570 = vmatmul.mubr.bf16.vlgmr.msra.gmra.mxu0 %v6195_v12  ;;  %2611 = vmatmul.mubr.bf16.vlgmr.msra.gmra.mxu1 %v6195_v12  ;;  %v4571_v12 = vld [vmem:[#allocation11 + $0x5b4] ss:$52 sps:$4 sm:$0xff]  }
 0x7cb   :  { %2714 = vmatpush1.bf16.msra.mxu0 %v6115_v52  ;;  %2755 = vmatpush1.bf16.msra.mxu1 %v7087_v44  ;;  %v4548_v52 = vld [vmem:[#allocation11 + $0x1ac] ss:$52 sps:$4 sm:$0xff]   ;;  %v4598_v44 = vld [vmem:[#allocation11 + $0x348] ss:$52 sps:$4 sm:$0xff]  }
 0x7cc   :  { %2715 = vmatprep.subr.bf16.mxu0 %v4539_v35  ;;  %2756 = vmatprep.subr.bf16.mxu1 %v4540_v53  ;;  %v4599_v35 = vld [vmem:[#allocation11 + $0x2ec] ss:$52 sps:$4 sm:$0xff]   ;;  %v4600_v53 = vld [vmem:[#allocation11 + $0x2f4] ss:$52 sps:$4 sm:$0xff]  }
 0x7cf   :  { %2716 = vmatpush1.bf16.msra.mxu0 %v4541_v45  ;;  %2757 = vmatpush1.bf16.msra.mxu1 %v4542_v54 }
 0x7d0   :  { %2717 = vmatprep.subr.bf16.mxu0 %v4543_v46  ;;  %2758 = vmatprep.subr.bf16.mxu1 %v4544_v33 }
 0x7d3   :  { %2718 = vmatpush1.bf16.msra.mxu0 %v4545_v24  ;;  %2759 = vmatpush1.bf16.msra.mxu1 %v4546_v7 }
 0x7d4   :  { %2719 = vmatprep.subr.bf16.mxu0 %v4547_v6  ;;  %2760 = vmatprep.subr.bf16.mxu1 %v4548_v52 }
 0x7d7   :  { %2720 = vmatpush1.bf16.msra.mxu0 %v4549_v38  ;;  %2761 = vmatpush1.bf16.msra.mxu1 %v4550_v4 }
 0x7d8   :  { %2721 = vmatprep.subr.bf16.mxu0 %v4551_v15  ;;  %2762 = vmatprep.subr.bf16.mxu1 %v4552_v11 }
 0x7db   :  { %2722 = vmatpush1.bf16.msra.mxu0 %v4553_v9  ;;  %2763 = vmatpush1.bf16.msra.mxu1 %v4554_v57 }
 0x7dc   :  { %2723 = vmatprep.subr.bf16.mxu0 %v4555_v56  ;;  %2764 = vmatprep.subr.bf16.mxu1 %v4556_v60 }
 0x7df   :  { %2724 = vmatpush1.bf16.msra.mxu0 %v4557_v61  ;;  %2765 = vmatpush1.bf16.msra.mxu1 %v4558_v50 }
 0x7e0   :  { %2725 = vmatprep.subr.bf16.mxu0 %v4559_v62  ;;  %2766 = vmatprep.subr.bf16.mxu1 %v4560_v5 }
 0x7e3   :  { %2726 = vmatpush1.bf16.msra.mxu0 %v4561_v25  ;;  %2767 = vmatpush1.bf16.msra.mxu1 %v4562_v22 }
 0x7e4   :  { %2727 = vmatprep.subr.bf16.mxu0 %v4563_v20  ;;  %2768 = vmatprep.subr.bf16.mxu1 %v4564_v31 }
 0x7e7   :  { %2728 = vmatpush1.bf16.msra.mxu0 %v4565_v59  ;;  %2769 = vmatpush1.bf16.msra.mxu1 %v4566_v32 }
 0x7e8   :  { %2729 = vmatprep.subr.bf16.mxu0 %v4567_v13  ;;  %2770 = vmatprep.subr.bf16.mxu1 %v4568_v23  ;;  %v2440_v13 = vld [vmem:[#allocation2 + $0x6] ss:$8 sm:$0xf0] }
 0x7eb   :  { %2730 = vmatpush2.bf16.msra.mxu0 %v4569_v8  ;;  %2771 = vmatpush2.bf16.msra.mxu1 %v4570_v18  ;;  %v2439_v18 = vld [vmem:[#allocation2 + $0x6] ss:$8 sm:$0xf] }
 0x7ec   :  { %2731 = vmatprep.subr.bf16.mxu0 %v4571_v12  ;;  %2772 = vmatprep.subr.bf16.mxu1 %v4572_v58  ;;  %v2441_v12 = vor.u32 %v2440_v13, %v2439_v18  ;;  %v4638_v13 = vld [vmem:[#allocation11 + $0x5c8] ss:$52 sps:$4 sm:$0xff]   ;;  %v4641_v18 = vld [vmem:[#allocation11 + $0x558] ss:$52 sps:$4 sm:$0xff]  }
 0x7ef   :  { %2732 = vmatpush2.bf16.msra.mxu0 %v4573_v47  ;;  %2773 = vmatpush2.bf16.msra.mxu1 %v4574_v49 }
 0x7f0   :  { %2733 = vmatprep.subr.bf16.mxu0 %v4575_v55  ;;  %2774 = vmatprep.subr.bf16.mxu1 %v4576_v36 }
 0x7f3   :  { %2734 = vmatpush2.bf16.msra.mxu0 %v4577_v42  ;;  %2775 = vmatpush2.bf16.msra.mxu1 %v4578_v39 }
 0x7f4   :  { %2735 = vmatprep.subr.bf16.mxu0 %v4579_v14  ;;  %2776 = vmatprep.subr.bf16.mxu1 %v4580_v41 }
 0x7f7   :  { %2736 = vmatpush2.bf16.msra.mxu0 %v4581_v43  ;;  %2777 = vmatpush2.bf16.msra.mxu1 %v4582_v40 }
 0x7f8   :  { %2737 = vmatprep.subr.bf16.mxu0 %v4583_v16  ;;  %2778 = vmatprep.subr.bf16.mxu1 %v4584_v17 }
 0x7fb   :  { %2738 = vmatpush2.bf16.msra.mxu0 %v4585_v51  ;;  %2779 = vmatpush2.bf16.msra.mxu1 %v4586_v37 }
 0x7fc   :  { %2739 = vmatprep.subr.bf16.mxu0 %v4587_v48  ;;  %2780 = vmatprep.subr.bf16.mxu1 %v4588_v2 }
 0x7ff   :  { %2740 = vmatpush2.bf16.msra.mxu0 %v4589_v3  ;;  %2781 = vmatpush2.bf16.msra.mxu1 %v4590_v34 }
 0x800   :  { %2741 = vmatprep.subr.bf16.mxu0 %v4591_v28  ;;  %2782 = vmatprep.subr.bf16.mxu1 %v4592_v30  ;;  %v4602_v28 = vld [vmem:[#allocation11 + $0x2f0] ss:$52 sps:$4 sm:$0xff]  }
 0x801   :  { %v4603_v30 = vld [vmem:[#allocation11 + $0x284] ss:$52 sps:$4 sm:$0xff]  }
 0x803   :  { %2742 = vmatpush2.bf16.msra.mxu0 %v4593_v1  ;;  %2783 = vmatpush2.bf16.msra.mxu1 %v4594_v63  ;;  %v4604_v1 = vld [vmem:[#allocation11 + $0x28c] ss:$52 sps:$4 sm:$0xff]  }
 0x804   :  { %2743 = vmatprep.subr.bf16.mxu0 %v4595_v10  ;;  %2784 = vmatprep.subr.bf16.mxu1 %v4596_v0  ;;  %v4605_v63 = vld [vmem:[#allocation11 + $0x280] ss:$52 sps:$4 sm:$0xff]   ;;  %v4606_v10 = vld [vmem:[#allocation11 + $0x288] ss:$52 sps:$4 sm:$0xff]  }
 0x805   :  { %v4607_v0 = vld [vmem:[#allocation11 + $0x21c] ss:$52 sps:$4 sm:$0xff]  }
 0x807   :  { %2744 = vmatpush2.bf16.msra.mxu0 %v4597_v26  ;;  %2785 = vmatpush2.bf16.msra.mxu1 %v4598_v44  ;;  %v4608_v26 = vld [vmem:[#allocation11 + $0x224] ss:$52 sps:$4 sm:$0xff]  }
 0x808   :  { %2795 = vmatprep.subr.bf16.mxu0 %v4599_v35  ;;  %2836 = vmatprep.subr.bf16.mxu1 %v4600_v53  ;;  %v4609_v44 = vld [vmem:[#allocation11 + $0x218] ss:$52 sps:$4 sm:$0xff]   ;;  %v4610_v35 = vld [vmem:[#allocation11 + $0x220] ss:$52 sps:$4 sm:$0xff]  }
 0x809   :  { %v4611_v53 = vld [vmem:[#allocation11 + $0x1b4] ss:$52 sps:$4 sm:$0xff]  }
 0x84a   :  { %v2489_v45 = vpop.f32.mrf.mxu0  ;;  %v2530_v54 = vpop.f32.mrf.mxu1 }
 0x84c   :  { %v2491_v46 = vpop.f32.mrf.mxu0  ;;  %v2532_v33 = vpop.f32.mrf.mxu1 }
 0x84d   :  { %v2627_v24 = vcombine.low %v2489_v45, %v2491_v46  ;;  %v2628_v7 = vcombine.low %v2530_v54, %v2532_v33  ;;  %v4612_v45 = vld [vmem:[#allocation11 + $0x1bc] ss:$52 sps:$4 sm:$0xff]   ;;  %v4614_v46 = vld [vmem:[#allocation11 + $0x1b8] ss:$52 sps:$4 sm:$0xff]  }
 0x84e   :  { %v2493_v6 = vpop.f32.mrf.mxu0  ;;  %v2534_v52 = vpop.f32.mrf.mxu1  ;;  %v4613_v54 = vld [vmem:[#allocation11 + $0x1b0] ss:$52 sps:$4 sm:$0xff]   ;;  %v4615_v33 = vld [vmem:[#allocation11 + $0x14c] ss:$52 sps:$4 sm:$0xff]  }
 0x84f   :  { %v2637_v38 = vrot.slane %v2627_v24, %v5333_v19  ;;  %v2644_v4 = vrot.slane %v2628_v7, %v5333_v19  ;;  %v4616_v24 = vld [vmem:[#allocation11 + $0x154] ss:$52 sps:$4 sm:$0xff]   ;;  %v4618_v6 = vld [vmem:[#allocation11 + $0x150] ss:$52 sps:$4 sm:$0xff]  }
 0x850   :  { %v2494_v15 = vpop.f32.mrf.mxu0  ;;  %v2535_v11 = vpop.f32.mrf.mxu1  ;;  %v4617_v7 = vld [vmem:[#allocation11 + $0x148] ss:$52 sps:$4 sm:$0xff]   ;;  %v4619_v52 = vld [vmem:[#allocation11 + $0xe4] ss:$52 sps:$4 sm:$0xff]  }
 0x851   :  { %v2659_v9 = vcombine.low %v2637_v38, %v2644_v4  ;;  %v4620_v38 = vld [vmem:[#allocation11 + $0xec] ss:$52 sps:$4 sm:$0xff]   ;;  %v4622_v15 = vld [vmem:[#allocation11 + $0xe8] ss:$52 sps:$4 sm:$0xff]  }
 0x852   :  { %v4621_v4 = vld [vmem:[#allocation11 + $0xe0] ss:$52 sps:$4 sm:$0xff]   ;;  %v4623_v11 = vld [vmem:[#allocation11 + $0x7c] ss:$52 sps:$4 sm:$0xff]  }
 0x853   :  { %v2667_v23 = vrot.slane %v2659_v9, %v5333_v19  ;;  %v4624_v9 = vld [vmem:[#allocation11 + $0x84] ss:$52 sps:$4 sm:$0xff]  }
 0x88a   :  { %v2571_v57 = vpop.f32.mrf.mxu0  ;;  %v2612_v56 = vpop.f32.mrf.mxu1 }
 0x88c   :  { %v2573_v60 = vpop.f32.mrf.mxu0  ;;  %v2614_v61 = vpop.f32.mrf.mxu1 }
 0x88d   :  { %v2629_v50 = vcombine.low %v2571_v57, %v2573_v60  ;;  %v2630_v62 = vcombine.low %v2612_v56, %v2614_v61  ;;  %v4625_v57 = vld [vmem:[#allocation11 + $0x78] ss:$52 sps:$4 sm:$0xff]   ;;  %v4626_v56 = vld [vmem:[#allocation11 + $0x80] ss:$52 sps:$4 sm:$0xff]   ;;  %v4628_v61 = vld [vmem:[#allocation11 + $0x1c] ss:$52 sps:$4 sm:$0xff]  }
 0x88e   :  { %v2575_v5 = vpop.f32.mrf.mxu0  ;;  %v2616_v25 = vpop.f32.mrf.mxu1  ;;  %v4627_v60 = vld [vmem:[#allocation11 + $0x14] ss:$52 sps:$4 sm:$0xff]  }
 0x88f   :  { %v2651_v22 = vrot.slane %v2629_v50, %v5333_v19  ;;  %v2658_v20 = vrot.slane %v2630_v62, %v5333_v19  ;;  %v4629_v50 = vld [vmem:[#allocation11 + $0x10] ss:$52 sps:$4 sm:$0xff]   ;;  %v4630_v62 = vld [vmem:[#allocation11 + $0x18] ss:$52 sps:$4 sm:$0xff]   ;;  %v4632_v25 = vld [vmem:[#allocation11 + $0x634] ss:$52 sps:$4 sm:$0xff]  }
 0x890   :  { %v2576_v31 = vpop.f32.mrf.mxu0  ;;  %v2617_v59 = vpop.f32.mrf.mxu1  ;;  %v4631_v5 = vld [vmem:[#allocation11 + $0x62c] ss:$52 sps:$4 sm:$0xff]  }
 0x891   :  { %v2660_v32 = vcombine.low %v2651_v22, %v2658_v20  ;;  %v4633_v22 = vld [vmem:[#allocation11 + $0x628] ss:$52 sps:$4 sm:$0xff]   ;;  %v4634_v20 = vld [vmem:[#allocation11 + $0x630] ss:$52 sps:$4 sm:$0xff]   ;;  %v4636_v59 = vld [vmem:[#allocation11 + $0x5cc] ss:$52 sps:$4 sm:$0xff]  }
 0x892   :  { %v4635_v31 = vld [vmem:[#allocation11 + $0x5c4] ss:$52 sps:$4 sm:$0xff]  }
 0x893   :  { %v2674_v8 = vrot.slane %v2660_v32, %v5333_v19  ;;  %v4637_v32 = vld [vmem:[#allocation11 + $0x5c0] ss:$52 sps:$4 sm:$0xff]  }
 0x895   :  { %v2675_v58 = vcombine.low %v2667_v23, %v2674_v8  ;;  %v4639_v23 = vld [vmem:[#allocation11 + $0x55c] ss:$52 sps:$4 sm:$0xff]   ;;  %v4640_v8 = vld [vmem:[#allocation11 + $0x564] ss:$52 sps:$4 sm:$0xff]  }
 0x897   :  { %v2677_v47 = vadd.f32 %v2675_v58, %v2441_v12  ;;  %v4642_v12 = vld [vmem:[#allocation11 + $0x560] ss:$52 sps:$4 sm:$0xff]  }
 0x898   :  { %v4643_v58 = vld [vmem:[#allocation11 + $0x4f4] ss:$52 sps:$4 sm:$0xff]  }
 0x899   :  { %v2678_v49 = vmul.f32 0.5, %v2677_v47  ;;  %v2683_v55 = vrot.slane %v2677_v47, 6  ;;  %v4644_v47 = vld [vmem:[#allocation11 + $0x4fc] ss:$52 sps:$4 sm:$0xff]  }
 0x89b   :  { %4393 = vtanh.f32 %v2678_v49  ;;  %v4645_v49 = vld [vmem:[#allocation11 + $0x4f0] ss:$52 sps:$4 sm:$0xff]  }
 0x89c   :  { %4395 = vtanh.f32 %v2683_v55  ;;  %v4646_v55 = vld [vmem:[#allocation11 + $0x4f8] ss:$52 sps:$4 sm:$0xff]  }
 0x8a8   :  { %v4394_v36 = vpop.eup %4393 }
 0x8a9   :  { %v2680_v42 = vadd.f32 1.0, %v4394_v36  ;;  %v4396_v41 = vpop.eup %4395  ;;  %v4647_v36 = vld [vmem:[#allocation11 + $0x48c] ss:$52 sps:$4 sm:$0xff]  }
 0x8ab   :  { %v2681_v39 = vmul.f32 0.5, %v2680_v42  ;;  %v4648_v42 = vld [vmem:[#allocation11 + $0x494] ss:$52 sps:$4 sm:$0xff]  }
 0x8ad   :  { %v2687_v14 = vrot.slane %v2681_v39, 2  ;;  %v2690_v40 = vmul.f32 %v4396_v41, %v2681_v39  ;;  %v2693_v17 = vrot.slane %v2681_v39, 4  ;;  %v4649_v39 = vld [vmem:[#allocation11 + $0x488] ss:$52 sps:$4 sm:$0xff]   ;;  %v4651_v41 = vld [vmem:[#allocation11 + $0x424] ss:$52 sps:$4 sm:$0xff]  }
 0x8af   :  { %v2689_v43 = vmul.f32 %v2687_v14, %v6190_v27  ;;  %v4601_v27 = vld [vmem:[#allocation11 + $0x2e8] ss:$52 sps:$4 sm:$0xff]   ;;  %v4650_v14 = vld [vmem:[#allocation11 + $0x490] ss:$52 sps:$4 sm:$0xff]  }
 0x8b1   :  { %v6274_v16 = vadd.f32 %v2690_v40, %v2689_v43  ;;  %v4652_v43 = vld [vmem:[#allocation11 + $0x42c] ss:$52 sps:$4 sm:$0xff]  }
 0x8b2   :  { %v4653_v40 = vld [vmem:[#allocation11 + $0x420] ss:$52 sps:$4 sm:$0xff]  }
 0x8b3   :  { %4397 = vtanh.f32 %v6274_v16 }
 0x8c0   :  { %v4398_v51 = vpop.eup %4397 }
 0x8c1   :  { %v2695_v37 = vmul.f32 %v4398_v51, %v2693_v17  ;;  %v4654_v17 = vld [vmem:[#allocation11 + $0x428] ss:$52 sps:$4 sm:$0xff]  }
 0x8c2   :  { %v4655_v51 = vld [vmem:[#allocation11 + $0x3bc] ss:$52 sps:$4 sm:$0xff]  }
 0x8c3   :  { %v2708_v48 = vrot.slane %v2695_v37, %v5070_v29  ;;  %v2704_v2 = vrot.slane %v2695_v37, %v5067_v21  ;;  %v4656_v37 = vld [vmem:[#allocation11 + $0x3c4] ss:$52 sps:$4 sm:$0xff]  }
 0x8c5   :  { %v2712_v3 = vpack.c.bf16 %v2708_v48, %v2708_v48  ;;  %v6279_v34 = vpack.c.bf16 %v2704_v2, %v2704_v2  ;;  %v4657_v48 = vld [vmem:[#allocation11 + $0x3b8] ss:$52 sps:$4 sm:$0xff]   ;;  %v4658_v2 = vld [vmem:[#allocation11 + $0x3c0] ss:$52 sps:$4 sm:$0xff]  }
 0x8c7   :  { %2745 = vmatprep.mubr.bf16.mxu0 %v2712_v3  ;;  %2786 = vmatprep.mubr.bf16.mxu1 %v2712_v3 }
 0x8c8   :  { %2746 = vmatmul.mubr.bf16.vlgmr.msra.gmra.mxu0 %v6279_v34  ;;  %2787 = vmatmul.mubr.bf16.vlgmr.msra.gmra.mxu1 %v6279_v34 }
 0x8c9   :  { %2796 = vmatpush1.bf16.msra.mxu0 %v4601_v27  ;;  %2837 = vmatpush1.bf16.msra.mxu1 %v4602_v28  ;;  %v4660_v27 = vld [vmem:[#allocation11 + $0x35c] ss:$52 sps:$4 sm:$0xff]  }
 0x8ca   :  { %2827 = vmatprep.mubr.bf16.mxu0 %v2712_v3  ;;  %2868 = vmatprep.mubr.bf16.mxu1 %v2712_v3  ;;  %v4659_v3 = vld [vmem:[#allocation11 + $0x354] ss:$52 sps:$4 sm:$0xff]  }
 0x8cb   :  { %2797 = vmatprep.subr.bf16.mxu0 %v4603_v30  ;;  %2838 = vmatprep.subr.bf16.mxu1 %v4604_v1  ;;  %v4235_v28 = vld [vmem:[#allocation9 + $0x34] ss:$8 sps:$4 sm:$0xff]   ;;  %v4661_v30 = vld [vmem:[#allocation11 + $0x350] ss:$52 sps:$4 sm:$0xff]   ;;  %v4662_v1 = vld [vmem:[#allocation11 + $0x358] ss:$52 sps:$4 sm:$0xff]  }
 0x8cd   :  { %2798 = vmatpush1.bf16.msra.mxu0 %v4605_v63  ;;  %2839 = vmatpush1.bf16.msra.mxu1 %v4606_v10  ;;  %v4233_v63 = vld [vmem:[#allocation9 + $0x30] ss:$8 sps:$4 sm:$0xff]   ;;  %v4238_v10 = vld [vmem:[#allocation9 + $0x24] ss:$8 sps:$4 sm:$0xff]  }
 0x8ce   :  { %2799 = vmatprep.subr.bf16.mxu0 %v4607_v0  ;;  %2840 = vmatprep.subr.bf16.mxu1 %v4608_v26  ;;  %v4236_v0 = vld [vmem:[#allocation9 + $0x20] ss:$8 sps:$4 sm:$0xff]   ;;  %v7088_v26 = vmov 0  }
 0x8d1   :  { %2800 = vmatpush1.bf16.msra.mxu0 %v4609_v44  ;;  %2841 = vmatpush1.bf16.msra.mxu1 %v4610_v35  ;;  %v4241_v44 = vld [vmem:[#allocation9 + $0x14] ss:$8 sps:$4 sm:$0xff]   ;;  %v4239_v35 = vld [vmem:[#allocation9 + $0x10] ss:$8 sps:$4 sm:$0xff]  }
 0x8d2   :  { %2801 = vmatprep.subr.bf16.mxu0 %v4611_v53  ;;  %2842 = vmatprep.subr.bf16.mxu1 %v4612_v45  ;;  %v4244_v53 = vld [vmem:[#allocation9 + $0x4] ss:$8 sps:$4 sm:$0xff]   ;;  %v4242_v45 = vld [vmem:[#allocation9] ss:$8 sps:$4 sm:$0xff]  }
 0x8d5   :  { %2802 = vmatpush1.bf16.msra.mxu0 %v4613_v54  ;;  %2843 = vmatpush1.bf16.msra.mxu1 %v4614_v46  ;;  %v2955_v54 = vld [vmem:[#allocation8] sm:$0xff] }
 0x8d6   :  { %2803 = vmatprep.subr.bf16.mxu0 %v4615_v33  ;;  %2844 = vmatprep.subr.bf16.mxu1 %v4616_v24  ;;  %v4247_v46 = vld [vmem:[#allocation11 + $0x2fc] ss:$52 sps:$4 sm:$0xff]   ;;  %v4251_v33 = vld [vmem:[#allocation11 + $0x300] ss:$52 sps:$4 sm:$0xff]   ;;  %v4253_v24 = vld [vmem:[#allocation11 + $0x304] ss:$52 sps:$4 sm:$0xff]  }
 0x8d9   :  { %2804 = vmatpush1.bf16.msra.mxu0 %v4617_v7  ;;  %2845 = vmatpush1.bf16.msra.mxu1 %v4618_v6  ;;  %v2956_v7 = vpack.c.bf16 %v2955_v54, %v2955_v54  ;;  %v4250_v6 = vld [vmem:[#allocation11 + $0x294] ss:$52 sps:$4 sm:$0xff]   ;;  %v4329_v54 = vld [vmem:[#allocation11 + $0x438] ss:$52 sps:$4 sm:$0xff]  }
 0x8da   :  { %2805 = vmatprep.subr.bf16.mxu0 %v4619_v52  ;;  %2846 = vmatprep.subr.bf16.mxu1 %v4620_v38  ;;  %v4248_v52 = vld [vmem:[#allocation11 + $0x290] ss:$52 sps:$4 sm:$0xff]   ;;  %v4256_v38 = vld [vmem:[#allocation11 + $0x22c] ss:$52 sps:$4 sm:$0xff]  }
 0x8dd   :  { %2806 = vmatpush1.bf16.msra.mxu0 %v4621_v4  ;;  %2847 = vmatpush1.bf16.msra.mxu1 %v4622_v15  ;;  %v4254_v4 = vld [vmem:[#allocation11 + $0x228] ss:$52 sps:$4 sm:$0xff]  }
 0x8de   :  { %2807 = vmatprep.subr.bf16.mxu0 %v4623_v11  ;;  %2848 = vmatprep.subr.bf16.mxu1 %v4624_v9  ;;  %v4259_v15 = vld [vmem:[#allocation11 + $0x29c] ss:$52 sps:$4 sm:$0xff]   ;;  %v4257_v11 = vld [vmem:[#allocation11 + $0x298] ss:$52 sps:$4 sm:$0xff]  }
 0x8df   :  { %v4262_v9 = vld [vmem:[#allocation11 + $0x1c4] ss:$52 sps:$4 sm:$0xff]  }
 0x8e1   :  { %2808 = vmatpush1.bf16.msra.mxu0 %v4625_v57  ;;  %2849 = vmatpush1.bf16.msra.mxu1 %v4626_v56  ;;  %v4260_v57 = vld [vmem:[#allocation11 + $0x1c0] ss:$52 sps:$4 sm:$0xff]  }
 0x8e2   :  { %2809 = vmatprep.subr.bf16.mxu0 %v4627_v60  ;;  %2850 = vmatprep.subr.bf16.mxu1 %v4628_v61  ;;  %v4265_v56 = vld [vmem:[#allocation11 + $0x234] ss:$52 sps:$4 sm:$0xff]   ;;  %v4263_v60 = vld [vmem:[#allocation11 + $0x230] ss:$52 sps:$4 sm:$0xff]  }
 0x8e3   :  { %v4268_v61 = vld [vmem:[#allocation11 + $0x15c] ss:$52 sps:$4 sm:$0xff]  }
 0x8e5   :  { %2810 = vmatpush1.bf16.msra.mxu0 %v4629_v50  ;;  %2851 = vmatpush1.bf16.msra.mxu1 %v4630_v62  ;;  %v4266_v50 = vld [vmem:[#allocation11 + $0x158] ss:$52 sps:$4 sm:$0xff]  }
 0x8e6   :  { %2811 = vmatprep.subr.bf16.mxu0 %v4631_v5  ;;  %2852 = vmatprep.subr.bf16.mxu1 %v4632_v25  ;;  %v4271_v62 = vld [vmem:[#allocation11 + $0x1cc] ss:$52 sps:$4 sm:$0xff]   ;;  %v4269_v5 = vld [vmem:[#allocation11 + $0x1c8] ss:$52 sps:$4 sm:$0xff]  }
 0x8e7   :  { %v4274_v25 = vld [vmem:[#allocation11 + $0xf4] ss:$52 sps:$4 sm:$0xff]  }
 0x8e9   :  { %2812 = vmatpush2.bf16.msra.mxu0 %v4633_v22  ;;  %2853 = vmatpush2.bf16.msra.mxu1 %v4634_v20  ;;  %v4272_v22 = vld [vmem:[#allocation11 + $0xf0] ss:$52 sps:$4 sm:$0xff]  }
 0x8ea   :  { %2813 = vmatprep.subr.bf16.mxu0 %v4635_v31  ;;  %2854 = vmatprep.subr.bf16.mxu1 %v4636_v59  ;;  %v4277_v20 = vld [vmem:[#allocation11 + $0x164] ss:$52 sps:$4 sm:$0xff]   ;;  %v4275_v31 = vld [vmem:[#allocation11 + $0x160] ss:$52 sps:$4 sm:$0xff]  }
 0x8eb   :  { %v4280_v59 = vld [vmem:[#allocation11 + $0x8c] ss:$52 sps:$4 sm:$0xff]  }
 0x8ed   :  { %2814 = vmatpush2.bf16.msra.mxu0 %v4637_v32  ;;  %2855 = vmatpush2.bf16.msra.mxu1 %v4638_v13  ;;  %v4278_v32 = vld [vmem:[#allocation11 + $0x88] ss:$52 sps:$4 sm:$0xff]  }
 0x8ee   :  { %2815 = vmatprep.subr.bf16.mxu0 %v4639_v23  ;;  %2856 = vmatprep.subr.bf16.mxu1 %v4640_v8  ;;  %v4283_v13 = vld [vmem:[#allocation11 + $0xfc] ss:$52 sps:$4 sm:$0xff]   ;;  %v4281_v23 = vld [vmem:[#allocation11 + $0xf8] ss:$52 sps:$4 sm:$0xff]   ;;  %v4284_v8 = vld [vmem:[#allocation11 + $0x20] ss:$52 sps:$4 sm:$0xff]  }
 0x8f1   :  { %2816 = vmatpush2.bf16.msra.mxu0 %v4641_v18  ;;  %2857 = vmatpush2.bf16.msra.mxu1 %v4642_v12  ;;  %v4286_v18 = vld [vmem:[#allocation11 + $0x24] ss:$52 sps:$4 sm:$0xff]   ;;  %v4289_v12 = vld [vmem:[#allocation11 + $0x94] ss:$52 sps:$4 sm:$0xff]  }
 0x8f2   :  { %2817 = vmatprep.subr.bf16.mxu0 %v4643_v58  ;;  %2858 = vmatprep.subr.bf16.mxu1 %v4644_v47  ;;  %v4287_v58 = vld [vmem:[#allocation11 + $0x90] ss:$52 sps:$4 sm:$0xff]  }
 0x8f3   :  { %v4292_v47 = vld [vmem:[#allocation11 + $0x63c] ss:$52 sps:$4 sm:$0xff]  }
 0x8f5   :  { %2818 = vmatpush2.bf16.msra.mxu0 %v4645_v49  ;;  %2859 = vmatpush2.bf16.msra.mxu1 %v4646_v55  ;;  %v4290_v49 = vld [vmem:[#allocation11 + $0x638] ss:$52 sps:$4 sm:$0xff]  }
 0x8f6   :  { %2819 = vmatprep.subr.bf16.mxu0 %v4647_v36  ;;  %2860 = vmatprep.subr.bf16.mxu1 %v4648_v42  ;;  %v4295_v55 = vld [vmem:[#allocation11 + $0x2c] ss:$52 sps:$4 sm:$0xff]   ;;  %v4298_v36 = vld [vmem:[#allocation11 + $0x5d4] ss:$52 sps:$4 sm:$0xff]  }
 0x8f7   :  { %v4293_v42 = vld [vmem:[#allocation11 + $0x28] ss:$52 sps:$4 sm:$0xff]  }
 0x8f9   :  { %2820 = vmatpush2.bf16.msra.mxu0 %v4649_v39  ;;  %2861 = vmatpush2.bf16.msra.mxu1 %v4650_v14  ;;  %v4296_v39 = vld [vmem:[#allocation11 + $0x5d0] ss:$52 sps:$4 sm:$0xff]  }
 0x8fa   :  { %2821 = vmatprep.subr.bf16.mxu0 %v4651_v41  ;;  %2862 = vmatprep.subr.bf16.mxu1 %v4652_v43  ;;  %v4301_v14 = vld [vmem:[#allocation11 + $0x644] ss:$52 sps:$4 sm:$0xff]   ;;  %v4304_v41 = vld [vmem:[#allocation11 + $0x56c] ss:$52 sps:$4 sm:$0xff]  }
 0x8fb   :  { %v4299_v43 = vld [vmem:[#allocation11 + $0x640] ss:$52 sps:$4 sm:$0xff]  }
 0x8fd   :  { %2822 = vmatpush2.bf16.msra.mxu0 %v4653_v40  ;;  %2863 = vmatpush2.bf16.msra.mxu1 %v4654_v17  ;;  %v4302_v40 = vld [vmem:[#allocation11 + $0x568] ss:$52 sps:$4 sm:$0xff]  }
 0x8fe   :  { %2823 = vmatprep.subr.bf16.mxu0 %v4655_v51  ;;  %2864 = vmatprep.subr.bf16.mxu1 %v4656_v37  ;;  %v4307_v17 = vld [vmem:[#allocation11 + $0x5dc] ss:$52 sps:$4 sm:$0xff]   ;;  %v4310_v51 = vld [vmem:[#allocation11 + $0x504] ss:$52 sps:$4 sm:$0xff]  }
 0x8ff   :  { %v4305_v37 = vld [vmem:[#allocation11 + $0x5d8] ss:$52 sps:$4 sm:$0xff]  }
 0x901   :  { %2824 = vmatpush2.bf16.msra.mxu0 %v4657_v48  ;;  %2865 = vmatpush2.bf16.msra.mxu1 %v4658_v2  ;;  %v4308_v48 = vld [vmem:[#allocation11 + $0x500] ss:$52 sps:$4 sm:$0xff]  }
 0x902   :  { %2825 = vmatprep.subr.bf16.mxu0 %v4659_v3  ;;  %2866 = vmatprep.subr.bf16.mxu1 %v4660_v27  ;;  %v4313_v2 = vld [vmem:[#allocation11 + $0x574] ss:$52 sps:$4 sm:$0xff]   ;;  %v4316_v3 = vld [vmem:[#allocation11 + $0x49c] ss:$52 sps:$4 sm:$0xff]  }
 0x903   :  { %v4311_v27 = vld [vmem:[#allocation11 + $0x570] ss:$52 sps:$4 sm:$0xff]  }
 0x905   :  { %2826 = vmatpush2.bf16.msra.mxu0 %v4661_v30  ;;  %2867 = vmatpush2.bf16.msra.mxu1 %v4662_v1  ;;  %v4319_v30 = vld [vmem:[#allocation11 + $0x50c] ss:$52 sps:$4 sm:$0xff]   ;;  %v4322_v1 = vld [vmem:[#allocation11 + $0x434] ss:$52 sps:$4 sm:$0xff]  }
 0x906   :  { %3028 = vmatprep.subr.bf16.mxu0 %v4235_v28  ;;  %3269 = vmatprep.subr.bf16.mxu1 %v4253_v24  ;;  %v4314_v28 = vld [vmem:[#allocation11 + $0x498] ss:$52 sps:$4 sm:$0xff]   ;;  %v4335_v24 = vld [vmem:[#allocation11 + $0x3d0] ss:$52 sps:$4 sm:$0xff]  }
 0x908   :  { %2828 = vmatmul.mubr.bf16.vlgmr.msra.gmra.mxu0 %v6279_v34  ;;  %2869 = vmatmul.mubr.bf16.vlgmr.msra.gmra.mxu1 %v6279_v34  ;;  %v4245_v34 = vld [vmem:[#allocation11 + $0x2f8] ss:$52 sps:$4 sm:$0xff]  }
 0x909   :  { %3029 = vmatpush1.bf16.msra.mxu0 %v4233_v63  ;;  %3052 = vmatprep.mubr.bf16.mxu0 %v7088_v26  ;;  %v4317_v63 = vld [vmem:[#allocation11 + $0x508] ss:$52 sps:$4 sm:$0xff]   ;;  %v4328_v26 = vld [vmem:[#allocation11 + $0x3cc] ss:$52 sps:$4 sm:$0xff]  }
 0x90a   :  { %3030 = vmatprep.subr.bf16.mxu0 %v4238_v10  ;;  %3270 = vmatpush1.bf16.msra.mxu1 %v4251_v33  ;;  %v4320_v10 = vld [vmem:[#allocation11 + $0x430] ss:$52 sps:$4 sm:$0xff]   ;;  %v4337_v33 = vld [vmem:[#allocation11 + $0x3d4] ss:$52 sps:$4 sm:$0xff]  }
 0x90b   :  { %3271 = vmatprep.subr.bf16.mxu1 %v4259_v15 }
 0x90d   :  { %3031 = vmatpush1.bf16.msra.mxu0 %v4236_v0  ;;  %v4325_v0 = vld [vmem:[#allocation11 + $0x4a4] ss:$52 sps:$4 sm:$0xff]  }
 0x90e   :  { %3032 = vmatprep.subr.bf16.mxu0 %v4241_v44  ;;  %3272 = vmatpush1.bf16.msra.mxu1 %v4257_v11  ;;  %v4323_v44 = vld [vmem:[#allocation11 + $0x4a0] ss:$52 sps:$4 sm:$0xff]  }
 0x90f   :  { %3273 = vmatprep.subr.bf16.mxu1 %v4265_v56 }
 0x911   :  { %3033 = vmatpush1.bf16.msra.mxu0 %v4239_v35  ;;  %v4326_v35 = vld [vmem:[#allocation11 + $0x3c8] ss:$52 sps:$4 sm:$0xff]  }
 0x912   :  { %3034 = vmatprep.subr.bf16.mxu0 %v4244_v53  ;;  %3274 = vmatpush1.bf16.msra.mxu1 %v4263_v60  ;;  %v4331_v53 = vld [vmem:[#allocation11 + $0x43c] ss:$52 sps:$4 sm:$0xff]  }
 0x913   :  { %3275 = vmatprep.subr.bf16.mxu1 %v4271_v62 }
 0x915   :  { %3035 = vmatpush1.bf16.msra.mxu0 %v4242_v45  ;;  %v4334_v45 = vld [vmem:[#allocation11 + $0x364] ss:$52 sps:$4 sm:$0xff]  }
 0x916   :  { %3512 = vmatprep.subr.bf16.mxu0 %v4247_v46  ;;  %3276 = vmatpush1.bf16.msra.mxu1 %v4269_v5  ;;  %v4332_v46 = vld [vmem:[#allocation11 + $0x360] ss:$52 sps:$4 sm:$0xff]  }
 0x917   :  { %3277 = vmatprep.subr.bf16.mxu1 %v4277_v20 }
 0x918   :  { %3923 = vmatmul.mubr.msk.bf16.vlgmr.msra.gmra.mxu0 %vm3016_vm1, %v2956_v7  ;;  %v4340_v7 = vld [vmem:[#allocation11 + $0x36c] ss:$52 sps:$4 sm:$0xff]  }
 0x919   :  { %3513 = vmatpush1.bf16.msra.mxu0 %v4245_v34  ;;  %v4338_v34 = vld [vmem:[#allocation11 + $0x368] ss:$52 sps:$4 sm:$0xff]  }
 0x91a   :  { %3514 = vmatprep.subr.bf16.mxu0 %v4250_v6  ;;  %3278 = vmatpush1.bf16.msra.mxu1 %v4275_v31  ;;  %v4341_v6 = vld [vmem:[#allocation11 + $0x648] ss:$52 sps:$4 sm:$0xff]  }
 0x91b   :  { %3279 = vmatprep.subr.bf16.mxu1 %v4283_v13 }
 0x91d   :  { %3515 = vmatpush1.bf16.msra.mxu0 %v4248_v52 }
 0x91e   :  { %3516 = vmatprep.subr.bf16.mxu0 %v4256_v38  ;;  %3280 = vmatpush1.bf16.msra.mxu1 %v4281_v23 }
 0x91f   :  { %3281 = vmatprep.subr.bf16.mxu1 %v4289_v12 }
 0x921   :  { %3517 = vmatpush1.bf16.msra.mxu0 %v4254_v4 }
 0x922   :  { %3518 = vmatprep.subr.bf16.mxu0 %v4262_v9  ;;  %3282 = vmatpush1.bf16.msra.mxu1 %v4287_v58 }
 0x923   :  { %3283 = vmatprep.subr.bf16.mxu1 %v4295_v55 }
 0x925   :  { %3519 = vmatpush1.bf16.msra.mxu0 %v4260_v57 }
 0x926   :  { %3520 = vmatprep.subr.bf16.mxu0 %v4268_v61  ;;  %3284 = vmatpush1.bf16.msra.mxu1 %v4293_v42  ;;  %v2697_v42 = vld [vmem:[#allocation2 + $0x7] ss:$8 sm:$0xf] }
 0x927   :  { %3285 = vmatprep.subr.bf16.mxu1 %v4301_v14 }
 0x929   :  { %3521 = vmatpush1.bf16.msra.mxu0 %v4266_v50 }
 0x92a   :  { %3522 = vmatprep.subr.bf16.mxu0 %v4274_v25  ;;  %3286 = vmatpush2.bf16.msra.mxu1 %v4299_v43 }
 0x92b   :  { %3287 = vmatprep.subr.bf16.mxu1 %v4307_v17 }
 0x92d   :  { %3523 = vmatpush1.bf16.msra.mxu0 %v4272_v22 }
 0x92e   :  { %3524 = vmatprep.subr.bf16.mxu0 %v4280_v59  ;;  %3288 = vmatpush2.bf16.msra.mxu1 %v4305_v37 }
 0x92f   :  { %3289 = vmatprep.subr.bf16.mxu1 %v4313_v2 }
 0x931   :  { %3525 = vmatpush1.bf16.msra.mxu0 %v4278_v32 }
 0x932   :  { %3526 = vmatprep.subr.bf16.mxu0 %v4286_v18  ;;  %3290 = vmatpush2.bf16.msra.mxu1 %v4311_v27 }
 0x933   :  { %3291 = vmatprep.subr.bf16.mxu1 %v4319_v30 }
 0x935   :  { %3527 = vmatpush1.bf16.msra.mxu0 %v4284_v8 }
 0x936   :  { %3528 = vmatprep.subr.bf16.mxu0 %v4292_v47  ;;  %3292 = vmatpush2.bf16.msra.mxu1 %v4317_v63 }
 0x937   :  { %3293 = vmatprep.subr.bf16.mxu1 %v4325_v0 }
 0x939   :  { %3529 = vmatpush2.bf16.msra.mxu0 %v4290_v49  ;;  %v2698_v49 = vld [vmem:[#allocation2 + $0x7] ss:$8 sm:$0xf0] }
 0x93a   :  { %3530 = vmatprep.subr.bf16.mxu0 %v4298_v36  ;;  %3294 = vmatpush2.bf16.msra.mxu1 %v4323_v44  ;;  %v2699_v14 = vor.u32 %v2698_v49, %v2697_v42 }
 0x93b   :  { %3295 = vmatprep.subr.bf16.mxu1 %v4331_v53 }
 0x93d   :  { %3531 = vmatpush2.bf16.msra.mxu0 %v4296_v39  ;;  %v2954_v39 = vld [vmem:[%s6318_s5] sm:$0x3] }
 0x93e   :  { %3532 = vmatprep.subr.bf16.mxu0 %v4304_v41  ;;  %3296 = vmatpush2.bf16.msra.mxu1 %v4329_v54 }
 0x93f   :  { %3297 = vmatprep.subr.bf16.mxu1 %v4337_v33 }
 0x941   :  { %3533 = vmatpush2.bf16.msra.mxu0 %v4302_v40  ;;  %v2969_v40 = vrot.slane %v2954_v39, %v5067_v21 }
 0x942   :  { %3534 = vmatprep.subr.bf16.mxu0 %v4310_v51  ;;  %3298 = vmatpush2.bf16.msra.mxu1 %v4335_v24  ;;  %v2973_v51 = vrot.slane %v2954_v39, %v5070_v29 }
 0x943   :  { %3299 = vmatprep.subr.bf16.mxu1 %v4340_v7 }
 0x945   :  { %3535 = vmatpush2.bf16.msra.mxu0 %v4308_v48 }
 0x946   :  { %3536 = vmatprep.subr.bf16.mxu0 %v4316_v3  ;;  %3300 = vmatpush2.bf16.msra.mxu1 %v4338_v34 }
 0x947   :  { %4005 = vmatprep.subr.bf16.mxu1 %v4341_v6 }
 0x949   :  { %3537 = vmatpush2.bf16.msra.mxu0 %v4314_v28 }
 0x94a   :  { %3538 = vmatprep.subr.bf16.mxu0 %v4322_v1 }
 0x94d   :  { %3539 = vmatpush2.bf16.msra.mxu0 %v4320_v10 }
 0x94e   :  { %3540 = vmatprep.subr.bf16.mxu0 %v4328_v26 }
 0x951   :  { %3541 = vmatpush2.bf16.msra.mxu0 %v4326_v35 }
 0x952   :  { %3542 = vmatprep.subr.bf16.mxu0 %v4334_v45 }
 0x955   :  { %3543 = vmatpush2.bf16.msra.mxu0 %v4332_v46 }
 0x988   :  { %v2747_v52 = vpop.f32.mrf.mxu0  ;;  %v2788_v38 = vpop.f32.mrf.mxu1 }
 0x98a   :  { %v2749_v4 = vpop.f32.mrf.mxu0  ;;  %v2790_v15 = vpop.f32.mrf.mxu1 }
 0x98b   :  { %v2885_v11 = vcombine.low %v2747_v52, %v2749_v4  ;;  %v2886_v9 = vcombine.low %v2788_v38, %v2790_v15  ;;  %v4342_v4 = vld [vmem:[#allocation11 + $0x308] ss:$52 sps:$4 sm:$0xff]   ;;  %v4343_v15 = vld [vmem:[#allocation11 + $0x5e0] ss:$52 sps:$4 sm:$0xff]  }
 0x98c   :  { %v2751_v57 = vpop.f32.mrf.mxu0  ;;  %v2792_v56 = vpop.f32.mrf.mxu1 }
 0x98d   :  { %v2895_v60 = vrot.slane %v2885_v11, %v5333_v19  ;;  %v2902_v61 = vrot.slane %v2886_v9, %v5333_v19  ;;  %v4344_v11 = vld [vmem:[#allocation11 + $0x2a0] ss:$52 sps:$4 sm:$0xff]   ;;  %v4346_v9 = vld [vmem:[#allocation11 + $0x238] ss:$52 sps:$4 sm:$0xff]   ;;  %v4347_v57 = vld [vmem:[#allocation11 + $0x510] ss:$52 sps:$4 sm:$0xff]  }
 0x98e   :  { %v2752_v50 = vpop.f32.mrf.mxu0  ;;  %v2793_v62 = vpop.f32.mrf.mxu1  ;;  %v4348_v56 = vld [vmem:[#allocation11 + $0x1d0] ss:$52 sps:$4 sm:$0xff]  }
 0x98f   :  { %v2917_v5 = vcombine.low %v2895_v60, %v2902_v61  ;;  %v4349_v60 = vld [vmem:[#allocation11 + $0x4a8] ss:$52 sps:$4 sm:$0xff]   ;;  %v4351_v50 = vld [vmem:[#allocation11 + $0x440] ss:$52 sps:$4 sm:$0xff]  }
 0x990   :  { %v4350_v61 = vld [vmem:[#allocation11 + $0x168] ss:$52 sps:$4 sm:$0xff]   ;;  %v4352_v62 = vld [vmem:[#allocation11 + $0x100] ss:$52 sps:$4 sm:$0xff]  }
 0x991   :  { %v2925_v55 = vrot.slane %v2917_v5, %v5333_v19  ;;  %v4353_v5 = vld [vmem:[#allocation11 + $0x3d8] ss:$52 sps:$4 sm:$0xff]  }
 0x9c8   :  { %v2829_v25 = vpop.f32.mrf.mxu0  ;;  %v2870_v22 = vpop.f32.mrf.mxu1 }
 0x9ca   :  { %v2831_v20 = vpop.f32.mrf.mxu0  ;;  %v2872_v31 = vpop.f32.mrf.mxu1 }
 0x9cb   :  { %v2887_v59 = vcombine.low %v2829_v25, %v2831_v20  ;;  %v2888_v32 = vcombine.low %v2870_v22, %v2872_v31  ;;  %v4354_v25 = vld [vmem:[#allocation11 + $0x98] ss:$52 sps:$4 sm:$0xff]   ;;  %v4355_v22 = vld [vmem:[#allocation11 + $0x370] ss:$52 sps:$4 sm:$0xff]  }
 0x9cc   :  { %v2833_v13 = vpop.f32.mrf.mxu0  ;;  %v2874_v23 = vpop.f32.mrf.mxu1  ;;  %v4356_v20 = vld [vmem:[#allocation11 + $0x30] ss:$52 sps:$4 sm:$0xff]  }
 0x9cd   :  { %v2909_v8 = vrot.slane %v2887_v59, %v5333_v19  ;;  %v2916_v18 = vrot.slane %v2888_v32, %v5333_v19  ;;  %v3063_v23 = vld [vmem:[%s6318_s5 + $0x2] sm:$0x3] }
 0x9ce   :  { %v2834_v12 = vpop.f32.mrf.mxu0  ;;  %v2875_v58 = vpop.f32.mrf.mxu1 }
 0x9cf   :  { %v2918_v47 = vcombine.low %v2909_v8, %v2916_v18  ;;  %v3557_v12 = vrot.slane %v3063_v23, %v5067_v21 }
 0x9d1   :  { %v2932_v36 = vrot.slane %v2918_v47, %v5333_v19 }
 0x9d3   :  { %v2933_v41 = vcombine.low %v2925_v55, %v2932_v36  ;;  %v3561_v55 = vrot.slane %v3063_v23, %v5070_v29 }
 0x9d5   :  { %v2935_v43 = vadd.f32 %v2933_v41, %v2699_v14 }
 0x9d7   :  { %v2936_v17 = vmul.f32 0.5, %v2935_v43  ;;  %v2941_v3 = vrot.slane %v2935_v43, 6 }
 0x9d8   :  { %v3054_v37 = vpop.f32.mrf.mxu0 }
 0x9d9   :  { %4399 = vtanh.f32 %v2936_v17  ;;  %v3055_v48 = vadd.f32 %v3054_v37, %v2969_v40 }
 0x9da   :  { %v3056_v2 = vpop.f32.mrf.mxu0  ;;  %4401 = vtanh.f32 %v2941_v3 }
 0x9db   :  { %v3061_v27 = vmax.f32 %v3055_v48, 0.0  ;;  %v3057_v19 = vadd.f32 %v3056_v2, %v2973_v51  ;;  %v3988_v48 = vld [vmem:[%s6318_s5 + $0x4] ss:$0 sm:$0xff] }
 0x9dc   :  { %v3058_v28 = vpop.f32.mrf.mxu0 }
 0x9dd   :  { %v3062_v30 = vmax.f32 %v3057_v19, 0.0  ;;  %v3310_v1 = vpack.c.bf16 %v3061_v27, %v3061_v27 }
 0x9de   :  { %v3059_v63 = vpop.f32.mrf.mxu0 }
 0x9df   :  { %v3311_v10 = vpack.c.bf16 %v3062_v30, %v3062_v30 }
 0x9e1   :  { %3544 = vmatprep.mubr.bf16.mxu0 %v3311_v10 }
 0x9e2   :  { %3545 = vmatmul.mubr.bf16.vlgmr.msra.gmra.mxu0 %v3310_v1 }
 0x9e6   :  { %v4400_v0 = vpop.eup %4399 }
 0x9e7   :  { %v2938_v26 = vadd.f32 1.0, %v4400_v0  ;;  %v4402_v53 = vpop.eup %4401 }
 0x9e9   :  { %v2939_v44 = vmul.f32 0.5, %v2938_v26 }
 0x9eb   :  { %v2945_v35 = vrot.slane %v2939_v44, 2  ;;  %v2948_v54 = vmul.f32 %v4402_v53, %v2939_v44  ;;  %v2951_v33 = vrot.slane %v2939_v44, 4 }
 0x9ed   :  { %v2947_v45 = vmul.f32 %v2945_v35, %v6274_v16  ;;  %v4345_v16 = vld [vmem:[#allocation11 + $0x578] ss:$52 sps:$4 sm:$0xff]  }
 0x9ef   :  { %v2949_v46 = vadd.f32 %v2948_v54, %v2947_v45 }
 0x9f1   :  { %4403 = vtanh.f32 %v2949_v46 }
 0x9fe   :  { %v4404_v24 = vpop.eup %4403 }
 0x9ff   :  { %v2953_v7 = vmul.f32 %v4404_v24, %v2951_v33 }
 0xa01   :  { %v3072_v34 = vrot.slane %v2953_v7, %v5070_v29  ;;  %v3068_v6 = vrot.slane %v2953_v7, %v5067_v21 }
 0xa03   :  { %v3076_v52 = vpack.c.bf16 %v3072_v34, %v3072_v34  ;;  %v3075_v38 = vpack.c.bf16 %v3068_v6, %v3068_v6 }
 0xa05   :  { %3301 = vmatprep.mubr.bf16.mxu1 %v3076_v52 }
 0xa06   :  { %3302 = vmatmul.mubr.bf16.vlgmr.msra.gmra.mxu1 %v3075_v38 }
 0xa07   :  { %4006 = vmatpush3.bf16.msra.mxu1 %v4342_v4 }
 0xa08   :  { %4007 = vmatprep.subr.bf16.mxu1 %v4343_v15 }
 0xa0b   :  { %4008 = vmatpush3.bf16.msra.mxu1 %v4344_v11 }
 0xa0c   :  { %4009 = vmatprep.subr.bf16.mxu1 %v4345_v16 }
 0xa0f   :  { %4010 = vmatpush3.bf16.msra.mxu1 %v4346_v9 }
 0xa10   :  { %4011 = vmatprep.subr.bf16.mxu1 %v4347_v57 }
 0xa13   :  { %4012 = vmatpush3.bf16.msra.mxu1 %v4348_v56 }
 0xa14   :  { %4013 = vmatprep.subr.bf16.mxu1 %v4349_v60 }
 0xa17   :  { %4014 = vmatpush3.bf16.msra.mxu1 %v4350_v61 }
 0xa18   :  { %4015 = vmatprep.subr.bf16.mxu1 %v4351_v50 }
 0xa1b   :  { %4016 = vmatpush3.bf16.msra.mxu1 %v4352_v62 }
 0xa1c   :  { %4017 = vmatprep.subr.bf16.mxu1 %v4353_v5 }
 0xa1f   :  { %4018 = vmatpush3.bf16.msra.mxu1 %v4354_v25 }
 0xa20   :  { %4019 = vmatprep.subr.bf16.mxu1 %v4355_v22 }
 0xa23   :  { %4020 = vmatpush3.bf16.msra.mxu1 %v4356_v20 }
 0xaa2   :  { %v3546_v31 = vpop.f32.mrf.mxu0 }
 0xaa4   :  { %v3548_v59 = vpop.f32.mrf.mxu0 }
 0xaa6   :  { %v3550_v32 = vpop.f32.mrf.mxu0 }
 0xaa8   :  { %v3551_v13 = vpop.f32.mrf.mxu0 }
 0xac6   :  { %v3303_v8 = vpop.f32.mrf.mxu1 }
 0xac7   :  { %v3347_v18 = vrot.slane %v3303_v8, %v5067_v21 }
 0xac8   :  { %v3305_v58 = vpop.f32.mrf.mxu1 }
 0xac9   :  { %v3547_v47 = vadd.f32 %v3546_v31, %v3347_v18  ;;  %v3351_v49 = vrot.slane %v3305_v58, %v5067_v21 }
 0xaca   :  { %v3307_v36 = vpop.f32.mrf.mxu1 }
 0xacb   :  { %v3564_v42 = vadd.f32 %v3557_v12, %v3547_v47  ;;  %v3549_v39 = vadd.f32 %v3548_v59, %v3351_v49 }
 0xacc   :  { %v3308_v14 = vpop.f32.mrf.mxu1 }
 0xacd   :  { %v3565_v41 = vadd.f32 %v3561_v55, %v3549_v39  ;;  %v3566_v43 = vmax.f32 %v3564_v42, 0.0 }
 0xacf   :  { %v3567_v40 = vmax.f32 %v3565_v41, 0.0  ;;  %v3569_v51 = vpack.c.bf16 %v3566_v43, %v3566_v43 }
 0xad1   :  { %v3570_v17 = vpack.c.bf16 %v3567_v40, %v3567_v40 }
 0xad3   :  { %3737 = vmatprep.mubr.bf16.mxu1 %v3570_v17 }
 0xad4   :  { %3738 = vmatmul.mubr.bf16.vlgmr.msra.gmra.mxu1 %v3569_v51 }
 0xb94   :  { %v4021_v37 = vpop.f32.mrf.mxu1 }
 0xb96   :  { %v4022_v2 = vpop.f32.mrf.mxu1 }
 0xb97   :  { %v4023_v21 = vadd.f32 %v4022_v2, %v4021_v37 }
 0xb98   :  { %v4024_v3 = vpop.f32.mrf.mxu1 }
 0xb99   :  { %v3740_v29 = vadd.f32 %v4023_v21, %v3988_v48 }
 0xb9a   :  { %v4025_v27 = vpop.f32.mrf.mxu1 }
 0xb9b   :  { %v3745_v19 = vmul.f32 0.5, %v3740_v29 }
 0xb9d   :  { %4405 = vtanh.f32 %v3745_v19 }
 0xbaa   :  { %v4406_v28 = vpop.eup %4405 }
 0xbab   :  { %v3747_v30 = vadd.f32 1.0, %v4406_v28 }
 0xbad   :  { %v3748_v1 = vmul.f32 0.5, %v3747_v30 }
 0xbaf   :  { %3749 = vst [vmem:[#allocation12] sm:$0xff] %v3748_v1 }
 0xbb0   :  { %4774 = shalt.err (!%p4771_p1)
}
 0xbb1   :  { %3759 = dma.vmem_to_hbm [thread:$0]  %s3757_s30, 128, %s6319_s6, [#allocation5]  }
 0xbb2   :  { %4789 = dma.done.wait [#allocation5], 128  }
 0xbb3   :  { %4790 = vsyncadd [#allocation5], 4294967168 }
 0xbb4   :  { %3763 = vsyncpa [#allocation4], 1 }
 0xbb5   :  { %3764 = vsyncpa [#allocation7], 1 }
 0xbb6   :  { %3765 = vsyncpa [#allocation10], 1 }
 0xbb7   :  { %3766 = vsyncpa [#allocation5], 1 }

</bundles_post_ra>
